<compile_context>
chip_gen: v5e
topology: v5e:2x2
jax: 0.10.0
libtpu: 0.0.40
codegen_flags: <defaults>
</compile_context>

<pallas_src>
import functools
import math

import jax
import jax.numpy as jnp
from jax.experimental import pallas as pl
from jax.experimental.pallas import tpu as pltpu


# ------------------------------ in-kernel helpers ------------------------------

def _layernorm(x, gamma, beta, eps):
    # torch LayerNorm: biased variance over the last dim.
    mean = jnp.mean(x, axis=-1, keepdims=True)
    var = jnp.mean((x - mean) ** 2, axis=-1, keepdims=True)
    return (x - mean) * jax.lax.rsqrt(var + eps) * gamma + beta


def _layer_compute(x, attn_ref,
                   wqkv, bqkv, wout, bout, g1, b1, wf1, bf1, wf2, bf2, g2, b2,
                   *, seq, tb, nhead, eps):
    """Post-norm transformer encoder layer on tb stacked sequences. x: (tb*seq, D) f32."""
    rows, D = x.shape
    hd = D // nhead
    scale = 1.0 / math.sqrt(hd)

    # Fused QKV projection over all tb sequences at once (single big MXU matmul).
    qkv = jnp.dot(x, wqkv, preferred_element_type=jnp.float32) + bqkv      # (rows, 3D)

    # Multi-head self-attention. Heads / batch elements are static slices of qkv;
    # head outputs are folded straight into the output projection (f32 accumulate).
    # Per-batch results are assembled in a VMEM scratch (attn_ref) at static offsets.
    for b in range(tb):
        r0 = b * seq
        acc = None
        for h in range(nhead):
            lo = h * hd
            qh = qkv[r0:r0 + seq, lo:lo + hd]
            kh = qkv[r0:r0 + seq, D + lo:D + lo + hd]
            vh = qkv[r0:r0 + seq, 2 * D + lo:2 * D + lo + hd]
            # q k^T without materializing k.T (contract last dims of both operands).
            s = jax.lax.dot_general(qh, kh, (((1,), (1,)), ((), ())),
                                    preferred_element_type=jnp.float32) * scale
            s = s - jnp.max(s, axis=-1, keepdims=True)
            p = jnp.exp(s)
            p = p * pl.reciprocal(jnp.sum(p, axis=-1, keepdims=True), approx=True)
            oh = jnp.dot(p, vh, preferred_element_type=jnp.float32)        # (seq, hd)
            c = jnp.dot(oh, wout[lo:lo + hd, :],
                        preferred_element_type=jnp.float32)                # (seq, D)
            acc = c if acc is None else acc + c
        attn_ref[r0:r0 + seq, :] = acc
    attn = attn_ref[...] + bout                                            # (rows, D)

    x1 = _layernorm(x + attn, g1, b1, eps)                                 # norm1(src + attn)

    hid = jnp.maximum(jnp.dot(x1, wf1, preferred_element_type=jnp.float32) + bf1, 0.0)
    ff = jnp.dot(hid, wf2, preferred_element_type=jnp.float32) + bf2
    return _layernorm(x1 + ff, g2, b2, eps)                                # norm2(x1 + ffn)


# --------------------------------- kernels -------------------------------------

def _encoder_layer_kernel(x_ref, *refs, seq, tb, nhead, eps, final_ln):
    attn_ref = refs[-1]           # VMEM scratch
    o_ref = refs[-2]
    params = [r[...] for r in refs[:-2]]
    if final_ln:
        *layer_params, g3, b3 = params
    else:
        layer_params, g3, b3 = params, None, None
    y = _layer_compute(x_ref[...].astype(jnp.float32), attn_ref, *layer_params,
                       seq=seq, tb=tb, nhead=nhead, eps=eps)
    if final_ln:
        y = _layernorm(y, g3, b3, eps)
    o_ref[...] = y.astype(o_ref.dtype)


def _skip_encoder_layer_kernel(x_ref, skip_ref, wlx_ref, wls_ref, bl_ref, *refs,
                               seq, tb, nhead, eps, final_ln):
    attn_ref = refs[-1]
    o_ref = refs[-2]
    params = [r[...] for r in refs[:-2]]
    if final_ln:
        *layer_params, g3, b3 = params
    else:
        layer_params, g3, b3 = params, None, None
    # cat([x, skip], -1) @ W_lin  ==  x @ W_lin[:D] + skip @ W_lin[D:]   (no concat slab)
    x_in = (jnp.dot(x_ref[...].astype(jnp.float32), wlx_ref[...],
                    preferred_element_type=jnp.float32)
            + jnp.dot(skip_ref[...].astype(jnp.float32), wls_ref[...],
                      preferred_element_type=jnp.float32)
            + bl_ref[...])
    y = _layer_compute(x_in, attn_ref, *layer_params,
                       seq=seq, tb=tb, nhead=nhead, eps=eps)
    if final_ln:
        y = _layernorm(y, g3, b3, eps)
    o_ref[...] = y.astype(o_ref.dtype)


# --------------------------------- wrappers -------------------------------------

def _full_spec(r, c):
    # Weight / bias resident block: same block index every grid step (no re-DMA).
    return pl.BlockSpec((r, c), lambda i: (0, 0))


def _layer_param_list(p):
    return [p["w_qkv"], p["b_qkv"], p["w_out"], p["b_out"], p["ln1_g"], p["ln1_b"],
            p["w_ff1"], p["b_ff1"], p["w_ff2"], p["b_ff2"], p["ln2_g"], p["ln2_b"]]


def _layer_param_specs(D, F):
    return [_full_spec(D, 3 * D), _full_spec(1, 3 * D),
            _full_spec(D, D), _full_spec(1, D),
            _full_spec(1, D), _full_spec(1, D),
            _full_spec(D, F), _full_spec(1, F),
            _full_spec(F, D), _full_spec(1, D),
            _full_spec(1, D), _full_spec(1, D)]


def _pick_batch_tile(batch, seq, max_rows=512):
    """Largest divisor tb of batch with (tb*seq) 8-aligned (or tb==batch) and
    tb*seq <= max_rows rows per grid step (keeps VMEM footprint modest)."""
    divisors = [d for d in range(1, batch + 1) if batch % d == 0]
    valid = [d for d in divisors if (d * seq) % 8 == 0 or d == batch]
    fitting = [d for d in valid if d * seq <= max_rows]
    return max(fitting) if fitting else min(valid)


def pallas_encoder_layer(x, p, *, seq, tb, nhead, eps=1e-5, final_ln=None):
    """x: (B*S, D) batch-major row slab. One fused pallas_call; grid over batch tiles."""
    R, D = x.shape
    F = p["w_ff1"].shape[1]
    rows = tb * seq
    xspec = pl.BlockSpec((rows, D), lambda i: (i, 0))
    params = _layer_param_list(p)
    specs = list(_layer_param_specs(D, F))
    if final_ln is not None:
        params += list(final_ln)
        specs += [_full_spec(1, D), _full_spec(1, D)]
    return pl.pallas_call(
        functools.partial(_encoder_layer_kernel, seq=seq, tb=tb, nhead=nhead,
                          eps=eps, final_ln=final_ln is not None),
        out_shape=jax.ShapeDtypeStruct((R, D), x.dtype),
        grid=(R // rows,),
        in_specs=[xspec] + specs,
        out_specs=xspec,
        scratch_shapes=[pltpu.VMEM((rows, D), jnp.float32)],
        compiler_params=pltpu.CompilerParams(dimension_semantics=("parallel",)),
    )(x, *params)


def pallas_skip_encoder_layer(x, skip, w_lin, b_lin, p, *, seq, tb, nhead,
                              eps=1e-5, final_ln=None):
    """Fused (skip-linear + encoder layer [+ final LN]). w_lin: (2D, D) transposed torch weight."""
    R, D = x.shape
    F = p["w_ff1"].shape[1]
    rows = tb * seq
    w_x = w_lin[:D]     # rows applied to x   (torch cat order is [x, skip])
    w_s = w_lin[D:]     # rows applied to skip
    xspec = pl.BlockSpec((rows, D), lambda i: (i, 0))
    params = _layer_param_list(p)
    specs = list(_layer_param_specs(D, F))
    if final_ln is not None:
        params += list(final_ln)
        specs += [_full_spec(1, D), _full_spec(1, D)]
    return pl.pallas_call(
        functools.partial(_skip_encoder_layer_kernel, seq=seq, tb=tb, nhead=nhead,
                          eps=eps, final_ln=final_ln is not None),
        out_shape=jax.ShapeDtypeStruct((R, D), x.dtype),
        grid=(R // rows,),
        in_specs=[xspec, xspec, _full_spec(D, D), _full_spec(D, D), _full_spec(1, D)] + specs,
        out_specs=xspec,
        scratch_shapes=[pltpu.VMEM((rows, D), jnp.float32)],
        compiler_params=pltpu.CompilerParams(dimension_semantics=("parallel",)),
    )(x, skip, w_x, w_s, b_lin, *params)


# --------------------------- parameter construction -----------------------------

def _xavier_uniform(key, shape, fan_in, fan_out, dtype=jnp.float32):
    limit = math.sqrt(6.0 / (fan_in + fan_out))
    return jax.random.uniform(key, shape, dtype, -limit, limit)


def init_encoder_layer_params(key, d_model, dim_ff):
    k = jax.random.split(key, 4)
    D, F = d_model, dim_ff
    return {
        # torch MHA in_proj (3D, D) / out_proj (D, D) stored transposed as (in, out)
        "w_qkv": _xavier_uniform(k[0], (D, 3 * D), D, 3 * D),
        "b_qkv": jnp.zeros((1, 3 * D), jnp.float32),
        "w_out": _xavier_uniform(k[1], (D, D), D, D),
        "b_out": jnp.zeros((1, D), jnp.float32),
        "ln1_g": jnp.ones((1, D), jnp.float32),
        "ln1_b": jnp.zeros((1, D), jnp.float32),
        "w_ff1": _xavier_uniform(k[2], (D, F), D, F),
        "b_ff1": jnp.zeros((1, F), jnp.float32),
        "w_ff2": _xavier_uniform(k[3], (F, D), F, D),
        "b_ff2": jnp.zeros((1, D), jnp.float32),
        "ln2_g": jnp.ones((1, D), jnp.float32),
        "ln2_b": jnp.zeros((1, D), jnp.float32),
    }


def init_skip_encoder_params(key, num_layers, d_model, dim_ff):
    assert num_layers % 2 == 1
    num_block = (num_layers - 1) // 2
    keys = jax.random.split(key, 2 * num_block + num_block + 2)
    return {
        "input_blocks": [init_encoder_layer_params(keys[i], d_model, dim_ff)
                         for i in range(num_block)],
        "middle_block": init_encoder_layer_params(keys[num_block], d_model, dim_ff),
        "output_blocks": [init_encoder_layer_params(keys[num_block + 1 + i], d_model, dim_ff)
                          for i in range(num_block)],
        "linear_blocks": [
            {"w": _xavier_uniform(keys[2 * num_block + 1 + i],
                                  (2 * d_model, d_model), 2 * d_model, d_model),
             "b": jnp.zeros((1, d_model), jnp.float32)}
            for i in range(num_block)],
        # final norm (nn.LayerNorm(d_model), as used by MLD's SkipTransformerEncoder)
        "norm_g": jnp.ones((1, d_model), jnp.float32),
        "norm_b": jnp.zeros((1, d_model), jnp.float32),
    }


# ------------------------------- forward pass -----------------------------------

def skip_transformer_encoder_forward(src, params, nhead, eps=1e-5):
    """src: (S, B, D). mask / src_key_padding_mask / pos are None."""
    # TODO(synk): src_mask / src_key_padding_mask / pos support not implemented
    #             (they are None at the MLD MotionVAE call sites).
    S, B, D = src.shape
    x = jnp.transpose(src, (1, 0, 2)).reshape(B * S, D)   # batch-major row slab
    tb = _pick_batch_tile(B, S)
    num_block = len(params["input_blocks"])
    final = (params["norm_g"], params["norm_b"])

    xs = []
    for p in params["input_blocks"]:
        x = pallas_encoder_layer(x, p, seq=S, tb=tb, nhead=nhead, eps=eps)
        xs.append(x)
    # If there are no output blocks, the middle block is last -> fuse final LN there.
    x = pallas_encoder_layer(x, params["middle_block"], seq=S, tb=tb, nhead=nhead, eps=eps,
                             final_ln=final if num_block == 0 else None)
    for i, (p_layer, p_lin) in enumerate(zip(params["output_blocks"], params["linear_blocks"])):
        skip = xs.pop()
        x = pallas_skip_encoder_layer(
            x, skip, p_lin["w"], p_lin["b"], p_layer, seq=S, tb=tb, nhead=nhead, eps=eps,
            final_ln=final if i == num_block - 1 else None)   # fuse final LN into last layer
    return jnp.transpose(x.reshape(B, S, D), (1, 0, 2))       # back to (S, B, D)


# ----------------------------------- main ----------------------------------------

if __name__ == "__main__":
    S, B = 8, 2            # sequence length, batch
    D_MODEL = 32
    NHEAD = 4
    DIM_FF = 64
    NUM_LAYERS = 3         # odd -> 1 input block, 1 middle, 1 output block

    assert D_MODEL % NHEAD == 0

    root = jax.random.PRNGKey(0)
    k_param, k_src = jax.random.split(root)

    params = init_skip_encoder_params(k_param, NUM_LAYERS, D_MODEL, DIM_FF)
    src = jax.random.normal(k_src, (S, B, D_MODEL), jnp.float32)

    fwd = jax.jit(functools.partial(skip_transformer_encoder_forward, nhead=NHEAD))
    out = fwd(src, params)
    out = jax.block_until_ready(out)

    assert out.shape == (S, B, D_MODEL)
    assert out.dtype == jnp.float32
    assert bool(jnp.all(jnp.isfinite(out)))
    print("KERNEL_OK")
</pallas_src>

<mosaic_0001>
module attributes {stable_mosaic.version = 11 : i64} {
  func.func @_encoder_layer_kernel(%arg0: i32, %arg1: memref<16x32xf32, #tpu.memory_space<vmem>>, %arg2: memref<32x96xf32, #tpu.memory_space<vmem>>, %arg3: memref<1x96xf32, #tpu.memory_space<vmem>>, %arg4: memref<32x32xf32, #tpu.memory_space<vmem>>, %arg5: memref<1x32xf32, #tpu.memory_space<vmem>>, %arg6: memref<1x32xf32, #tpu.memory_space<vmem>>, %arg7: memref<1x32xf32, #tpu.memory_space<vmem>>, %arg8: memref<32x64xf32, #tpu.memory_space<vmem>>, %arg9: memref<1x64xf32, #tpu.memory_space<vmem>>, %arg10: memref<64x32xf32, #tpu.memory_space<vmem>>, %arg11: memref<1x32xf32, #tpu.memory_space<vmem>>, %arg12: memref<1x32xf32, #tpu.memory_space<vmem>>, %arg13: memref<1x32xf32, #tpu.memory_space<vmem>>, %arg14: memref<16x32xf32, #tpu.memory_space<vmem>>, %arg15: memref<16x32xf32, #tpu.memory_space<vmem>>) attributes {dimension_semantics = [#tpu.dimension_semantics<parallel>], iteration_bounds = array<i64: 1>, scalar_prefetch = 0 : i64, scratch_operands = 1 : i64, tpu.core_type = #tpu.core_type<tc>, window_params = [{transform_indices = @transform_0, window_bounds = array<i64: 16, 32>}, {pipeline_mode = #tpu.pipeline_mode<synchronous>, transform_indices = @transform_1, window_bounds = array<i64: 32, 96>}, {pipeline_mode = #tpu.pipeline_mode<synchronous>, transform_indices = @transform_2, window_bounds = array<i64: 1, 96>}, {pipeline_mode = #tpu.pipeline_mode<synchronous>, transform_indices = @transform_3, window_bounds = array<i64: 32, 32>}, {pipeline_mode = #tpu.pipeline_mode<synchronous>, transform_indices = @transform_4, window_bounds = array<i64: 1, 32>}, {pipeline_mode = #tpu.pipeline_mode<synchronous>, transform_indices = @transform_5, window_bounds = array<i64: 1, 32>}, {pipeline_mode = #tpu.pipeline_mode<synchronous>, transform_indices = @transform_6, window_bounds = array<i64: 1, 32>}, {pipeline_mode = #tpu.pipeline_mode<synchronous>, transform_indices = @transform_7, window_bounds = array<i64: 32, 64>}, {pipeline_mode = #tpu.pipeline_mode<synchronous>, transform_indices = @transform_8, window_bounds = array<i64: 1, 64>}, {pipeline_mode = #tpu.pipeline_mode<synchronous>, transform_indices = @transform_9, window_bounds = array<i64: 64, 32>}, {pipeline_mode = #tpu.pipeline_mode<synchronous>, transform_indices = @transform_10, window_bounds = array<i64: 1, 32>}, {pipeline_mode = #tpu.pipeline_mode<synchronous>, transform_indices = @transform_11, window_bounds = array<i64: 1, 32>}, {pipeline_mode = #tpu.pipeline_mode<synchronous>, transform_indices = @transform_12, window_bounds = array<i64: 1, 32>}, {transform_indices = @transform_13, window_bounds = array<i64: 16, 32>}]} {
    %c0 = arith.constant 0 : index
    %c0_0 = arith.constant 0 : index
    %0 = vector.load %arg2[%c0, %c0_0] : memref<32x96xf32, #tpu.memory_space<vmem>>, vector<32x96xf32>
    %c0_1 = arith.constant 0 : index
    %c0_2 = arith.constant 0 : index
    %1 = vector.load %arg3[%c0_1, %c0_2] : memref<1x96xf32, #tpu.memory_space<vmem>>, vector<1x96xf32>
    %c0_3 = arith.constant 0 : index
    %c0_4 = arith.constant 0 : index
    %2 = vector.load %arg4[%c0_3, %c0_4] : memref<32x32xf32, #tpu.memory_space<vmem>>, vector<32x32xf32>
    %c0_5 = arith.constant 0 : index
    %c0_6 = arith.constant 0 : index
    %3 = vector.load %arg5[%c0_5, %c0_6] : memref<1x32xf32, #tpu.memory_space<vmem>>, vector<1x32xf32>
    %c0_7 = arith.constant 0 : index
    %c0_8 = arith.constant 0 : index
    %4 = vector.load %arg6[%c0_7, %c0_8] : memref<1x32xf32, #tpu.memory_space<vmem>>, vector<1x32xf32>
    %c0_9 = arith.constant 0 : index
    %c0_10 = arith.constant 0 : index
    %5 = vector.load %arg7[%c0_9, %c0_10] : memref<1x32xf32, #tpu.memory_space<vmem>>, vector<1x32xf32>
    %c0_11 = arith.constant 0 : index
    %c0_12 = arith.constant 0 : index
    %6 = vector.load %arg8[%c0_11, %c0_12] : memref<32x64xf32, #tpu.memory_space<vmem>>, vector<32x64xf32>
    %c0_13 = arith.constant 0 : index
    %c0_14 = arith.constant 0 : index
    %7 = vector.load %arg9[%c0_13, %c0_14] : memref<1x64xf32, #tpu.memory_space<vmem>>, vector<1x64xf32>
    %c0_15 = arith.constant 0 : index
    %c0_16 = arith.constant 0 : index
    %8 = vector.load %arg10[%c0_15, %c0_16] : memref<64x32xf32, #tpu.memory_space<vmem>>, vector<64x32xf32>
    %c0_17 = arith.constant 0 : index
    %c0_18 = arith.constant 0 : index
    %9 = vector.load %arg11[%c0_17, %c0_18] : memref<1x32xf32, #tpu.memory_space<vmem>>, vector<1x32xf32>
    %c0_19 = arith.constant 0 : index
    %c0_20 = arith.constant 0 : index
    %10 = vector.load %arg12[%c0_19, %c0_20] : memref<1x32xf32, #tpu.memory_space<vmem>>, vector<1x32xf32>
    %c0_21 = arith.constant 0 : index
    %c0_22 = arith.constant 0 : index
    %11 = vector.load %arg13[%c0_21, %c0_22] : memref<1x32xf32, #tpu.memory_space<vmem>>, vector<1x32xf32>
    %c0_23 = arith.constant 0 : index
    %c0_24 = arith.constant 0 : index
    %12 = vector.load %arg1[%c0_23, %c0_24] : memref<16x32xf32, #tpu.memory_space<vmem>>, vector<16x32xf32>
    %cst = arith.constant dense<0.000000e+00> : vector<16x96xf32>
    %13 = tpu.matmul %12, %0, %cst {dimension_numbers = #tpu.dot_dimension_numbers<[1], [0], [0], [1], [0, 0, 1, 1], [], []>} : vector<16x32xf32>, vector<32x96xf32>, vector<16x96xf32> -> vector<16x96xf32>
    %14 = vector.broadcast %1 : vector<1x96xf32> to vector<16x96xf32>
    %15 = arith.addf %13, %14 : vector<16x96xf32>
    %16 = vector.extract_strided_slice %15 {offsets = [0, 0], sizes = [8, 8], strides = [1, 1]} : vector<16x96xf32> to vector<8x8xf32>
    %17 = vector.extract_strided_slice %15 {offsets = [0, 32], sizes = [8, 8], strides = [1, 1]} : vector<16x96xf32> to vector<8x8xf32>
    %18 = vector.extract_strided_slice %15 {offsets = [0, 64], sizes = [8, 8], strides = [1, 1]} : vector<16x96xf32> to vector<8x8xf32>
    %cst_25 = arith.constant dense<0.000000e+00> : vector<8x8xf32>
    %19 = tpu.matmul %16, %17, %cst_25 {dimension_numbers = #tpu.dot_dimension_numbers<[1], [1], [0], [0], [0, 0, 1, 0], [], []>} : vector<8x8xf32>, vector<8x8xf32>, vector<8x8xf32> -> vector<8x8xf32>
    %cst_26 = arith.constant 0.353553385 : f32
    %20 = vector.broadcast %cst_26 : f32 to vector<8x8xf32>
    %21 = arith.mulf %19, %20 : vector<8x8xf32>
    %cst_27 = arith.constant dense<0xFF800000> : vector<8xf32>
    %22 = vector.multi_reduction <maximumf>, %21, %cst_27 [1] : vector<8x8xf32> to vector<8xf32>
    %23 = vector.shape_cast %22 : vector<8xf32> to vector<8x1xf32>
    %24 = vector.broadcast %23 : vector<8x1xf32> to vector<8x8xf32>
    %25 = arith.subf %21, %24 : vector<8x8xf32>
    %26 = math.exp %25 : vector<8x8xf32>
    %cst_28 = arith.constant dense<0.000000e+00> : vector<8xf32>
    %27 = vector.multi_reduction <add>, %26, %cst_28 [1] : vector<8x8xf32> to vector<8xf32>
    %28 = vector.shape_cast %27 : vector<8xf32> to vector<8x1xf32>
    %29 = tpu.reciprocal %28 {approx = true} : vector<8x1xf32> -> vector<8x1xf32>
    %30 = vector.broadcast %29 : vector<8x1xf32> to vector<8x8xf32>
    %31 = arith.mulf %26, %30 : vector<8x8xf32>
    %cst_29 = arith.constant dense<0.000000e+00> : vector<8x8xf32>
    %32 = tpu.matmul %31, %18, %cst_29 {dimension_numbers = #tpu.dot_dimension_numbers<[1], [0], [0], [1], [0, 0, 1, 1], [], []>} : vector<8x8xf32>, vector<8x8xf32>, vector<8x8xf32> -> vector<8x8xf32>
    %33 = vector.extract_strided_slice %2 {offsets = [0, 0], sizes = [8, 32], strides = [1, 1]} : vector<32x32xf32> to vector<8x32xf32>
    %cst_30 = arith.constant dense<0.000000e+00> : vector<8x32xf32>
    %34 = tpu.matmul %32, %33, %cst_30 {dimension_numbers = #tpu.dot_dimension_numbers<[1], [0], [0], [1], [0, 0, 1, 1], [], []>} : vector<8x8xf32>, vector<8x32xf32>, vector<8x32xf32> -> vector<8x32xf32>
    %35 = vector.extract_strided_slice %15 {offsets = [0, 8], sizes = [8, 8], strides = [1, 1]} : vector<16x96xf32> to vector<8x8xf32>
    %36 = vector.extract_strided_slice %15 {offsets = [0, 40], sizes = [8, 8], strides = [1, 1]} : vector<16x96xf32> to vector<8x8xf32>
    %37 = vector.extract_strided_slice %15 {offsets = [0, 72], sizes = [8, 8], strides = [1, 1]} : vector<16x96xf32> to vector<8x8xf32>
    %cst_31 = arith.constant dense<0.000000e+00> : vector<8x8xf32>
    %38 = tpu.matmul %35, %36, %cst_31 {dimension_numbers = #tpu.dot_dimension_numbers<[1], [1], [0], [0], [0, 0, 1, 0], [], []>} : vector<8x8xf32>, vector<8x8xf32>, vector<8x8xf32> -> vector<8x8xf32>
    %cst_32 = arith.constant 0.353553385 : f32
    %39 = vector.broadcast %cst_32 : f32 to vector<8x8xf32>
    %40 = arith.mulf %38, %39 : vector<8x8xf32>
    %cst_33 = arith.constant dense<0xFF800000> : vector<8xf32>
    %41 = vector.multi_reduction <maximumf>, %40, %cst_33 [1] : vector<8x8xf32> to vector<8xf32>
    %42 = vector.shape_cast %41 : vector<8xf32> to vector<8x1xf32>
    %43 = vector.broadcast %42 : vector<8x1xf32> to vector<8x8xf32>
    %44 = arith.subf %40, %43 : vector<8x8xf32>
    %45 = math.exp %44 : vector<8x8xf32>
    %cst_34 = arith.constant dense<0.000000e+00> : vector<8xf32>
    %46 = vector.multi_reduction <add>, %45, %cst_34 [1] : vector<8x8xf32> to vector<8xf32>
    %47 = vector.shape_cast %46 : vector<8xf32> to vector<8x1xf32>
    %48 = tpu.reciprocal %47 {approx = true} : vector<8x1xf32> -> vector<8x1xf32>
    %49 = vector.broadcast %48 : vector<8x1xf32> to vector<8x8xf32>
    %50 = arith.mulf %45, %49 : vector<8x8xf32>
    %cst_35 = arith.constant dense<0.000000e+00> : vector<8x8xf32>
    %51 = tpu.matmul %50, %37, %cst_35 {dimension_numbers = #tpu.dot_dimension_numbers<[1], [0], [0], [1], [0, 0, 1, 1], [], []>} : vector<8x8xf32>, vector<8x8xf32>, vector<8x8xf32> -> vector<8x8xf32>
    %52 = vector.extract_strided_slice %2 {offsets = [8, 0], sizes = [8, 32], strides = [1, 1]} : vector<32x32xf32> to vector<8x32xf32>
    %cst_36 = arith.constant dense<0.000000e+00> : vector<8x32xf32>
    %53 = tpu.matmul %51, %52, %cst_36 {dimension_numbers = #tpu.dot_dimension_numbers<[1], [0], [0], [1], [0, 0, 1, 1], [], []>} : vector<8x8xf32>, vector<8x32xf32>, vector<8x32xf32> -> vector<8x32xf32>
    %54 = arith.addf %34, %53 : vector<8x32xf32>
    %55 = vector.extract_strided_slice %15 {offsets = [0, 16], sizes = [8, 8], strides = [1, 1]} : vector<16x96xf32> to vector<8x8xf32>
    %56 = vector.extract_strided_slice %15 {offsets = [0, 48], sizes = [8, 8], strides = [1, 1]} : vector<16x96xf32> to vector<8x8xf32>
    %57 = vector.extract_strided_slice %15 {offsets = [0, 80], sizes = [8, 8], strides = [1, 1]} : vector<16x96xf32> to vector<8x8xf32>
    %cst_37 = arith.constant dense<0.000000e+00> : vector<8x8xf32>
    %58 = tpu.matmul %55, %56, %cst_37 {dimension_numbers = #tpu.dot_dimension_numbers<[1], [1], [0], [0], [0, 0, 1, 0], [], []>} : vector<8x8xf32>, vector<8x8xf32>, vector<8x8xf32> -> vector<8x8xf32>
    %cst_38 = arith.constant 0.353553385 : f32
    %59 = vector.broadcast %cst_38 : f32 to vector<8x8xf32>
    %60 = arith.mulf %58, %59 : vector<8x8xf32>
    %cst_39 = arith.constant dense<0xFF800000> : vector<8xf32>
    %61 = vector.multi_reduction <maximumf>, %60, %cst_39 [1] : vector<8x8xf32> to vector<8xf32>
    %62 = vector.shape_cast %61 : vector<8xf32> to vector<8x1xf32>
    %63 = vector.broadcast %62 : vector<8x1xf32> to vector<8x8xf32>
    %64 = arith.subf %60, %63 : vector<8x8xf32>
    %65 = math.exp %64 : vector<8x8xf32>
    %cst_40 = arith.constant dense<0.000000e+00> : vector<8xf32>
    %66 = vector.multi_reduction <add>, %65, %cst_40 [1] : vector<8x8xf32> to vector<8xf32>
    %67 = vector.shape_cast %66 : vector<8xf32> to vector<8x1xf32>
    %68 = tpu.reciprocal %67 {approx = true} : vector<8x1xf32> -> vector<8x1xf32>
    %69 = vector.broadcast %68 : vector<8x1xf32> to vector<8x8xf32>
    %70 = arith.mulf %65, %69 : vector<8x8xf32>
    %cst_41 = arith.constant dense<0.000000e+00> : vector<8x8xf32>
    %71 = tpu.matmul %70, %57, %cst_41 {dimension_numbers = #tpu.dot_dimension_numbers<[1], [0], [0], [1], [0, 0, 1, 1], [], []>} : vector<8x8xf32>, vector<8x8xf32>, vector<8x8xf32> -> vector<8x8xf32>
    %72 = vector.extract_strided_slice %2 {offsets = [16, 0], sizes = [8, 32], strides = [1, 1]} : vector<32x32xf32> to vector<8x32xf32>
    %cst_42 = arith.constant dense<0.000000e+00> : vector<8x32xf32>
    %73 = tpu.matmul %71, %72, %cst_42 {dimension_numbers = #tpu.dot_dimension_numbers<[1], [0], [0], [1], [0, 0, 1, 1], [], []>} : vector<8x8xf32>, vector<8x32xf32>, vector<8x32xf32> -> vector<8x32xf32>
    %74 = arith.addf %54, %73 : vector<8x32xf32>
    %75 = vector.extract_strided_slice %15 {offsets = [0, 24], sizes = [8, 8], strides = [1, 1]} : vector<16x96xf32> to vector<8x8xf32>
    %76 = vector.extract_strided_slice %15 {offsets = [0, 56], sizes = [8, 8], strides = [1, 1]} : vector<16x96xf32> to vector<8x8xf32>
    %77 = vector.extract_strided_slice %15 {offsets = [0, 88], sizes = [8, 8], strides = [1, 1]} : vector<16x96xf32> to vector<8x8xf32>
    %cst_43 = arith.constant dense<0.000000e+00> : vector<8x8xf32>
    %78 = tpu.matmul %75, %76, %cst_43 {dimension_numbers = #tpu.dot_dimension_numbers<[1], [1], [0], [0], [0, 0, 1, 0], [], []>} : vector<8x8xf32>, vector<8x8xf32>, vector<8x8xf32> -> vector<8x8xf32>
    %cst_44 = arith.constant 0.353553385 : f32
    %79 = vector.broadcast %cst_44 : f32 to vector<8x8xf32>
    %80 = arith.mulf %78, %79 : vector<8x8xf32>
    %cst_45 = arith.constant dense<0xFF800000> : vector<8xf32>
    %81 = vector.multi_reduction <maximumf>, %80, %cst_45 [1] : vector<8x8xf32> to vector<8xf32>
    %82 = vector.shape_cast %81 : vector<8xf32> to vector<8x1xf32>
    %83 = vector.broadcast %82 : vector<8x1xf32> to vector<8x8xf32>
    %84 = arith.subf %80, %83 : vector<8x8xf32>
    %85 = math.exp %84 : vector<8x8xf32>
    %cst_46 = arith.constant dense<0.000000e+00> : vector<8xf32>
    %86 = vector.multi_reduction <add>, %85, %cst_46 [1] : vector<8x8xf32> to vector<8xf32>
    %87 = vector.shape_cast %86 : vector<8xf32> to vector<8x1xf32>
    %88 = tpu.reciprocal %87 {approx = true} : vector<8x1xf32> -> vector<8x1xf32>
    %89 = vector.broadcast %88 : vector<8x1xf32> to vector<8x8xf32>
    %90 = arith.mulf %85, %89 : vector<8x8xf32>
    %cst_47 = arith.constant dense<0.000000e+00> : vector<8x8xf32>
    %91 = tpu.matmul %90, %77, %cst_47 {dimension_numbers = #tpu.dot_dimension_numbers<[1], [0], [0], [1], [0, 0, 1, 1], [], []>} : vector<8x8xf32>, vector<8x8xf32>, vector<8x8xf32> -> vector<8x8xf32>
    %92 = vector.extract_strided_slice %2 {offsets = [24, 0], sizes = [8, 32], strides = [1, 1]} : vector<32x32xf32> to vector<8x32xf32>
    %cst_48 = arith.constant dense<0.000000e+00> : vector<8x32xf32>
    %93 = tpu.matmul %91, %92, %cst_48 {dimension_numbers = #tpu.dot_dimension_numbers<[1], [0], [0], [1], [0, 0, 1, 1], [], []>} : vector<8x8xf32>, vector<8x32xf32>, vector<8x32xf32> -> vector<8x32xf32>
    %94 = arith.addf %74, %93 : vector<8x32xf32>
    %c0_49 = arith.constant 0 : index
    %c0_50 = arith.constant 0 : index
    %95 = vector.load %arg15[%c0_49, %c0_50] : memref<16x32xf32, #tpu.memory_space<vmem>>, vector<8x32xf32>
    tpu.vector_store %arg15[%c0_49, %c0_50], %94 {strides = array<i32>} : memref<16x32xf32, #tpu.memory_space<vmem>>, vector<8x32xf32>,
    %96 = vector.extract_strided_slice %15 {offsets = [8, 0], sizes = [8, 8], strides = [1, 1]} : vector<16x96xf32> to vector<8x8xf32>
    %97 = vector.extract_strided_slice %15 {offsets = [8, 32], sizes = [8, 8], strides = [1, 1]} : vector<16x96xf32> to vector<8x8xf32>
    %98 = vector.extract_strided_slice %15 {offsets = [8, 64], sizes = [8, 8], strides = [1, 1]} : vector<16x96xf32> to vector<8x8xf32>
    %cst_51 = arith.constant dense<0.000000e+00> : vector<8x8xf32>
    %99 = tpu.matmul %96, %97, %cst_51 {dimension_numbers = #tpu.dot_dimension_numbers<[1], [1], [0], [0], [0, 0, 1, 0], [], []>} : vector<8x8xf32>, vector<8x8xf32>, vector<8x8xf32> -> vector<8x8xf32>
    %cst_52 = arith.constant 0.353553385 : f32
    %100 = vector.broadcast %cst_52 : f32 to vector<8x8xf32>
    %101 = arith.mulf %99, %100 : vector<8x8xf32>
    %cst_53 = arith.constant dense<0xFF800000> : vector<8xf32>
    %102 = vector.multi_reduction <maximumf>, %101, %cst_53 [1] : vector<8x8xf32> to vector<8xf32>
    %103 = vector.shape_cast %102 : vector<8xf32> to vector<8x1xf32>
    %104 = vector.broadcast %103 : vector<8x1xf32> to vector<8x8xf32>
    %105 = arith.subf %101, %104 : vector<8x8xf32>
    %106 = math.exp %105 : vector<8x8xf32>
    %cst_54 = arith.constant dense<0.000000e+00> : vector<8xf32>
    %107 = vector.multi_reduction <add>, %106, %cst_54 [1] : vector<8x8xf32> to vector<8xf32>
    %108 = vector.shape_cast %107 : vector<8xf32> to vector<8x1xf32>
    %109 = tpu.reciprocal %108 {approx = true} : vector<8x1xf32> -> vector<8x1xf32>
    %110 = vector.broadcast %109 : vector<8x1xf32> to vector<8x8xf32>
    %111 = arith.mulf %106, %110 : vector<8x8xf32>
    %cst_55 = arith.constant dense<0.000000e+00> : vector<8x8xf32>
    %112 = tpu.matmul %111, %98, %cst_55 {dimension_numbers = #tpu.dot_dimension_numbers<[1], [0], [0], [1], [0, 0, 1, 1], [], []>} : vector<8x8xf32>, vector<8x8xf32>, vector<8x8xf32> -> vector<8x8xf32>
    %113 = vector.extract_strided_slice %2 {offsets = [0, 0], sizes = [8, 32], strides = [1, 1]} : vector<32x32xf32> to vector<8x32xf32>
    %cst_56 = arith.constant dense<0.000000e+00> : vector<8x32xf32>
    %114 = tpu.matmul %112, %113, %cst_56 {dimension_numbers = #tpu.dot_dimension_numbers<[1], [0], [0], [1], [0, 0, 1, 1], [], []>} : vector<8x8xf32>, vector<8x32xf32>, vector<8x32xf32> -> vector<8x32xf32>
    %115 = vector.extract_strided_slice %15 {offsets = [8, 8], sizes = [8, 8], strides = [1, 1]} : vector<16x96xf32> to vector<8x8xf32>
    %116 = vector.extract_strided_slice %15 {offsets = [8, 40], sizes = [8, 8], strides = [1, 1]} : vector<16x96xf32> to vector<8x8xf32>
    %117 = vector.extract_strided_slice %15 {offsets = [8, 72], sizes = [8, 8], strides = [1, 1]} : vector<16x96xf32> to vector<8x8xf32>
    %cst_57 = arith.constant dense<0.000000e+00> : vector<8x8xf32>
    %118 = tpu.matmul %115, %116, %cst_57 {dimension_numbers = #tpu.dot_dimension_numbers<[1], [1], [0], [0], [0, 0, 1, 0], [], []>} : vector<8x8xf32>, vector<8x8xf32>, vector<8x8xf32> -> vector<8x8xf32>
    %cst_58 = arith.constant 0.353553385 : f32
    %119 = vector.broadcast %cst_58 : f32 to vector<8x8xf32>
    %120 = arith.mulf %118, %119 : vector<8x8xf32>
    %cst_59 = arith.constant dense<0xFF800000> : vector<8xf32>
    %121 = vector.multi_reduction <maximumf>, %120, %cst_59 [1] : vector<8x8xf32> to vector<8xf32>
    %122 = vector.shape_cast %121 : vector<8xf32> to vector<8x1xf32>
    %123 = vector.broadcast %122 : vector<8x1xf32> to vector<8x8xf32>
    %124 = arith.subf %120, %123 : vector<8x8xf32>
    %125 = math.exp %124 : vector<8x8xf32>
    %cst_60 = arith.constant dense<0.000000e+00> : vector<8xf32>
    %126 = vector.multi_reduction <add>, %125, %cst_60 [1] : vector<8x8xf32> to vector<8xf32>
    %127 = vector.shape_cast %126 : vector<8xf32> to vector<8x1xf32>
    %128 = tpu.reciprocal %127 {approx = true} : vector<8x1xf32> -> vector<8x1xf32>
    %129 = vector.broadcast %128 : vector<8x1xf32> to vector<8x8xf32>
    %130 = arith.mulf %125, %129 : vector<8x8xf32>
    %cst_61 = arith.constant dense<0.000000e+00> : vector<8x8xf32>
    %131 = tpu.matmul %130, %117, %cst_61 {dimension_numbers = #tpu.dot_dimension_numbers<[1], [0], [0], [1], [0, 0, 1, 1], [], []>} : vector<8x8xf32>, vector<8x8xf32>, vector<8x8xf32> -> vector<8x8xf32>
    %132 = vector.extract_strided_slice %2 {offsets = [8, 0], sizes = [8, 32], strides = [1, 1]} : vector<32x32xf32> to vector<8x32xf32>
    %cst_62 = arith.constant dense<0.000000e+00> : vector<8x32xf32>
    %133 = tpu.matmul %131, %132, %cst_62 {dimension_numbers = #tpu.dot_dimension_numbers<[1], [0], [0], [1], [0, 0, 1, 1], [], []>} : vector<8x8xf32>, vector<8x32xf32>, vector<8x32xf32> -> vector<8x32xf32>
    %134 = arith.addf %114, %133 : vector<8x32xf32>
    %135 = vector.extract_strided_slice %15 {offsets = [8, 16], sizes = [8, 8], strides = [1, 1]} : vector<16x96xf32> to vector<8x8xf32>
    %136 = vector.extract_strided_slice %15 {offsets = [8, 48], sizes = [8, 8], strides = [1, 1]} : vector<16x96xf32> to vector<8x8xf32>
    %137 = vector.extract_strided_slice %15 {offsets = [8, 80], sizes = [8, 8], strides = [1, 1]} : vector<16x96xf32> to vector<8x8xf32>
    %cst_63 = arith.constant dense<0.000000e+00> : vector<8x8xf32>
    %138 = tpu.matmul %135, %136, %cst_63 {dimension_numbers = #tpu.dot_dimension_numbers<[1], [1], [0], [0], [0, 0, 1, 0], [], []>} : vector<8x8xf32>, vector<8x8xf32>, vector<8x8xf32> -> vector<8x8xf32>
    %cst_64 = arith.constant 0.353553385 : f32
    %139 = vector.broadcast %cst_64 : f32 to vector<8x8xf32>
    %140 = arith.mulf %138, %139 : vector<8x8xf32>
    %cst_65 = arith.constant dense<0xFF800000> : vector<8xf32>
    %141 = vector.multi_reduction <maximumf>, %140, %cst_65 [1] : vector<8x8xf32> to vector<8xf32>
    %142 = vector.shape_cast %141 : vector<8xf32> to vector<8x1xf32>
    %143 = vector.broadcast %142 : vector<8x1xf32> to vector<8x8xf32>
    %144 = arith.subf %140, %143 : vector<8x8xf32>
    %145 = math.exp %144 : vector<8x8xf32>
    %cst_66 = arith.constant dense<0.000000e+00> : vector<8xf32>
    %146 = vector.multi_reduction <add>, %145, %cst_66 [1] : vector<8x8xf32> to vector<8xf32>
    %147 = vector.shape_cast %146 : vector<8xf32> to vector<8x1xf32>
    %148 = tpu.reciprocal %147 {approx = true} : vector<8x1xf32> -> vector<8x1xf32>
    %149 = vector.broadcast %148 : vector<8x1xf32> to vector<8x8xf32>
    %150 = arith.mulf %145, %149 : vector<8x8xf32>
    %cst_67 = arith.constant dense<0.000000e+00> : vector<8x8xf32>
    %151 = tpu.matmul %150, %137, %cst_67 {dimension_numbers = #tpu.dot_dimension_numbers<[1], [0], [0], [1], [0, 0, 1, 1], [], []>} : vector<8x8xf32>, vector<8x8xf32>, vector<8x8xf32> -> vector<8x8xf32>
    %152 = vector.extract_strided_slice %2 {offsets = [16, 0], sizes = [8, 32], strides = [1, 1]} : vector<32x32xf32> to vector<8x32xf32>
    %cst_68 = arith.constant dense<0.000000e+00> : vector<8x32xf32>
    %153 = tpu.matmul %151, %152, %cst_68 {dimension_numbers = #tpu.dot_dimension_numbers<[1], [0], [0], [1], [0, 0, 1, 1], [], []>} : vector<8x8xf32>, vector<8x32xf32>, vector<8x32xf32> -> vector<8x32xf32>
    %154 = arith.addf %134, %153 : vector<8x32xf32>
    %155 = vector.extract_strided_slice %15 {offsets = [8, 24], sizes = [8, 8], strides = [1, 1]} : vector<16x96xf32> to vector<8x8xf32>
    %156 = vector.extract_strided_slice %15 {offsets = [8, 56], sizes = [8, 8], strides = [1, 1]} : vector<16x96xf32> to vector<8x8xf32>
    %157 = vector.extract_strided_slice %15 {offsets = [8, 88], sizes = [8, 8], strides = [1, 1]} : vector<16x96xf32> to vector<8x8xf32>
    %cst_69 = arith.constant dense<0.000000e+00> : vector<8x8xf32>
    %158 = tpu.matmul %155, %156, %cst_69 {dimension_numbers = #tpu.dot_dimension_numbers<[1], [1], [0], [0], [0, 0, 1, 0], [], []>} : vector<8x8xf32>, vector<8x8xf32>, vector<8x8xf32> -> vector<8x8xf32>
    %cst_70 = arith.constant 0.353553385 : f32
    %159 = vector.broadcast %cst_70 : f32 to vector<8x8xf32>
    %160 = arith.mulf %158, %159 : vector<8x8xf32>
    %cst_71 = arith.constant dense<0xFF800000> : vector<8xf32>
    %161 = vector.multi_reduction <maximumf>, %160, %cst_71 [1] : vector<8x8xf32> to vector<8xf32>
    %162 = vector.shape_cast %161 : vector<8xf32> to vector<8x1xf32>
    %163 = vector.broadcast %162 : vector<8x1xf32> to vector<8x8xf32>
    %164 = arith.subf %160, %163 : vector<8x8xf32>
    %165 = math.exp %164 : vector<8x8xf32>
    %cst_72 = arith.constant dense<0.000000e+00> : vector<8xf32>
    %166 = vector.multi_reduction <add>, %165, %cst_72 [1] : vector<8x8xf32> to vector<8xf32>
    %167 = vector.shape_cast %166 : vector<8xf32> to vector<8x1xf32>
    %168 = tpu.reciprocal %167 {approx = true} : vector<8x1xf32> -> vector<8x1xf32>
    %169 = vector.broadcast %168 : vector<8x1xf32> to vector<8x8xf32>
    %170 = arith.mulf %165, %169 : vector<8x8xf32>
    %cst_73 = arith.constant dense<0.000000e+00> : vector<8x8xf32>
    %171 = tpu.matmul %170, %157, %cst_73 {dimension_numbers = #tpu.dot_dimension_numbers<[1], [0], [0], [1], [0, 0, 1, 1], [], []>} : vector<8x8xf32>, vector<8x8xf32>, vector<8x8xf32> -> vector<8x8xf32>
    %172 = vector.extract_strided_slice %2 {offsets = [24, 0], sizes = [8, 32], strides = [1, 1]} : vector<32x32xf32> to vector<8x32xf32>
    %cst_74 = arith.constant dense<0.000000e+00> : vector<8x32xf32>
    %173 = tpu.matmul %171, %172, %cst_74 {dimension_numbers = #tpu.dot_dimension_numbers<[1], [0], [0], [1], [0, 0, 1, 1], [], []>} : vector<8x8xf32>, vector<8x32xf32>, vector<8x32xf32> -> vector<8x32xf32>
    %174 = arith.addf %154, %173 : vector<8x32xf32>
    %c8 = arith.constant 8 : index
    %c0_75 = arith.constant 0 : index
    %175 = vector.load %arg15[%c8, %c0_75] : memref<16x32xf32, #tpu.memory_space<vmem>>, vector<8x32xf32>
    tpu.vector_store %arg15[%c8, %c0_75], %174 {strides = array<i32>} : memref<16x32xf32, #tpu.memory_space<vmem>>, vector<8x32xf32>,
    %c0_76 = arith.constant 0 : index
    %c0_77 = arith.constant 0 : index
    %176 = vector.load %arg15[%c0_76, %c0_77] : memref<16x32xf32, #tpu.memory_space<vmem>>, vector<16x32xf32>
    %177 = vector.broadcast %3 : vector<1x32xf32> to vector<16x32xf32>
    %178 = arith.addf %176, %177 : vector<16x32xf32>
    %179 = arith.addf %12, %178 : vector<16x32xf32>
    %cst_78 = arith.constant dense<0.000000e+00> : vector<16xf32>
    %180 = vector.multi_reduction <add>, %179, %cst_78 [1] : vector<16x32xf32> to vector<16xf32>
    %181 = vector.shape_cast %180 : vector<16xf32> to vector<16x1xf32>
    %cst_79 = arith.constant 3.200000e+01 : f32
    %182 = vector.broadcast %cst_79 : f32 to vector<16x1xf32>
    %183 = arith.divf %181, %182 : vector<16x1xf32>
    %184 = vector.broadcast %183 : vector<16x1xf32> to vector<16x32xf32>
    %185 = arith.subf %179, %184 : vector<16x32xf32>
    %186 = arith.mulf %185, %185 : vector<16x32xf32>
    %cst_80 = arith.constant dense<0.000000e+00> : vector<16xf32>
    %187 = vector.multi_reduction <add>, %186, %cst_80 [1] : vector<16x32xf32> to vector<16xf32>
    %188 = vector.shape_cast %187 : vector<16xf32> to vector<16x1xf32>
    %cst_81 = arith.constant 3.200000e+01 : f32
    %189 = vector.broadcast %cst_81 : f32 to vector<16x1xf32>
    %190 = arith.divf %188, %189 : vector<16x1xf32>
    %191 = vector.broadcast %183 : vector<16x1xf32> to vector<16x32xf32>
    %192 = arith.subf %179, %191 : vector<16x32xf32>
    %cst_82 = arith.constant 9.99999974E-6 : f32
    %193 = vector.broadcast %cst_82 : f32 to vector<16x1xf32>
    %194 = arith.addf %190, %193 : vector<16x1xf32>
    %195 = math.rsqrt %194 : vector<16x1xf32>
    %196 = vector.broadcast %195 : vector<16x1xf32> to vector<16x32xf32>
    %197 = arith.mulf %192, %196 : vector<16x32xf32>
    %198 = vector.broadcast %4 : vector<1x32xf32> to vector<16x32xf32>
    %199 = arith.mulf %197, %198 : vector<16x32xf32>
    %200 = vector.broadcast %5 : vector<1x32xf32> to vector<16x32xf32>
    %201 = arith.addf %199, %200 : vector<16x32xf32>
    %cst_83 = arith.constant dense<0.000000e+00> : vector<16x64xf32>
    %202 = tpu.matmul %201, %6, %cst_83 {dimension_numbers = #tpu.dot_dimension_numbers<[1], [0], [0], [1], [0, 0, 1, 1], [], []>} : vector<16x32xf32>, vector<32x64xf32>, vector<16x64xf32> -> vector<16x64xf32>
    %203 = vector.broadcast %7 : vector<1x64xf32> to vector<16x64xf32>
    %204 = arith.addf %202, %203 : vector<16x64xf32>
    %cst_84 = arith.constant 0.000000e+00 : f32
    %205 = vector.broadcast %cst_84 : f32 to vector<16x64xf32>
    %206 = arith.maximumf %204, %205 : vector<16x64xf32>
    %cst_85 = arith.constant dense<0.000000e+00> : vector<16x32xf32>
    %207 = tpu.matmul %206, %8, %cst_85 {dimension_numbers = #tpu.dot_dimension_numbers<[1], [0], [0], [1], [0, 0, 1, 1], [], []>} : vector<16x64xf32>, vector<64x32xf32>, vector<16x32xf32> -> vector<16x32xf32>
    %208 = vector.broadcast %9 : vector<1x32xf32> to vector<16x32xf32>
    %209 = arith.addf %207, %208 : vector<16x32xf32>
    %210 = arith.addf %201, %209 : vector<16x32xf32>
    %cst_86 = arith.constant dense<0.000000e+00> : vector<16xf32>
    %211 = vector.multi_reduction <add>, %210, %cst_86 [1] : vector<16x32xf32> to vector<16xf32>
    %212 = vector.shape_cast %211 : vector<16xf32> to vector<16x1xf32>
    %cst_87 = arith.constant 3.200000e+01 : f32
    %213 = vector.broadcast %cst_87 : f32 to vector<16x1xf32>
    %214 = arith.divf %212, %213 : vector<16x1xf32>
    %215 = vector.broadcast %214 : vector<16x1xf32> to vector<16x32xf32>
    %216 = arith.subf %210, %215 : vector<16x32xf32>
    %217 = arith.mulf %216, %216 : vector<16x32xf32>
    %cst_88 = arith.constant dense<0.000000e+00> : vector<16xf32>
    %218 = vector.multi_reduction <add>, %217, %cst_88 [1] : vector<16x32xf32> to vector<16xf32>
    %219 = vector.shape_cast %218 : vector<16xf32> to vector<16x1xf32>
    %cst_89 = arith.constant 3.200000e+01 : f32
    %220 = vector.broadcast %cst_89 : f32 to vector<16x1xf32>
    %221 = arith.divf %219, %220 : vector<16x1xf32>
    %222 = vector.broadcast %214 : vector<16x1xf32> to vector<16x32xf32>
    %223 = arith.subf %210, %222 : vector<16x32xf32>
    %cst_90 = arith.constant 9.99999974E-6 : f32
    %224 = vector.broadcast %cst_90 : f32 to vector<16x1xf32>
    %225 = arith.addf %221, %224 : vector<16x1xf32>
    %226 = math.rsqrt %225 : vector<16x1xf32>
    %227 = vector.broadcast %226 : vector<16x1xf32> to vector<16x32xf32>
    %228 = arith.mulf %223, %227 : vector<16x32xf32>
    %229 = vector.broadcast %10 : vector<1x32xf32> to vector<16x32xf32>
    %230 = arith.mulf %228, %229 : vector<16x32xf32>
    %231 = vector.broadcast %11 : vector<1x32xf32> to vector<16x32xf32>
    %232 = arith.addf %230, %231 : vector<16x32xf32>
    %c0_91 = arith.constant 0 : index
    %c0_92 = arith.constant 0 : index
    %233 = vector.load %arg14[%c0_91, %c0_92] : memref<16x32xf32, #tpu.memory_space<vmem>>, vector<16x32xf32>
    tpu.vector_store %arg14[%c0_91, %c0_92], %232 {strides = array<i32>} : memref<16x32xf32, #tpu.memory_space<vmem>>, vector<16x32xf32>,
    return
  }
  func.func @transform_0(%arg0: i32) -> (i32, i32) {
    %c0_i32 = arith.constant 0 : i32
    %c0_i32_0 = arith.constant 0 : i32
    return %arg0, %c0_i32 : i32, i32
  }
  func.func @transform_1(%arg0: i32) -> (i32, i32) {
    %c0_i32 = arith.constant 0 : i32
    %c0_i32_0 = arith.constant 0 : i32
    %c0_i32_1 = arith.constant 0 : i32
    return %c0_i32, %c0_i32_0 : i32, i32
  }
  func.func @transform_2(%arg0: i32) -> (i32, i32) {
    %c0_i32 = arith.constant 0 : i32
    %c0_i32_0 = arith.constant 0 : i32
    %c0_i32_1 = arith.constant 0 : i32
    return %c0_i32, %c0_i32_0 : i32, i32
  }
  func.func @transform_3(%arg0: i32) -> (i32, i32) {
    %c0_i32 = arith.constant 0 : i32
    %c0_i32_0 = arith.constant 0 : i32
    %c0_i32_1 = arith.constant 0 : i32
    return %c0_i32, %c0_i32_0 : i32, i32
  }
  func.func @transform_4(%arg0: i32) -> (i32, i32) {
    %c0_i32 = arith.constant 0 : i32
    %c0_i32_0 = arith.constant 0 : i32
    %c0_i32_1 = arith.constant 0 : i32
    return %c0_i32, %c0_i32_0 : i32, i32
  }
  func.func @transform_5(%arg0: i32) -> (i32, i32) {
    %c0_i32 = arith.constant 0 : i32
    %c0_i32_0 = arith.constant 0 : i32
    %c0_i32_1 = arith.constant 0 : i32
    return %c0_i32, %c0_i32_0 : i32, i32
  }
  func.func @transform_6(%arg0: i32) -> (i32, i32) {
    %c0_i32 = arith.constant 0 : i32
    %c0_i32_0 = arith.constant 0 : i32
    %c0_i32_1 = arith.constant 0 : i32
    return %c0_i32, %c0_i32_0 : i32, i32
  }
  func.func @transform_7(%arg0: i32) -> (i32, i32) {
    %c0_i32 = arith.constant 0 : i32
    %c0_i32_0 = arith.constant 0 : i32
    %c0_i32_1 = arith.constant 0 : i32
    return %c0_i32, %c0_i32_0 : i32, i32
  }
  func.func @transform_8(%arg0: i32) -> (i32, i32) {
    %c0_i32 = arith.constant 0 : i32
    %c0_i32_0 = arith.constant 0 : i32
    %c0_i32_1 = arith.constant 0 : i32
    return %c0_i32, %c0_i32_0 : i32, i32
  }
  func.func @transform_9(%arg0: i32) -> (i32, i32) {
    %c0_i32 = arith.constant 0 : i32
    %c0_i32_0 = arith.constant 0 : i32
    %c0_i32_1 = arith.constant 0 : i32
    return %c0_i32, %c0_i32_0 : i32, i32
  }
  func.func @transform_10(%arg0: i32) -> (i32, i32) {
    %c0_i32 = arith.constant 0 : i32
    %c0_i32_0 = arith.constant 0 : i32
    %c0_i32_1 = arith.constant 0 : i32
    return %c0_i32, %c0_i32_0 : i32, i32
  }
  func.func @transform_11(%arg0: i32) -> (i32, i32) {
    %c0_i32 = arith.constant 0 : i32
    %c0_i32_0 = arith.constant 0 : i32
    %c0_i32_1 = arith.constant 0 : i32
    return %c0_i32, %c0_i32_0 : i32, i32
  }
  func.func @transform_12(%arg0: i32) -> (i32, i32) {
    %c0_i32 = arith.constant 0 : i32
    %c0_i32_0 = arith.constant 0 : i32
    %c0_i32_1 = arith.constant 0 : i32
    return %c0_i32, %c0_i32_0 : i32, i32
  }
  func.func @transform_13(%arg0: i32) -> (i32, i32) {
    %c0_i32 = arith.constant 0 : i32
    %c0_i32_0 = arith.constant 0 : i32
    return %arg0, %c0_i32 : i32, i32
  }
}

module attributes {stable_mosaic.version = 11 : i64} {
  func.func @_skip_encoder_layer_kernel(%arg0: i32, %arg1: memref<16x32xf32, #tpu.memory_space<vmem>>, %arg2: memref<16x32xf32, #tpu.memory_space<vmem>>, %arg3: memref<32x32xf32, #tpu.memory_space<vmem>>, %arg4: memref<32x32xf32, #tpu.memory_space<vmem>>, %arg5: memref<1x32xf32, #tpu.memory_space<vmem>>, %arg6: memref<32x96xf32, #tpu.memory_space<vmem>>, %arg7: memref<1x96xf32, #tpu.memory_space<vmem>>, %arg8: memref<32x32xf32, #tpu.memory_space<vmem>>, %arg9: memref<1x32xf32, #tpu.memory_space<vmem>>, %arg10: memref<1x32xf32, #tpu.memory_space<vmem>>, %arg11: memref<1x32xf32, #tpu.memory_space<vmem>>, %arg12: memref<32x64xf32, #tpu.memory_space<vmem>>, %arg13: memref<1x64xf32, #tpu.memory_space<vmem>>, %arg14: memref<64x32xf32, #tpu.memory_space<vmem>>, %arg15: memref<1x32xf32, #tpu.memory_space<vmem>>, %arg16: memref<1x32xf32, #tpu.memory_space<vmem>>, %arg17: memref<1x32xf32, #tpu.memory_space<vmem>>, %arg18: memref<1x32xf32, #tpu.memory_space<vmem>>, %arg19: memref<1x32xf32, #tpu.memory_space<vmem>>, %arg20: memref<16x32xf32, #tpu.memory_space<vmem>>, %arg21: memref<16x32xf32, #tpu.memory_space<vmem>>) attributes {dimension_semantics = [#tpu.dimension_semantics<parallel>], iteration_bounds = array<i64: 1>, scalar_prefetch = 0 : i64, scratch_operands = 1 : i64, tpu.core_type = #tpu.core_type<tc>, window_params = [{transform_indices = @transform_0, window_bounds = array<i64: 16, 32>}, {transform_indices = @transform_1, window_bounds = array<i64: 16, 32>}, {pipeline_mode = #tpu.pipeline_mode<synchronous>, transform_indices = @transform_2, window_bounds = array<i64: 32, 32>}, {pipeline_mode = #tpu.pipeline_mode<synchronous>, transform_indices = @transform_3, window_bounds = array<i64: 32, 32>}, {pipeline_mode = #tpu.pipeline_mode<synchronous>, transform_indices = @transform_4, window_bounds = array<i64: 1, 32>}, {pipeline_mode = #tpu.pipeline_mode<synchronous>, transform_indices = @transform_5, window_bounds = array<i64: 32, 96>}, {pipeline_mode = #tpu.pipeline_mode<synchronous>, transform_indices = @transform_6, window_bounds = array<i64: 1, 96>}, {pipeline_mode = #tpu.pipeline_mode<synchronous>, transform_indices = @transform_7, window_bounds = array<i64: 32, 32>}, {pipeline_mode = #tpu.pipeline_mode<synchronous>, transform_indices = @transform_8, window_bounds = array<i64: 1, 32>}, {pipeline_mode = #tpu.pipeline_mode<synchronous>, transform_indices = @transform_9, window_bounds = array<i64: 1, 32>}, {pipeline_mode = #tpu.pipeline_mode<synchronous>, transform_indices = @transform_10, window_bounds = array<i64: 1, 32>}, {pipeline_mode = #tpu.pipeline_mode<synchronous>, transform_indices = @transform_11, window_bounds = array<i64: 32, 64>}, {pipeline_mode = #tpu.pipeline_mode<synchronous>, transform_indices = @transform_12, window_bounds = array<i64: 1, 64>}, {pipeline_mode = #tpu.pipeline_mode<synchronous>, transform_indices = @transform_13, window_bounds = array<i64: 64, 32>}, {pipeline_mode = #tpu.pipeline_mode<synchronous>, transform_indices = @transform_14, window_bounds = array<i64: 1, 32>}, {pipeline_mode = #tpu.pipeline_mode<synchronous>, transform_indices = @transform_15, window_bounds = array<i64: 1, 32>}, {pipeline_mode = #tpu.pipeline_mode<synchronous>, transform_indices = @transform_16, window_bounds = array<i64: 1, 32>}, {pipeline_mode = #tpu.pipeline_mode<synchronous>, transform_indices = @transform_17, window_bounds = array<i64: 1, 32>}, {pipeline_mode = #tpu.pipeline_mode<synchronous>, transform_indices = @transform_18, window_bounds = array<i64: 1, 32>}, {transform_indices = @transform_19, window_bounds = array<i64: 16, 32>}]} {
    %c0 = arith.constant 0 : index
    %c0_0 = arith.constant 0 : index
    %0 = vector.load %arg6[%c0, %c0_0] : memref<32x96xf32, #tpu.memory_space<vmem>>, vector<32x96xf32>
    %c0_1 = arith.constant 0 : index
    %c0_2 = arith.constant 0 : index
    %1 = vector.load %arg7[%c0_1, %c0_2] : memref<1x96xf32, #tpu.memory_space<vmem>>, vector<1x96xf32>
    %c0_3 = arith.constant 0 : index
    %c0_4 = arith.constant 0 : index
    %2 = vector.load %arg8[%c0_3, %c0_4] : memref<32x32xf32, #tpu.memory_space<vmem>>, vector<32x32xf32>
    %c0_5 = arith.constant 0 : index
    %c0_6 = arith.constant 0 : index
    %3 = vector.load %arg9[%c0_5, %c0_6] : memref<1x32xf32, #tpu.memory_space<vmem>>, vector<1x32xf32>
    %c0_7 = arith.constant 0 : index
    %c0_8 = arith.constant 0 : index
    %4 = vector.load %arg10[%c0_7, %c0_8] : memref<1x32xf32, #tpu.memory_space<vmem>>, vector<1x32xf32>
    %c0_9 = arith.constant 0 : index
    %c0_10 = arith.constant 0 : index
    %5 = vector.load %arg11[%c0_9, %c0_10] : memref<1x32xf32, #tpu.memory_space<vmem>>, vector<1x32xf32>
    %c0_11 = arith.constant 0 : index
    %c0_12 = arith.constant 0 : index
    %6 = vector.load %arg12[%c0_11, %c0_12] : memref<32x64xf32, #tpu.memory_space<vmem>>, vector<32x64xf32>
    %c0_13 = arith.constant 0 : index
    %c0_14 = arith.constant 0 : index
    %7 = vector.load %arg13[%c0_13, %c0_14] : memref<1x64xf32, #tpu.memory_space<vmem>>, vector<1x64xf32>
    %c0_15 = arith.constant 0 : index
    %c0_16 = arith.constant 0 : index
    %8 = vector.load %arg14[%c0_15, %c0_16] : memref<64x32xf32, #tpu.memory_space<vmem>>, vector<64x32xf32>
    %c0_17 = arith.constant 0 : index
    %c0_18 = arith.constant 0 : index
    %9 = vector.load %arg15[%c0_17, %c0_18] : memref<1x32xf32, #tpu.memory_space<vmem>>, vector<1x32xf32>
    %c0_19 = arith.constant 0 : index
    %c0_20 = arith.constant 0 : index
    %10 = vector.load %arg16[%c0_19, %c0_20] : memref<1x32xf32, #tpu.memory_space<vmem>>, vector<1x32xf32>
    %c0_21 = arith.constant 0 : index
    %c0_22 = arith.constant 0 : index
    %11 = vector.load %arg17[%c0_21, %c0_22] : memref<1x32xf32, #tpu.memory_space<vmem>>, vector<1x32xf32>
    %c0_23 = arith.constant 0 : index
    %c0_24 = arith.constant 0 : index
    %12 = vector.load %arg18[%c0_23, %c0_24] : memref<1x32xf32, #tpu.memory_space<vmem>>, vector<1x32xf32>
    %c0_25 = arith.constant 0 : index
    %c0_26 = arith.constant 0 : index
    %13 = vector.load %arg19[%c0_25, %c0_26] : memref<1x32xf32, #tpu.memory_space<vmem>>, vector<1x32xf32>
    %c0_27 = arith.constant 0 : index
    %c0_28 = arith.constant 0 : index
    %14 = vector.load %arg1[%c0_27, %c0_28] : memref<16x32xf32, #tpu.memory_space<vmem>>, vector<16x32xf32>
    %c0_29 = arith.constant 0 : index
    %c0_30 = arith.constant 0 : index
    %15 = vector.load %arg3[%c0_29, %c0_30] : memref<32x32xf32, #tpu.memory_space<vmem>>, vector<32x32xf32>
    %cst = arith.constant dense<0.000000e+00> : vector<16x32xf32>
    %16 = tpu.matmul %14, %15, %cst {dimension_numbers = #tpu.dot_dimension_numbers<[1], [0], [0], [1], [0, 0, 1, 1], [], []>} : vector<16x32xf32>, vector<32x32xf32>, vector<16x32xf32> -> vector<16x32xf32>
    %c0_31 = arith.constant 0 : index
    %c0_32 = arith.constant 0 : index
    %17 = vector.load %arg2[%c0_31, %c0_32] : memref<16x32xf32, #tpu.memory_space<vmem>>, vector<16x32xf32>
    %c0_33 = arith.constant 0 : index
    %c0_34 = arith.constant 0 : index
    %18 = vector.load %arg4[%c0_33, %c0_34] : memref<32x32xf32, #tpu.memory_space<vmem>>, vector<32x32xf32>
    %cst_35 = arith.constant dense<0.000000e+00> : vector<16x32xf32>
    %19 = tpu.matmul %17, %18, %cst_35 {dimension_numbers = #tpu.dot_dimension_numbers<[1], [0], [0], [1], [0, 0, 1, 1], [], []>} : vector<16x32xf32>, vector<32x32xf32>, vector<16x32xf32> -> vector<16x32xf32>
    %20 = arith.addf %16, %19 : vector<16x32xf32>
    %c0_36 = arith.constant 0 : index
    %c0_37 = arith.constant 0 : index
    %21 = vector.load %arg5[%c0_36, %c0_37] : memref<1x32xf32, #tpu.memory_space<vmem>>, vector<1x32xf32>
    %22 = vector.broadcast %21 : vector<1x32xf32> to vector<16x32xf32>
    %23 = arith.addf %20, %22 : vector<16x32xf32>
    %cst_38 = arith.constant dense<0.000000e+00> : vector<16x96xf32>
    %24 = tpu.matmul %23, %0, %cst_38 {dimension_numbers = #tpu.dot_dimension_numbers<[1], [0], [0], [1], [0, 0, 1, 1], [], []>} : vector<16x32xf32>, vector<32x96xf32>, vector<16x96xf32> -> vector<16x96xf32>
    %25 = vector.broadcast %1 : vector<1x96xf32> to vector<16x96xf32>
    %26 = arith.addf %24, %25 : vector<16x96xf32>
    %27 = vector.extract_strided_slice %26 {offsets = [0, 0], sizes = [8, 8], strides = [1, 1]} : vector<16x96xf32> to vector<8x8xf32>
    %28 = vector.extract_strided_slice %26 {offsets = [0, 32], sizes = [8, 8], strides = [1, 1]} : vector<16x96xf32> to vector<8x8xf32>
    %29 = vector.extract_strided_slice %26 {offsets = [0, 64], sizes = [8, 8], strides = [1, 1]} : vector<16x96xf32> to vector<8x8xf32>
    %cst_39 = arith.constant dense<0.000000e+00> : vector<8x8xf32>
    %30 = tpu.matmul %27, %28, %cst_39 {dimension_numbers = #tpu.dot_dimension_numbers<[1], [1], [0], [0], [0, 0, 1, 0], [], []>} : vector<8x8xf32>, vector<8x8xf32>, vector<8x8xf32> -> vector<8x8xf32>
    %cst_40 = arith.constant 0.353553385 : f32
    %31 = vector.broadcast %cst_40 : f32 to vector<8x8xf32>
    %32 = arith.mulf %30, %31 : vector<8x8xf32>
    %cst_41 = arith.constant dense<0xFF800000> : vector<8xf32>
    %33 = vector.multi_reduction <maximumf>, %32, %cst_41 [1] : vector<8x8xf32> to vector<8xf32>
    %34 = vector.shape_cast %33 : vector<8xf32> to vector<8x1xf32>
    %35 = vector.broadcast %34 : vector<8x1xf32> to vector<8x8xf32>
    %36 = arith.subf %32, %35 : vector<8x8xf32>
    %37 = math.exp %36 : vector<8x8xf32>
    %cst_42 = arith.constant dense<0.000000e+00> : vector<8xf32>
    %38 = vector.multi_reduction <add>, %37, %cst_42 [1] : vector<8x8xf32> to vector<8xf32>
    %39 = vector.shape_cast %38 : vector<8xf32> to vector<8x1xf32>
    %40 = tpu.reciprocal %39 {approx = true} : vector<8x1xf32> -> vector<8x1xf32>
    %41 = vector.broadcast %40 : vector<8x1xf32> to vector<8x8xf32>
    %42 = arith.mulf %37, %41 : vector<8x8xf32>
    %cst_43 = arith.constant dense<0.000000e+00> : vector<8x8xf32>
    %43 = tpu.matmul %42, %29, %cst_43 {dimension_numbers = #tpu.dot_dimension_numbers<[1], [0], [0], [1], [0, 0, 1, 1], [], []>} : vector<8x8xf32>, vector<8x8xf32>, vector<8x8xf32> -> vector<8x8xf32>
    %44 = vector.extract_strided_slice %2 {offsets = [0, 0], sizes = [8, 32], strides = [1, 1]} : vector<32x32xf32> to vector<8x32xf32>
    %cst_44 = arith.constant dense<0.000000e+00> : vector<8x32xf32>
    %45 = tpu.matmul %43, %44, %cst_44 {dimension_numbers = #tpu.dot_dimension_numbers<[1], [0], [0], [1], [0, 0, 1, 1], [], []>} : vector<8x8xf32>, vector<8x32xf32>, vector<8x32xf32> -> vector<8x32xf32>
    %46 = vector.extract_strided_slice %26 {offsets = [0, 8], sizes = [8, 8], strides = [1, 1]} : vector<16x96xf32> to vector<8x8xf32>
    %47 = vector.extract_strided_slice %26 {offsets = [0, 40], sizes = [8, 8], strides = [1, 1]} : vector<16x96xf32> to vector<8x8xf32>
    %48 = vector.extract_strided_slice %26 {offsets = [0, 72], sizes = [8, 8], strides = [1, 1]} : vector<16x96xf32> to vector<8x8xf32>
    %cst_45 = arith.constant dense<0.000000e+00> : vector<8x8xf32>
    %49 = tpu.matmul %46, %47, %cst_45 {dimension_numbers = #tpu.dot_dimension_numbers<[1], [1], [0], [0], [0, 0, 1, 0], [], []>} : vector<8x8xf32>, vector<8x8xf32>, vector<8x8xf32> -> vector<8x8xf32>
    %cst_46 = arith.constant 0.353553385 : f32
    %50 = vector.broadcast %cst_46 : f32 to vector<8x8xf32>
    %51 = arith.mulf %49, %50 : vector<8x8xf32>
    %cst_47 = arith.constant dense<0xFF800000> : vector<8xf32>
    %52 = vector.multi_reduction <maximumf>, %51, %cst_47 [1] : vector<8x8xf32> to vector<8xf32>
    %53 = vector.shape_cast %52 : vector<8xf32> to vector<8x1xf32>
    %54 = vector.broadcast %53 : vector<8x1xf32> to vector<8x8xf32>
    %55 = arith.subf %51, %54 : vector<8x8xf32>
    %56 = math.exp %55 : vector<8x8xf32>
    %cst_48 = arith.constant dense<0.000000e+00> : vector<8xf32>
    %57 = vector.multi_reduction <add>, %56, %cst_48 [1] : vector<8x8xf32> to vector<8xf32>
    %58 = vector.shape_cast %57 : vector<8xf32> to vector<8x1xf32>
    %59 = tpu.reciprocal %58 {approx = true} : vector<8x1xf32> -> vector<8x1xf32>
    %60 = vector.broadcast %59 : vector<8x1xf32> to vector<8x8xf32>
    %61 = arith.mulf %56, %60 : vector<8x8xf32>
    %cst_49 = arith.constant dense<0.000000e+00> : vector<8x8xf32>
    %62 = tpu.matmul %61, %48, %cst_49 {dimension_numbers = #tpu.dot_dimension_numbers<[1], [0], [0], [1], [0, 0, 1, 1], [], []>} : vector<8x8xf32>, vector<8x8xf32>, vector<8x8xf32> -> vector<8x8xf32>
    %63 = vector.extract_strided_slice %2 {offsets = [8, 0], sizes = [8, 32], strides = [1, 1]} : vector<32x32xf32> to vector<8x32xf32>
    %cst_50 = arith.constant dense<0.000000e+00> : vector<8x32xf32>
    %64 = tpu.matmul %62, %63, %cst_50 {dimension_numbers = #tpu.dot_dimension_numbers<[1], [0], [0], [1], [0, 0, 1, 1], [], []>} : vector<8x8xf32>, vector<8x32xf32>, vector<8x32xf32> -> vector<8x32xf32>
    %65 = arith.addf %45, %64 : vector<8x32xf32>
    %66 = vector.extract_strided_slice %26 {offsets = [0, 16], sizes = [8, 8], strides = [1, 1]} : vector<16x96xf32> to vector<8x8xf32>
    %67 = vector.extract_strided_slice %26 {offsets = [0, 48], sizes = [8, 8], strides = [1, 1]} : vector<16x96xf32> to vector<8x8xf32>
    %68 = vector.extract_strided_slice %26 {offsets = [0, 80], sizes = [8, 8], strides = [1, 1]} : vector<16x96xf32> to vector<8x8xf32>
    %cst_51 = arith.constant dense<0.000000e+00> : vector<8x8xf32>
    %69 = tpu.matmul %66, %67, %cst_51 {dimension_numbers = #tpu.dot_dimension_numbers<[1], [1], [0], [0], [0, 0, 1, 0], [], []>} : vector<8x8xf32>, vector<8x8xf32>, vector<8x8xf32> -> vector<8x8xf32>
    %cst_52 = arith.constant 0.353553385 : f32
    %70 = vector.broadcast %cst_52 : f32 to vector<8x8xf32>
    %71 = arith.mulf %69, %70 : vector<8x8xf32>
    %cst_53 = arith.constant dense<0xFF800000> : vector<8xf32>
    %72 = vector.multi_reduction <maximumf>, %71, %cst_53 [1] : vector<8x8xf32> to vector<8xf32>
    %73 = vector.shape_cast %72 : vector<8xf32> to vector<8x1xf32>
    %74 = vector.broadcast %73 : vector<8x1xf32> to vector<8x8xf32>
    %75 = arith.subf %71, %74 : vector<8x8xf32>
    %76 = math.exp %75 : vector<8x8xf32>
    %cst_54 = arith.constant dense<0.000000e+00> : vector<8xf32>
    %77 = vector.multi_reduction <add>, %76, %cst_54 [1] : vector<8x8xf32> to vector<8xf32>
    %78 = vector.shape_cast %77 : vector<8xf32> to vector<8x1xf32>
    %79 = tpu.reciprocal %78 {approx = true} : vector<8x1xf32> -> vector<8x1xf32>
    %80 = vector.broadcast %79 : vector<8x1xf32> to vector<8x8xf32>
    %81 = arith.mulf %76, %80 : vector<8x8xf32>
    %cst_55 = arith.constant dense<0.000000e+00> : vector<8x8xf32>
    %82 = tpu.matmul %81, %68, %cst_55 {dimension_numbers = #tpu.dot_dimension_numbers<[1], [0], [0], [1], [0, 0, 1, 1], [], []>} : vector<8x8xf32>, vector<8x8xf32>, vector<8x8xf32> -> vector<8x8xf32>
    %83 = vector.extract_strided_slice %2 {offsets = [16, 0], sizes = [8, 32], strides = [1, 1]} : vector<32x32xf32> to vector<8x32xf32>
    %cst_56 = arith.constant dense<0.000000e+00> : vector<8x32xf32>
    %84 = tpu.matmul %82, %83, %cst_56 {dimension_numbers = #tpu.dot_dimension_numbers<[1], [0], [0], [1], [0, 0, 1, 1], [], []>} : vector<8x8xf32>, vector<8x32xf32>, vector<8x32xf32> -> vector<8x32xf32>
    %85 = arith.addf %65, %84 : vector<8x32xf32>
    %86 = vector.extract_strided_slice %26 {offsets = [0, 24], sizes = [8, 8], strides = [1, 1]} : vector<16x96xf32> to vector<8x8xf32>
    %87 = vector.extract_strided_slice %26 {offsets = [0, 56], sizes = [8, 8], strides = [1, 1]} : vector<16x96xf32> to vector<8x8xf32>
    %88 = vector.extract_strided_slice %26 {offsets = [0, 88], sizes = [8, 8], strides = [1, 1]} : vector<16x96xf32> to vector<8x8xf32>
    %cst_57 = arith.constant dense<0.000000e+00> : vector<8x8xf32>
    %89 = tpu.matmul %86, %87, %cst_57 {dimension_numbers = #tpu.dot_dimension_numbers<[1], [1], [0], [0], [0, 0, 1, 0], [], []>} : vector<8x8xf32>, vector<8x8xf32>, vector<8x8xf32> -> vector<8x8xf32>
    %cst_58 = arith.constant 0.353553385 : f32
    %90 = vector.broadcast %cst_58 : f32 to vector<8x8xf32>
    %91 = arith.mulf %89, %90 : vector<8x8xf32>
    %cst_59 = arith.constant dense<0xFF800000> : vector<8xf32>
    %92 = vector.multi_reduction <maximumf>, %91, %cst_59 [1] : vector<8x8xf32> to vector<8xf32>
    %93 = vector.shape_cast %92 : vector<8xf32> to vector<8x1xf32>
    %94 = vector.broadcast %93 : vector<8x1xf32> to vector<8x8xf32>
    %95 = arith.subf %91, %94 : vector<8x8xf32>
    %96 = math.exp %95 : vector<8x8xf32>
    %cst_60 = arith.constant dense<0.000000e+00> : vector<8xf32>
    %97 = vector.multi_reduction <add>, %96, %cst_60 [1] : vector<8x8xf32> to vector<8xf32>
    %98 = vector.shape_cast %97 : vector<8xf32> to vector<8x1xf32>
    %99 = tpu.reciprocal %98 {approx = true} : vector<8x1xf32> -> vector<8x1xf32>
    %100 = vector.broadcast %99 : vector<8x1xf32> to vector<8x8xf32>
    %101 = arith.mulf %96, %100 : vector<8x8xf32>
    %cst_61 = arith.constant dense<0.000000e+00> : vector<8x8xf32>
    %102 = tpu.matmul %101, %88, %cst_61 {dimension_numbers = #tpu.dot_dimension_numbers<[1], [0], [0], [1], [0, 0, 1, 1], [], []>} : vector<8x8xf32>, vector<8x8xf32>, vector<8x8xf32> -> vector<8x8xf32>
    %103 = vector.extract_strided_slice %2 {offsets = [24, 0], sizes = [8, 32], strides = [1, 1]} : vector<32x32xf32> to vector<8x32xf32>
    %cst_62 = arith.constant dense<0.000000e+00> : vector<8x32xf32>
    %104 = tpu.matmul %102, %103, %cst_62 {dimension_numbers = #tpu.dot_dimension_numbers<[1], [0], [0], [1], [0, 0, 1, 1], [], []>} : vector<8x8xf32>, vector<8x32xf32>, vector<8x32xf32> -> vector<8x32xf32>
    %105 = arith.addf %85, %104 : vector<8x32xf32>
    %c0_63 = arith.constant 0 : index
    %c0_64 = arith.constant 0 : index
    %106 = vector.load %arg21[%c0_63, %c0_64] : memref<16x32xf32, #tpu.memory_space<vmem>>, vector<8x32xf32>
    tpu.vector_store %arg21[%c0_63, %c0_64], %105 {strides = array<i32>} : memref<16x32xf32, #tpu.memory_space<vmem>>, vector<8x32xf32>,
    %107 = vector.extract_strided_slice %26 {offsets = [8, 0], sizes = [8, 8], strides = [1, 1]} : vector<16x96xf32> to vector<8x8xf32>
    %108 = vector.extract_strided_slice %26 {offsets = [8, 32], sizes = [8, 8], strides = [1, 1]} : vector<16x96xf32> to vector<8x8xf32>
    %109 = vector.extract_strided_slice %26 {offsets = [8, 64], sizes = [8, 8], strides = [1, 1]} : vector<16x96xf32> to vector<8x8xf32>
    %cst_65 = arith.constant dense<0.000000e+00> : vector<8x8xf32>
    %110 = tpu.matmul %107, %108, %cst_65 {dimension_numbers = #tpu.dot_dimension_numbers<[1], [1], [0], [0], [0, 0, 1, 0], [], []>} : vector<8x8xf32>, vector<8x8xf32>, vector<8x8xf32> -> vector<8x8xf32>
    %cst_66 = arith.constant 0.353553385 : f32
    %111 = vector.broadcast %cst_66 : f32 to vector<8x8xf32>
    %112 = arith.mulf %110, %111 : vector<8x8xf32>
    %cst_67 = arith.constant dense<0xFF800000> : vector<8xf32>
    %113 = vector.multi_reduction <maximumf>, %112, %cst_67 [1] : vector<8x8xf32> to vector<8xf32>
    %114 = vector.shape_cast %113 : vector<8xf32> to vector<8x1xf32>
    %115 = vector.broadcast %114 : vector<8x1xf32> to vector<8x8xf32>
    %116 = arith.subf %112, %115 : vector<8x8xf32>
    %117 = math.exp %116 : vector<8x8xf32>
    %cst_68 = arith.constant dense<0.000000e+00> : vector<8xf32>
    %118 = vector.multi_reduction <add>, %117, %cst_68 [1] : vector<8x8xf32> to vector<8xf32>
    %119 = vector.shape_cast %118 : vector<8xf32> to vector<8x1xf32>
    %120 = tpu.reciprocal %119 {approx = true} : vector<8x1xf32> -> vector<8x1xf32>
    %121 = vector.broadcast %120 : vector<8x1xf32> to vector<8x8xf32>
    %122 = arith.mulf %117, %121 : vector<8x8xf32>
    %cst_69 = arith.constant dense<0.000000e+00> : vector<8x8xf32>
    %123 = tpu.matmul %122, %109, %cst_69 {dimension_numbers = #tpu.dot_dimension_numbers<[1], [0], [0], [1], [0, 0, 1, 1], [], []>} : vector<8x8xf32>, vector<8x8xf32>, vector<8x8xf32> -> vector<8x8xf32>
    %124 = vector.extract_strided_slice %2 {offsets = [0, 0], sizes = [8, 32], strides = [1, 1]} : vector<32x32xf32> to vector<8x32xf32>
    %cst_70 = arith.constant dense<0.000000e+00> : vector<8x32xf32>
    %125 = tpu.matmul %123, %124, %cst_70 {dimension_numbers = #tpu.dot_dimension_numbers<[1], [0], [0], [1], [0, 0, 1, 1], [], []>} : vector<8x8xf32>, vector<8x32xf32>, vector<8x32xf32> -> vector<8x32xf32>
    %126 = vector.extract_strided_slice %26 {offsets = [8, 8], sizes = [8, 8], strides = [1, 1]} : vector<16x96xf32> to vector<8x8xf32>
    %127 = vector.extract_strided_slice %26 {offsets = [8, 40], sizes = [8, 8], strides = [1, 1]} : vector<16x96xf32> to vector<8x8xf32>
    %128 = vector.extract_strided_slice %26 {offsets = [8, 72], sizes = [8, 8], strides = [1, 1]} : vector<16x96xf32> to vector<8x8xf32>
    %cst_71 = arith.constant dense<0.000000e+00> : vector<8x8xf32>
    %129 = tpu.matmul %126, %127, %cst_71 {dimension_numbers = #tpu.dot_dimension_numbers<[1], [1], [0], [0], [0, 0, 1, 0], [], []>} : vector<8x8xf32>, vector<8x8xf32>, vector<8x8xf32> -> vector<8x8xf32>
    %cst_72 = arith.constant 0.353553385 : f32
    %130 = vector.broadcast %cst_72 : f32 to vector<8x8xf32>
    %131 = arith.mulf %129, %130 : vector<8x8xf32>
    %cst_73 = arith.constant dense<0xFF800000> : vector<8xf32>
    %132 = vector.multi_reduction <maximumf>, %131, %cst_73 [1] : vector<8x8xf32> to vector<8xf32>
    %133 = vector.shape_cast %132 : vector<8xf32> to vector<8x1xf32>
    %134 = vector.broadcast %133 : vector<8x1xf32> to vector<8x8xf32>
    %135 = arith.subf %131, %134 : vector<8x8xf32>
    %136 = math.exp %135 : vector<8x8xf32>
    %cst_74 = arith.constant dense<0.000000e+00> : vector<8xf32>
    %137 = vector.multi_reduction <add>, %136, %cst_74 [1] : vector<8x8xf32> to vector<8xf32>
    %138 = vector.shape_cast %137 : vector<8xf32> to vector<8x1xf32>
    %139 = tpu.reciprocal %138 {approx = true} : vector<8x1xf32> -> vector<8x1xf32>
    %140 = vector.broadcast %139 : vector<8x1xf32> to vector<8x8xf32>
    %141 = arith.mulf %136, %140 : vector<8x8xf32>
    %cst_75 = arith.constant dense<0.000000e+00> : vector<8x8xf32>
    %142 = tpu.matmul %141, %128, %cst_75 {dimension_numbers = #tpu.dot_dimension_numbers<[1], [0], [0], [1], [0, 0, 1, 1], [], []>} : vector<8x8xf32>, vector<8x8xf32>, vector<8x8xf32> -> vector<8x8xf32>
    %143 = vector.extract_strided_slice %2 {offsets = [8, 0], sizes = [8, 32], strides = [1, 1]} : vector<32x32xf32> to vector<8x32xf32>
    %cst_76 = arith.constant dense<0.000000e+00> : vector<8x32xf32>
    %144 = tpu.matmul %142, %143, %cst_76 {dimension_numbers = #tpu.dot_dimension_numbers<[1], [0], [0], [1], [0, 0, 1, 1], [], []>} : vector<8x8xf32>, vector<8x32xf32>, vector<8x32xf32> -> vector<8x32xf32>
    %145 = arith.addf %125, %144 : vector<8x32xf32>
    %146 = vector.extract_strided_slice %26 {offsets = [8, 16], sizes = [8, 8], strides = [1, 1]} : vector<16x96xf32> to vector<8x8xf32>
    %147 = vector.extract_strided_slice %26 {offsets = [8, 48], sizes = [8, 8], strides = [1, 1]} : vector<16x96xf32> to vector<8x8xf32>
    %148 = vector.extract_strided_slice %26 {offsets = [8, 80], sizes = [8, 8], strides = [1, 1]} : vector<16x96xf32> to vector<8x8xf32>
    %cst_77 = arith.constant dense<0.000000e+00> : vector<8x8xf32>
    %149 = tpu.matmul %146, %147, %cst_77 {dimension_numbers = #tpu.dot_dimension_numbers<[1], [1], [0], [0], [0, 0, 1, 0], [], []>} : vector<8x8xf32>, vector<8x8xf32>, vector<8x8xf32> -> vector<8x8xf32>
    %cst_78 = arith.constant 0.353553385 : f32
    %150 = vector.broadcast %cst_78 : f32 to vector<8x8xf32>
    %151 = arith.mulf %149, %150 : vector<8x8xf32>
    %cst_79 = arith.constant dense<0xFF800000> : vector<8xf32>
    %152 = vector.multi_reduction <maximumf>, %151, %cst_79 [1] : vector<8x8xf32> to vector<8xf32>
    %153 = vector.shape_cast %152 : vector<8xf32> to vector<8x1xf32>
    %154 = vector.broadcast %153 : vector<8x1xf32> to vector<8x8xf32>
    %155 = arith.subf %151, %154 : vector<8x8xf32>
    %156 = math.exp %155 : vector<8x8xf32>
    %cst_80 = arith.constant dense<0.000000e+00> : vector<8xf32>
    %157 = vector.multi_reduction <add>, %156, %cst_80 [1] : vector<8x8xf32> to vector<8xf32>
    %158 = vector.shape_cast %157 : vector<8xf32> to vector<8x1xf32>
    %159 = tpu.reciprocal %158 {approx = true} : vector<8x1xf32> -> vector<8x1xf32>
    %160 = vector.broadcast %159 : vector<8x1xf32> to vector<8x8xf32>
    %161 = arith.mulf %156, %160 : vector<8x8xf32>
    %cst_81 = arith.constant dense<0.000000e+00> : vector<8x8xf32>
    %162 = tpu.matmul %161, %148, %cst_81 {dimension_numbers = #tpu.dot_dimension_numbers<[1], [0], [0], [1], [0, 0, 1, 1], [], []>} : vector<8x8xf32>, vector<8x8xf32>, vector<8x8xf32> -> vector<8x8xf32>
    %163 = vector.extract_strided_slice %2 {offsets = [16, 0], sizes = [8, 32], strides = [1, 1]} : vector<32x32xf32> to vector<8x32xf32>
    %cst_82 = arith.constant dense<0.000000e+00> : vector<8x32xf32>
    %164 = tpu.matmul %162, %163, %cst_82 {dimension_numbers = #tpu.dot_dimension_numbers<[1], [0], [0], [1], [0, 0, 1, 1], [], []>} : vector<8x8xf32>, vector<8x32xf32>, vector<8x32xf32> -> vector<8x32xf32>
    %165 = arith.addf %145, %164 : vector<8x32xf32>
    %166 = vector.extract_strided_slice %26 {offsets = [8, 24], sizes = [8, 8], strides = [1, 1]} : vector<16x96xf32> to vector<8x8xf32>
    %167 = vector.extract_strided_slice %26 {offsets = [8, 56], sizes = [8, 8], strides = [1, 1]} : vector<16x96xf32> to vector<8x8xf32>
    %168 = vector.extract_strided_slice %26 {offsets = [8, 88], sizes = [8, 8], strides = [1, 1]} : vector<16x96xf32> to vector<8x8xf32>
    %cst_83 = arith.constant dense<0.000000e+00> : vector<8x8xf32>
    %169 = tpu.matmul %166, %167, %cst_83 {dimension_numbers = #tpu.dot_dimension_numbers<[1], [1], [0], [0], [0, 0, 1, 0], [], []>} : vector<8x8xf32>, vector<8x8xf32>, vector<8x8xf32> -> vector<8x8xf32>
    %cst_84 = arith.constant 0.353553385 : f32
    %170 = vector.broadcast %cst_84 : f32 to vector<8x8xf32>
    %171 = arith.mulf %169, %170 : vector<8x8xf32>
    %cst_85 = arith.constant dense<0xFF800000> : vector<8xf32>
    %172 = vector.multi_reduction <maximumf>, %171, %cst_85 [1] : vector<8x8xf32> to vector<8xf32>
    %173 = vector.shape_cast %172 : vector<8xf32> to vector<8x1xf32>
    %174 = vector.broadcast %173 : vector<8x1xf32> to vector<8x8xf32>
    %175 = arith.subf %171, %174 : vector<8x8xf32>
    %176 = math.exp %175 : vector<8x8xf32>
    %cst_86 = arith.constant dense<0.000000e+00> : vector<8xf32>
    %177 = vector.multi_reduction <add>, %176, %cst_86 [1] : vector<8x8xf32> to vector<8xf32>
    %178 = vector.shape_cast %177 : vector<8xf32> to vector<8x1xf32>
    %179 = tpu.reciprocal %178 {approx = true} : vector<8x1xf32> -> vector<8x1xf32>
    %180 = vector.broadcast %179 : vector<8x1xf32> to vector<8x8xf32>
    %181 = arith.mulf %176, %180 : vector<8x8xf32>
    %cst_87 = arith.constant dense<0.000000e+00> : vector<8x8xf32>
    %182 = tpu.matmul %181, %168, %cst_87 {dimension_numbers = #tpu.dot_dimension_numbers<[1], [0], [0], [1], [0, 0, 1, 1], [], []>} : vector<8x8xf32>, vector<8x8xf32>, vector<8x8xf32> -> vector<8x8xf32>
    %183 = vector.extract_strided_slice %2 {offsets = [24, 0], sizes = [8, 32], strides = [1, 1]} : vector<32x32xf32> to vector<8x32xf32>
    %cst_88 = arith.constant dense<0.000000e+00> : vector<8x32xf32>
    %184 = tpu.matmul %182, %183, %cst_88 {dimension_numbers = #tpu.dot_dimension_numbers<[1], [0], [0], [1], [0, 0, 1, 1], [], []>} : vector<8x8xf32>, vector<8x32xf32>, vector<8x32xf32> -> vector<8x32xf32>
    %185 = arith.addf %165, %184 : vector<8x32xf32>
    %c8 = arith.constant 8 : index
    %c0_89 = arith.constant 0 : index
    %186 = vector.load %arg21[%c8, %c0_89] : memref<16x32xf32, #tpu.memory_space<vmem>>, vector<8x32xf32>
    tpu.vector_store %arg21[%c8, %c0_89], %185 {strides = array<i32>} : memref<16x32xf32, #tpu.memory_space<vmem>>, vector<8x32xf32>,
    %c0_90 = arith.constant 0 : index
    %c0_91 = arith.constant 0 : index
    %187 = vector.load %arg21[%c0_90, %c0_91] : memref<16x32xf32, #tpu.memory_space<vmem>>, vector<16x32xf32>
    %188 = vector.broadcast %3 : vector<1x32xf32> to vector<16x32xf32>
    %189 = arith.addf %187, %188 : vector<16x32xf32>
    %190 = arith.addf %23, %189 : vector<16x32xf32>
    %cst_92 = arith.constant dense<0.000000e+00> : vector<16xf32>
    %191 = vector.multi_reduction <add>, %190, %cst_92 [1] : vector<16x32xf32> to vector<16xf32>
    %192 = vector.shape_cast %191 : vector<16xf32> to vector<16x1xf32>
    %cst_93 = arith.constant 3.200000e+01 : f32
    %193 = vector.broadcast %cst_93 : f32 to vector<16x1xf32>
    %194 = arith.divf %192, %193 : vector<16x1xf32>
    %195 = vector.broadcast %194 : vector<16x1xf32> to vector<16x32xf32>
    %196 = arith.subf %190, %195 : vector<16x32xf32>
    %197 = arith.mulf %196, %196 : vector<16x32xf32>
    %cst_94 = arith.constant dense<0.000000e+00> : vector<16xf32>
    %198 = vector.multi_reduction <add>, %197, %cst_94 [1] : vector<16x32xf32> to vector<16xf32>
    %199 = vector.shape_cast %198 : vector<16xf32> to vector<16x1xf32>
    %cst_95 = arith.constant 3.200000e+01 : f32
    %200 = vector.broadcast %cst_95 : f32 to vector<16x1xf32>
    %201 = arith.divf %199, %200 : vector<16x1xf32>
    %202 = vector.broadcast %194 : vector<16x1xf32> to vector<16x32xf32>
    %203 = arith.subf %190, %202 : vector<16x32xf32>
    %cst_96 = arith.constant 9.99999974E-6 : f32
    %204 = vector.broadcast %cst_96 : f32 to vector<16x1xf32>
    %205 = arith.addf %201, %204 : vector<16x1xf32>
    %206 = math.rsqrt %205 : vector<16x1xf32>
    %207 = vector.broadcast %206 : vector<16x1xf32> to vector<16x32xf32>
    %208 = arith.mulf %203, %207 : vector<16x32xf32>
    %209 = vector.broadcast %4 : vector<1x32xf32> to vector<16x32xf32>
    %210 = arith.mulf %208, %209 : vector<16x32xf32>
    %211 = vector.broadcast %5 : vector<1x32xf32> to vector<16x32xf32>
    %212 = arith.addf %210, %211 : vector<16x32xf32>
    %cst_97 = arith.constant dense<0.000000e+00> : vector<16x64xf32>
    %213 = tpu.matmul %212, %6, %cst_97 {dimension_numbers = #tpu.dot_dimension_numbers<[1], [0], [0], [1], [0, 0, 1, 1], [], []>} : vector<16x32xf32>, vector<32x64xf32>, vector<16x64xf32> -> vector<16x64xf32>
    %214 = vector.broadcast %7 : vector<1x64xf32> to vector<16x64xf32>
    %215 = arith.addf %213, %214 : vector<16x64xf32>
    %cst_98 = arith.constant 0.000000e+00 : f32
    %216 = vector.broadcast %cst_98 : f32 to vector<16x64xf32>
    %217 = arith.maximumf %215, %216 : vector<16x64xf32>
    %cst_99 = arith.constant dense<0.000000e+00> : vector<16x32xf32>
    %218 = tpu.matmul %217, %8, %cst_99 {dimension_numbers = #tpu.dot_dimension_numbers<[1], [0], [0], [1], [0, 0, 1, 1], [], []>} : vector<16x64xf32>, vector<64x32xf32>, vector<16x32xf32> -> vector<16x32xf32>
    %219 = vector.broadcast %9 : vector<1x32xf32> to vector<16x32xf32>
    %220 = arith.addf %218, %219 : vector<16x32xf32>
    %221 = arith.addf %212, %220 : vector<16x32xf32>
    %cst_100 = arith.constant dense<0.000000e+00> : vector<16xf32>
    %222 = vector.multi_reduction <add>, %221, %cst_100 [1] : vector<16x32xf32> to vector<16xf32>
    %223 = vector.shape_cast %222 : vector<16xf32> to vector<16x1xf32>
    %cst_101 = arith.constant 3.200000e+01 : f32
    %224 = vector.broadcast %cst_101 : f32 to vector<16x1xf32>
    %225 = arith.divf %223, %224 : vector<16x1xf32>
    %226 = vector.broadcast %225 : vector<16x1xf32> to vector<16x32xf32>
    %227 = arith.subf %221, %226 : vector<16x32xf32>
    %228 = arith.mulf %227, %227 : vector<16x32xf32>
    %cst_102 = arith.constant dense<0.000000e+00> : vector<16xf32>
    %229 = vector.multi_reduction <add>, %228, %cst_102 [1] : vector<16x32xf32> to vector<16xf32>
    %230 = vector.shape_cast %229 : vector<16xf32> to vector<16x1xf32>
    %cst_103 = arith.constant 3.200000e+01 : f32
    %231 = vector.broadcast %cst_103 : f32 to vector<16x1xf32>
    %232 = arith.divf %230, %231 : vector<16x1xf32>
    %233 = vector.broadcast %225 : vector<16x1xf32> to vector<16x32xf32>
    %234 = arith.subf %221, %233 : vector<16x32xf32>
    %cst_104 = arith.constant 9.99999974E-6 : f32
    %235 = vector.broadcast %cst_104 : f32 to vector<16x1xf32>
    %236 = arith.addf %232, %235 : vector<16x1xf32>
    %237 = math.rsqrt %236 : vector<16x1xf32>
    %238 = vector.broadcast %237 : vector<16x1xf32> to vector<16x32xf32>
    %239 = arith.mulf %234, %238 : vector<16x32xf32>
    %240 = vector.broadcast %10 : vector<1x32xf32> to vector<16x32xf32>
    %241 = arith.mulf %239, %240 : vector<16x32xf32>
    %242 = vector.broadcast %11 : vector<1x32xf32> to vector<16x32xf32>
    %243 = arith.addf %241, %242 : vector<16x32xf32>
    %cst_105 = arith.constant dense<0.000000e+00> : vector<16xf32>
    %244 = vector.multi_reduction <add>, %243, %cst_105 [1] : vector<16x32xf32> to vector<16xf32>
    %245 = vector.shape_cast %244 : vector<16xf32> to vector<16x1xf32>
    %cst_106 = arith.constant 3.200000e+01 : f32
    %246 = vector.broadcast %cst_106 : f32 to vector<16x1xf32>
    %247 = arith.divf %245, %246 : vector<16x1xf32>
    %248 = vector.broadcast %247 : vector<16x1xf32> to vector<16x32xf32>
    %249 = arith.subf %243, %248 : vector<16x32xf32>
    %250 = arith.mulf %249, %249 : vector<16x32xf32>
    %cst_107 = arith.constant dense<0.000000e+00> : vector<16xf32>
    %251 = vector.multi_reduction <add>, %250, %cst_107 [1] : vector<16x32xf32> to vector<16xf32>
    %252 = vector.shape_cast %251 : vector<16xf32> to vector<16x1xf32>
    %cst_108 = arith.constant 3.200000e+01 : f32
    %253 = vector.broadcast %cst_108 : f32 to vector<16x1xf32>
    %254 = arith.divf %252, %253 : vector<16x1xf32>
    %255 = vector.broadcast %247 : vector<16x1xf32> to vector<16x32xf32>
    %256 = arith.subf %243, %255 : vector<16x32xf32>
    %cst_109 = arith.constant 9.99999974E-6 : f32
    %257 = vector.broadcast %cst_109 : f32 to vector<16x1xf32>
    %258 = arith.addf %254, %257 : vector<16x1xf32>
    %259 = math.rsqrt %258 : vector<16x1xf32>
    %260 = vector.broadcast %259 : vector<16x1xf32> to vector<16x32xf32>
    %261 = arith.mulf %256, %260 : vector<16x32xf32>
    %262 = vector.broadcast %12 : vector<1x32xf32> to vector<16x32xf32>
    %263 = arith.mulf %261, %262 : vector<16x32xf32>
    %264 = vector.broadcast %13 : vector<1x32xf32> to vector<16x32xf32>
    %265 = arith.addf %263, %264 : vector<16x32xf32>
    %c0_110 = arith.constant 0 : index
    %c0_111 = arith.constant 0 : index
    %266 = vector.load %arg20[%c0_110, %c0_111] : memref<16x32xf32, #tpu.memory_space<vmem>>, vector<16x32xf32>
    tpu.vector_store %arg20[%c0_110, %c0_111], %265 {strides = array<i32>} : memref<16x32xf32, #tpu.memory_space<vmem>>, vector<16x32xf32>,
    return
  }
  func.func @transform_0(%arg0: i32) -> (i32, i32) {
    %c0_i32 = arith.constant 0 : i32
    %c0_i32_0 = arith.constant 0 : i32
    return %arg0, %c0_i32 : i32, i32
  }
  func.func @transform_1(%arg0: i32) -> (i32, i32) {
    %c0_i32 = arith.constant 0 : i32
    %c0_i32_0 = arith.constant 0 : i32
    return %arg0, %c0_i32 : i32, i32
  }
  func.func @transform_2(%arg0: i32) -> (i32, i32) {
    %c0_i32 = arith.constant 0 : i32
    %c0_i32_0 = arith.constant 0 : i32
    %c0_i32_1 = arith.constant 0 : i32
    return %c0_i32, %c0_i32_0 : i32, i32
  }
  func.func @transform_3(%arg0: i32) -> (i32, i32) {
    %c0_i32 = arith.constant 0 : i32
    %c0_i32_0 = arith.constant 0 : i32
    %c0_i32_1 = arith.constant 0 : i32
    return %c0_i32, %c0_i32_0 : i32, i32
  }
  func.func @transform_4(%arg0: i32) -> (i32, i32) {
    %c0_i32 = arith.constant 0 : i32
    %c0_i32_0 = arith.constant 0 : i32
    %c0_i32_1 = arith.constant 0 : i32
    return %c0_i32, %c0_i32_0 : i32, i32
  }
  func.func @transform_5(%arg0: i32) -> (i32, i32) {
    %c0_i32 = arith.constant 0 : i32
    %c0_i32_0 = arith.constant 0 : i32
    %c0_i32_1 = arith.constant 0 : i32
    return %c0_i32, %c0_i32_0 : i32, i32
  }
  func.func @transform_6(%arg0: i32) -> (i32, i32) {
    %c0_i32 = arith.constant 0 : i32
    %c0_i32_0 = arith.constant 0 : i32
    %c0_i32_1 = arith.constant 0 : i32
    return %c0_i32, %c0_i32_0 : i32, i32
  }
  func.func @transform_7(%arg0: i32) -> (i32, i32) {
    %c0_i32 = arith.constant 0 : i32
    %c0_i32_0 = arith.constant 0 : i32
    %c0_i32_1 = arith.constant 0 : i32
    return %c0_i32, %c0_i32_0 : i32, i32
  }
  func.func @transform_8(%arg0: i32) -> (i32, i32) {
    %c0_i32 = arith.constant 0 : i32
    %c0_i32_0 = arith.constant 0 : i32
    %c0_i32_1 = arith.constant 0 : i32
    return %c0_i32, %c0_i32_0 : i32, i32
  }
  func.func @transform_9(%arg0: i32) -> (i32, i32) {
    %c0_i32 = arith.constant 0 : i32
    %c0_i32_0 = arith.constant 0 : i32
    %c0_i32_1 = arith.constant 0 : i32
    return %c0_i32, %c0_i32_0 : i32, i32
  }
  func.func @transform_10(%arg0: i32) -> (i32, i32) {
    %c0_i32 = arith.constant 0 : i32
    %c0_i32_0 = arith.constant 0 : i32
    %c0_i32_1 = arith.constant 0 : i32
    return %c0_i32, %c0_i32_0 : i32, i32
  }
  func.func @transform_11(%arg0: i32) -> (i32, i32) {
    %c0_i32 = arith.constant 0 : i32
    %c0_i32_0 = arith.constant 0 : i32
    %c0_i32_1 = arith.constant 0 : i32
    return %c0_i32, %c0_i32_0 : i32, i32
  }
  func.func @transform_12(%arg0: i32) -> (i32, i32) {
    %c0_i32 = arith.constant 0 : i32
    %c0_i32_0 = arith.constant 0 : i32
    %c0_i32_1 = arith.constant 0 : i32
    return %c0_i32, %c0_i32_0 : i32, i32
  }
  func.func @transform_13(%arg0: i32) -> (i32, i32) {
    %c0_i32 = arith.constant 0 : i32
    %c0_i32_0 = arith.constant 0 : i32
    %c0_i32_1 = arith.constant 0 : i32
    return %c0_i32, %c0_i32_0 : i32, i32
  }
  func.func @transform_14(%arg0: i32) -> (i32, i32) {
    %c0_i32 = arith.constant 0 : i32
    %c0_i32_0 = arith.constant 0 : i32
    %c0_i32_1 = arith.constant 0 : i32
    return %c0_i32, %c0_i32_0 : i32, i32
  }
  func.func @transform_15(%arg0: i32) -> (i32, i32) {
    %c0_i32 = arith.constant 0 : i32
    %c0_i32_0 = arith.constant 0 : i32
    %c0_i32_1 = arith.constant 0 : i32
    return %c0_i32, %c0_i32_0 : i32, i32
  }
  func.func @transform_16(%arg0: i32) -> (i32, i32) {
    %c0_i32 = arith.constant 0 : i32
    %c0_i32_0 = arith.constant 0 : i32
    %c0_i32_1 = arith.constant 0 : i32
    return %c0_i32, %c0_i32_0 : i32, i32
  }
  func.func @transform_17(%arg0: i32) -> (i32, i32) {
    %c0_i32 = arith.constant 0 : i32
    %c0_i32_0 = arith.constant 0 : i32
    %c0_i32_1 = arith.constant 0 : i32
    return %c0_i32, %c0_i32_0 : i32, i32
  }
  func.func @transform_18(%arg0: i32) -> (i32, i32) {
    %c0_i32 = arith.constant 0 : i32
    %c0_i32_0 = arith.constant 0 : i32
    %c0_i32_1 = arith.constant 0 : i32
    return %c0_i32, %c0_i32_0 : i32, i32
  }
  func.func @transform_19(%arg0: i32) -> (i32, i32) {
    %c0_i32 = arith.constant 0 : i32
    %c0_i32_0 = arith.constant 0 : i32
    return %arg0, %c0_i32 : i32, i32
  }
}

module attributes {stable_mosaic.version = 11 : i64} {
  func.func @_encoder_layer_kernel(%arg0: i32, %arg1: memref<16x32xf32, #tpu.memory_space<vmem>>, %arg2: memref<32x96xf32, #tpu.memory_space<vmem>>, %arg3: memref<1x96xf32, #tpu.memory_space<vmem>>, %arg4: memref<32x32xf32, #tpu.memory_space<vmem>>, %arg5: memref<1x32xf32, #tpu.memory_space<vmem>>, %arg6: memref<1x32xf32, #tpu.memory_space<vmem>>, %arg7: memref<1x32xf32, #tpu.memory_space<vmem>>, %arg8: memref<32x64xf32, #tpu.memory_space<vmem>>, %arg9: memref<1x64xf32, #tpu.memory_space<vmem>>, %arg10: memref<64x32xf32, #tpu.memory_space<vmem>>, %arg11: memref<1x32xf32, #tpu.memory_space<vmem>>, %arg12: memref<1x32xf32, #tpu.memory_space<vmem>>, %arg13: memref<1x32xf32, #tpu.memory_space<vmem>>, %arg14: memref<16x32xf32, #tpu.memory_space<vmem>>, %arg15: memref<16x32xf32, #tpu.memory_space<vmem>>) attributes {dimension_semantics = [#tpu.dimension_semantics<parallel>], iteration_bounds = array<i64: 1>, scalar_prefetch = 0 : i64, scratch_operands = 1 : i64, tpu.core_type = #tpu.core_type<tc>, window_params = [{transform_indices = @transform_0, window_bounds = array<i64: 16, 32>}, {pipeline_mode = #tpu.pipeline_mode<synchronous>, transform_indices = @transform_1, window_bounds = array<i64: 32, 96>}, {pipeline_mode = #tpu.pipeline_mode<synchronous>, transform_indices = @transform_2, window_bounds = array<i64: 1, 96>}, {pipeline_mode = #tpu.pipeline_mode<synchronous>, transform_indices = @transform_3, window_bounds = array<i64: 32, 32>}, {pipeline_mode = #tpu.pipeline_mode<synchronous>, transform_indices = @transform_4, window_bounds = array<i64: 1, 32>}, {pipeline_mode = #tpu.pipeline_mode<synchronous>, transform_indices = @transform_5, window_bounds = array<i64: 1, 32>}, {pipeline_mode = #tpu.pipeline_mode<synchronous>, transform_indices = @transform_6, window_bounds = array<i64: 1, 32>}, {pipeline_mode = #tpu.pipeline_mode<synchronous>, transform_indices = @transform_7, window_bounds = array<i64: 32, 64>}, {pipeline_mode = #tpu.pipeline_mode<synchronous>, transform_indices = @transform_8, window_bounds = array<i64: 1, 64>}, {pipeline_mode = #tpu.pipeline_mode<synchronous>, transform_indices = @transform_9, window_bounds = array<i64: 64, 32>}, {pipeline_mode = #tpu.pipeline_mode<synchronous>, transform_indices = @transform_10, window_bounds = array<i64: 1, 32>}, {pipeline_mode = #tpu.pipeline_mode<synchronous>, transform_indices = @transform_11, window_bounds = array<i64: 1, 32>}, {pipeline_mode = #tpu.pipeline_mode<synchronous>, transform_indices = @transform_12, window_bounds = array<i64: 1, 32>}, {transform_indices = @transform_13, window_bounds = array<i64: 16, 32>}]} {
    %c0 = arith.constant 0 : index
    %c0_0 = arith.constant 0 : index
    %0 = vector.load %arg2[%c0, %c0_0] : memref<32x96xf32, #tpu.memory_space<vmem>>, vector<32x96xf32>
    %c0_1 = arith.constant 0 : index
    %c0_2 = arith.constant 0 : index
    %1 = vector.load %arg3[%c0_1, %c0_2] : memref<1x96xf32, #tpu.memory_space<vmem>>, vector<1x96xf32>
    %c0_3 = arith.constant 0 : index
    %c0_4 = arith.constant 0 : index
    %2 = vector.load %arg4[%c0_3, %c0_4] : memref<32x32xf32, #tpu.memory_space<vmem>>, vector<32x32xf32>
    %c0_5 = arith.constant 0 : index
    %c0_6 = arith.constant 0 : index
    %3 = vector.load %arg5[%c0_5, %c0_6] : memref<1x32xf32, #tpu.memory_space<vmem>>, vector<1x32xf32>
    %c0_7 = arith.constant 0 : index
    %c0_8 = arith.constant 0 : index
    %4 = vector.load %arg6[%c0_7, %c0_8] : memref<1x32xf32, #tpu.memory_space<vmem>>, vector<1x32xf32>
    %c0_9 = arith.constant 0 : index
    %c0_10 = arith.constant 0 : index
    %5 = vector.load %arg7[%c0_9, %c0_10] : memref<1x32xf32, #tpu.memory_space<vmem>>, vector<1x32xf32>
    %c0_11 = arith.constant 0 : index
    %c0_12 = arith.constant 0 : index
    %6 = vector.load %arg8[%c0_11, %c0_12] : memref<32x64xf32, #tpu.memory_space<vmem>>, vector<32x64xf32>
    %c0_13 = arith.constant 0 : index
    %c0_14 = arith.constant 0 : index
    %7 = vector.load %arg9[%c0_13, %c0_14] : memref<1x64xf32, #tpu.memory_space<vmem>>, vector<1x64xf32>
    %c0_15 = arith.constant 0 : index
    %c0_16 = arith.constant 0 : index
    %8 = vector.load %arg10[%c0_15, %c0_16] : memref<64x32xf32, #tpu.memory_space<vmem>>, vector<64x32xf32>
    %c0_17 = arith.constant 0 : index
    %c0_18 = arith.constant 0 : index
    %9 = vector.load %arg11[%c0_17, %c0_18] : memref<1x32xf32, #tpu.memory_space<vmem>>, vector<1x32xf32>
    %c0_19 = arith.constant 0 : index
    %c0_20 = arith.constant 0 : index
    %10 = vector.load %arg12[%c0_19, %c0_20] : memref<1x32xf32, #tpu.memory_space<vmem>>, vector<1x32xf32>
    %c0_21 = arith.constant 0 : index
    %c0_22 = arith.constant 0 : index
    %11 = vector.load %arg13[%c0_21, %c0_22] : memref<1x32xf32, #tpu.memory_space<vmem>>, vector<1x32xf32>
    %c0_23 = arith.constant 0 : index
    %c0_24 = arith.constant 0 : index
    %12 = vector.load %arg1[%c0_23, %c0_24] : memref<16x32xf32, #tpu.memory_space<vmem>>, vector<16x32xf32>
    %cst = arith.constant dense<0.000000e+00> : vector<16x96xf32>
    %13 = tpu.matmul %12, %0, %cst {dimension_numbers = #tpu.dot_dimension_numbers<[1], [0], [0], [1], [0, 0, 1, 1], [], []>} : vector<16x32xf32>, vector<32x96xf32>, vector<16x96xf32> -> vector<16x96xf32>
    %14 = vector.broadcast %1 : vector<1x96xf32> to vector<16x96xf32>
    %15 = arith.addf %13, %14 : vector<16x96xf32>
    %16 = vector.extract_strided_slice %15 {offsets = [0, 0], sizes = [8, 8], strides = [1, 1]} : vector<16x96xf32> to vector<8x8xf32>
    %17 = vector.extract_strided_slice %15 {offsets = [0, 32], sizes = [8, 8], strides = [1, 1]} : vector<16x96xf32> to vector<8x8xf32>
    %18 = vector.extract_strided_slice %15 {offsets = [0, 64], sizes = [8, 8], strides = [1, 1]} : vector<16x96xf32> to vector<8x8xf32>
    %cst_25 = arith.constant dense<0.000000e+00> : vector<8x8xf32>
    %19 = tpu.matmul %16, %17, %cst_25 {dimension_numbers = #tpu.dot_dimension_numbers<[1], [1], [0], [0], [0, 0, 1, 0], [], []>} : vector<8x8xf32>, vector<8x8xf32>, vector<8x8xf32> -> vector<8x8xf32>
    %cst_26 = arith.constant 0.353553385 : f32
    %20 = vector.broadcast %cst_26 : f32 to vector<8x8xf32>
    %21 = arith.mulf %19, %20 : vector<8x8xf32>
    %cst_27 = arith.constant dense<0xFF800000> : vector<8xf32>
    %22 = vector.multi_reduction <maximumf>, %21, %cst_27 [1] : vector<8x8xf32> to vector<8xf32>
    %23 = vector.shape_cast %22 : vector<8xf32> to vector<8x1xf32>
    %24 = vector.broadcast %23 : vector<8x1xf32> to vector<8x8xf32>
    %25 = arith.subf %21, %24 : vector<8x8xf32>
    %26 = math.exp %25 : vector<8x8xf32>
    %cst_28 = arith.constant dense<0.000000e+00> : vector<8xf32>
    %27 = vector.multi_reduction <add>, %26, %cst_28 [1] : vector<8x8xf32> to vector<8xf32>
    %28 = vector.shape_cast %27 : vector<8xf32> to vector<8x1xf32>
    %29 = tpu.reciprocal %28 {approx = true} : vector<8x1xf32> -> vector<8x1xf32>
    %30 = vector.broadcast %29 : vector<8x1xf32> to vector<8x8xf32>
    %31 = arith.mulf %26, %30 : vector<8x8xf32>
    %cst_29 = arith.constant dense<0.000000e+00> : vector<8x8xf32>
    %32 = tpu.matmul %31, %18, %cst_29 {dimension_numbers = #tpu.dot_dimension_numbers<[1], [0], [0], [1], [0, 0, 1, 1], [], []>} : vector<8x8xf32>, vector<8x8xf32>, vector<8x8xf32> -> vector<8x8xf32>
    %33 = vector.extract_strided_slice %2 {offsets = [0, 0], sizes = [8, 32], strides = [1, 1]} : vector<32x32xf32> to vector<8x32xf32>
    %cst_30 = arith.constant dense<0.000000e+00> : vector<8x32xf32>
    %34 = tpu.matmul %32, %33, %cst_30 {dimension_numbers = #tpu.dot_dimension_numbers<[1], [0], [0], [1], [0, 0, 1, 1], [], []>} : vector<8x8xf32>, vector<8x32xf32>, vector<8x32xf32> -> vector<8x32xf32>
    %35 = vector.extract_strided_slice %15 {offsets = [0, 8], sizes = [8, 8], strides = [1, 1]} : vector<16x96xf32> to vector<8x8xf32>
    %36 = vector.extract_strided_slice %15 {offsets = [0, 40], sizes = [8, 8], strides = [1, 1]} : vector<16x96xf32> to vector<8x8xf32>
    %37 = vector.extract_strided_slice %15 {offsets = [0, 72], sizes = [8, 8], strides = [1, 1]} : vector<16x96xf32> to vector<8x8xf32>
    %cst_31 = arith.constant dense<0.000000e+00> : vector<8x8xf32>
    %38 = tpu.matmul %35, %36, %cst_31 {dimension_numbers = #tpu.dot_dimension_numbers<[1], [1], [0], [0], [0, 0, 1, 0], [], []>} : vector<8x8xf32>, vector<8x8xf32>, vector<8x8xf32> -> vector<8x8xf32>
    %cst_32 = arith.constant 0.353553385 : f32
    %39 = vector.broadcast %cst_32 : f32 to vector<8x8xf32>
    %40 = arith.mulf %38, %39 : vector<8x8xf32>
    %cst_33 = arith.constant dense<0xFF800000> : vector<8xf32>
    %41 = vector.multi_reduction <maximumf>, %40, %cst_33 [1] : vector<8x8xf32> to vector<8xf32>
    %42 = vector.shape_cast %41 : vector<8xf32> to vector<8x1xf32>
    %43 = vector.broadcast %42 : vector<8x1xf32> to vector<8x8xf32>
    %44 = arith.subf %40, %43 : vector<8x8xf32>
    %45 = math.exp %44 : vector<8x8xf32>
    %cst_34 = arith.constant dense<0.000000e+00> : vector<8xf32>
    %46 = vector.multi_reduction <add>, %45, %cst_34 [1] : vector<8x8xf32> to vector<8xf32>
    %47 = vector.shape_cast %46 : vector<8xf32> to vector<8x1xf32>
    %48 = tpu.reciprocal %47 {approx = true} : vector<8x1xf32> -> vector<8x1xf32>
    %49 = vector.broadcast %48 : vector<8x1xf32> to vector<8x8xf32>
    %50 = arith.mulf %45, %49 : vector<8x8xf32>
    %cst_35 = arith.constant dense<0.000000e+00> : vector<8x8xf32>
    %51 = tpu.matmul %50, %37, %cst_35 {dimension_numbers = #tpu.dot_dimension_numbers<[1], [0], [0], [1], [0, 0, 1, 1], [], []>} : vector<8x8xf32>, vector<8x8xf32>, vector<8x8xf32> -> vector<8x8xf32>
    %52 = vector.extract_strided_slice %2 {offsets = [8, 0], sizes = [8, 32], strides = [1, 1]} : vector<32x32xf32> to vector<8x32xf32>
    %cst_36 = arith.constant dense<0.000000e+00> : vector<8x32xf32>
    %53 = tpu.matmul %51, %52, %cst_36 {dimension_numbers = #tpu.dot_dimension_numbers<[1], [0], [0], [1], [0, 0, 1, 1], [], []>} : vector<8x8xf32>, vector<8x32xf32>, vector<8x32xf32> -> vector<8x32xf32>
    %54 = arith.addf %34, %53 : vector<8x32xf32>
    %55 = vector.extract_strided_slice %15 {offsets = [0, 16], sizes = [8, 8], strides = [1, 1]} : vector<16x96xf32> to vector<8x8xf32>
    %56 = vector.extract_strided_slice %15 {offsets = [0, 48], sizes = [8, 8], strides = [1, 1]} : vector<16x96xf32> to vector<8x8xf32>
    %57 = vector.extract_strided_slice %15 {offsets = [0, 80], sizes = [8, 8], strides = [1, 1]} : vector<16x96xf32> to vector<8x8xf32>
    %cst_37 = arith.constant dense<0.000000e+00> : vector<8x8xf32>
    %58 = tpu.matmul %55, %56, %cst_37 {dimension_numbers = #tpu.dot_dimension_numbers<[1], [1], [0], [0], [0, 0, 1, 0], [], []>} : vector<8x8xf32>, vector<8x8xf32>, vector<8x8xf32> -> vector<8x8xf32>
    %cst_38 = arith.constant 0.353553385 : f32
    %59 = vector.broadcast %cst_38 : f32 to vector<8x8xf32>
    %60 = arith.mulf %58, %59 : vector<8x8xf32>
    %cst_39 = arith.constant dense<0xFF800000> : vector<8xf32>
    %61 = vector.multi_reduction <maximumf>, %60, %cst_39 [1] : vector<8x8xf32> to vector<8xf32>
    %62 = vector.shape_cast %61 : vector<8xf32> to vector<8x1xf32>
    %63 = vector.broadcast %62 : vector<8x1xf32> to vector<8x8xf32>
    %64 = arith.subf %60, %63 : vector<8x8xf32>
    %65 = math.exp %64 : vector<8x8xf32>
    %cst_40 = arith.constant dense<0.000000e+00> : vector<8xf32>
    %66 = vector.multi_reduction <add>, %65, %cst_40 [1] : vector<8x8xf32> to vector<8xf32>
    %67 = vector.shape_cast %66 : vector<8xf32> to vector<8x1xf32>
    %68 = tpu.reciprocal %67 {approx = true} : vector<8x1xf32> -> vector<8x1xf32>
    %69 = vector.broadcast %68 : vector<8x1xf32> to vector<8x8xf32>
    %70 = arith.mulf %65, %69 : vector<8x8xf32>
    %cst_41 = arith.constant dense<0.000000e+00> : vector<8x8xf32>
    %71 = tpu.matmul %70, %57, %cst_41 {dimension_numbers = #tpu.dot_dimension_numbers<[1], [0], [0], [1], [0, 0, 1, 1], [], []>} : vector<8x8xf32>, vector<8x8xf32>, vector<8x8xf32> -> vector<8x8xf32>
    %72 = vector.extract_strided_slice %2 {offsets = [16, 0], sizes = [8, 32], strides = [1, 1]} : vector<32x32xf32> to vector<8x32xf32>
    %cst_42 = arith.constant dense<0.000000e+00> : vector<8x32xf32>
    %73 = tpu.matmul %71, %72, %cst_42 {dimension_numbers = #tpu.dot_dimension_numbers<[1], [0], [0], [1], [0, 0, 1, 1], [], []>} : vector<8x8xf32>, vector<8x32xf32>, vector<8x32xf32> -> vector<8x32xf32>
    %74 = arith.addf %54, %73 : vector<8x32xf32>
    %75 = vector.extract_strided_slice %15 {offsets = [0, 24], sizes = [8, 8], strides = [1, 1]} : vector<16x96xf32> to vector<8x8xf32>
    %76 = vector.extract_strided_slice %15 {offsets = [0, 56], sizes = [8, 8], strides = [1, 1]} : vector<16x96xf32> to vector<8x8xf32>
    %77 = vector.extract_strided_slice %15 {offsets = [0, 88], sizes = [8, 8], strides = [1, 1]} : vector<16x96xf32> to vector<8x8xf32>
    %cst_43 = arith.constant dense<0.000000e+00> : vector<8x8xf32>
    %78 = tpu.matmul %75, %76, %cst_43 {dimension_numbers = #tpu.dot_dimension_numbers<[1], [1], [0], [0], [0, 0, 1, 0], [], []>} : vector<8x8xf32>, vector<8x8xf32>, vector<8x8xf32> -> vector<8x8xf32>
    %cst_44 = arith.constant 0.353553385 : f32
    %79 = vector.broadcast %cst_44 : f32 to vector<8x8xf32>
    %80 = arith.mulf %78, %79 : vector<8x8xf32>
    %cst_45 = arith.constant dense<0xFF800000> : vector<8xf32>
    %81 = vector.multi_reduction <maximumf>, %80, %cst_45 [1] : vector<8x8xf32> to vector<8xf32>
    %82 = vector.shape_cast %81 : vector<8xf32> to vector<8x1xf32>
    %83 = vector.broadcast %82 : vector<8x1xf32> to vector<8x8xf32>
    %84 = arith.subf %80, %83 : vector<8x8xf32>
    %85 = math.exp %84 : vector<8x8xf32>
    %cst_46 = arith.constant dense<0.000000e+00> : vector<8xf32>
    %86 = vector.multi_reduction <add>, %85, %cst_46 [1] : vector<8x8xf32> to vector<8xf32>
    %87 = vector.shape_cast %86 : vector<8xf32> to vector<8x1xf32>
    %88 = tpu.reciprocal %87 {approx = true} : vector<8x1xf32> -> vector<8x1xf32>
    %89 = vector.broadcast %88 : vector<8x1xf32> to vector<8x8xf32>
    %90 = arith.mulf %85, %89 : vector<8x8xf32>
    %cst_47 = arith.constant dense<0.000000e+00> : vector<8x8xf32>
    %91 = tpu.matmul %90, %77, %cst_47 {dimension_numbers = #tpu.dot_dimension_numbers<[1], [0], [0], [1], [0, 0, 1, 1], [], []>} : vector<8x8xf32>, vector<8x8xf32>, vector<8x8xf32> -> vector<8x8xf32>
    %92 = vector.extract_strided_slice %2 {offsets = [24, 0], sizes = [8, 32], strides = [1, 1]} : vector<32x32xf32> to vector<8x32xf32>
    %cst_48 = arith.constant dense<0.000000e+00> : vector<8x32xf32>
    %93 = tpu.matmul %91, %92, %cst_48 {dimension_numbers = #tpu.dot_dimension_numbers<[1], [0], [0], [1], [0, 0, 1, 1], [], []>} : vector<8x8xf32>, vector<8x32xf32>, vector<8x32xf32> -> vector<8x32xf32>
    %94 = arith.addf %74, %93 : vector<8x32xf32>
    %c0_49 = arith.constant 0 : index
    %c0_50 = arith.constant 0 : index
    %95 = vector.load %arg15[%c0_49, %c0_50] : memref<16x32xf32, #tpu.memory_space<vmem>>, vector<8x32xf32>
    tpu.vector_store %arg15[%c0_49, %c0_50], %94 {strides = array<i32>} : memref<16x32xf32, #tpu.memory_space<vmem>>, vector<8x32xf32>,
    %96 = vector.extract_strided_slice %15 {offsets = [8, 0], sizes = [8, 8], strides = [1, 1]} : vector<16x96xf32> to vector<8x8xf32>
    %97 = vector.extract_strided_slice %15 {offsets = [8, 32], sizes = [8, 8], strides = [1, 1]} : vector<16x96xf32> to vector<8x8xf32>
    %98 = vector.extract_strided_slice %15 {offsets = [8, 64], sizes = [8, 8], strides = [1, 1]} : vector<16x96xf32> to vector<8x8xf32>
    %cst_51 = arith.constant dense<0.000000e+00> : vector<8x8xf32>
    %99 = tpu.matmul %96, %97, %cst_51 {dimension_numbers = #tpu.dot_dimension_numbers<[1], [1], [0], [0], [0, 0, 1, 0], [], []>} : vector<8x8xf32>, vector<8x8xf32>, vector<8x8xf32> -> vector<8x8xf32>
    %cst_52 = arith.constant 0.353553385 : f32
    %100 = vector.broadcast %cst_52 : f32 to vector<8x8xf32>
    %101 = arith.mulf %99, %100 : vector<8x8xf32>
    %cst_53 = arith.constant dense<0xFF800000> : vector<8xf32>
    %102 = vector.multi_reduction <maximumf>, %101, %cst_53 [1] : vector<8x8xf32> to vector<8xf32>
    %103 = vector.shape_cast %102 : vector<8xf32> to vector<8x1xf32>
    %104 = vector.broadcast %103 : vector<8x1xf32> to vector<8x8xf32>
    %105 = arith.subf %101, %104 : vector<8x8xf32>
    %106 = math.exp %105 : vector<8x8xf32>
    %cst_54 = arith.constant dense<0.000000e+00> : vector<8xf32>
    %107 = vector.multi_reduction <add>, %106, %cst_54 [1] : vector<8x8xf32> to vector<8xf32>
    %108 = vector.shape_cast %107 : vector<8xf32> to vector<8x1xf32>
    %109 = tpu.reciprocal %108 {approx = true} : vector<8x1xf32> -> vector<8x1xf32>
    %110 = vector.broadcast %109 : vector<8x1xf32> to vector<8x8xf32>
    %111 = arith.mulf %106, %110 : vector<8x8xf32>
    %cst_55 = arith.constant dense<0.000000e+00> : vector<8x8xf32>
    %112 = tpu.matmul %111, %98, %cst_55 {dimension_numbers = #tpu.dot_dimension_numbers<[1], [0], [0], [1], [0, 0, 1, 1], [], []>} : vector<8x8xf32>, vector<8x8xf32>, vector<8x8xf32> -> vector<8x8xf32>
    %113 = vector.extract_strided_slice %2 {offsets = [0, 0], sizes = [8, 32], strides = [1, 1]} : vector<32x32xf32> to vector<8x32xf32>
    %cst_56 = arith.constant dense<0.000000e+00> : vector<8x32xf32>
    %114 = tpu.matmul %112, %113, %cst_56 {dimension_numbers = #tpu.dot_dimension_numbers<[1], [0], [0], [1], [0, 0, 1, 1], [], []>} : vector<8x8xf32>, vector<8x32xf32>, vector<8x32xf32> -> vector<8x32xf32>
    %115 = vector.extract_strided_slice %15 {offsets = [8, 8], sizes = [8, 8], strides = [1, 1]} : vector<16x96xf32> to vector<8x8xf32>
    %116 = vector.extract_strided_slice %15 {offsets = [8, 40], sizes = [8, 8], strides = [1, 1]} : vector<16x96xf32> to vector<8x8xf32>
    %117 = vector.extract_strided_slice %15 {offsets = [8, 72], sizes = [8, 8], strides = [1, 1]} : vector<16x96xf32> to vector<8x8xf32>
    %cst_57 = arith.constant dense<0.000000e+00> : vector<8x8xf32>
    %118 = tpu.matmul %115, %116, %cst_57 {dimension_numbers = #tpu.dot_dimension_numbers<[1], [1], [0], [0], [0, 0, 1, 0], [], []>} : vector<8x8xf32>, vector<8x8xf32>, vector<8x8xf32> -> vector<8x8xf32>
    %cst_58 = arith.constant 0.353553385 : f32
    %119 = vector.broadcast %cst_58 : f32 to vector<8x8xf32>
    %120 = arith.mulf %118, %119 : vector<8x8xf32>
    %cst_59 = arith.constant dense<0xFF800000> : vector<8xf32>
    %121 = vector.multi_reduction <maximumf>, %120, %cst_59 [1] : vector<8x8xf32> to vector<8xf32>
    %122 = vector.shape_cast %121 : vector<8xf32> to vector<8x1xf32>
    %123 = vector.broadcast %122 : vector<8x1xf32> to vector<8x8xf32>
    %124 = arith.subf %120, %123 : vector<8x8xf32>
    %125 = math.exp %124 : vector<8x8xf32>
    %cst_60 = arith.constant dense<0.000000e+00> : vector<8xf32>
    %126 = vector.multi_reduction <add>, %125, %cst_60 [1] : vector<8x8xf32> to vector<8xf32>
    %127 = vector.shape_cast %126 : vector<8xf32> to vector<8x1xf32>
    %128 = tpu.reciprocal %127 {approx = true} : vector<8x1xf32> -> vector<8x1xf32>
    %129 = vector.broadcast %128 : vector<8x1xf32> to vector<8x8xf32>
    %130 = arith.mulf %125, %129 : vector<8x8xf32>
    %cst_61 = arith.constant dense<0.000000e+00> : vector<8x8xf32>
    %131 = tpu.matmul %130, %117, %cst_61 {dimension_numbers = #tpu.dot_dimension_numbers<[1], [0], [0], [1], [0, 0, 1, 1], [], []>} : vector<8x8xf32>, vector<8x8xf32>, vector<8x8xf32> -> vector<8x8xf32>
    %132 = vector.extract_strided_slice %2 {offsets = [8, 0], sizes = [8, 32], strides = [1, 1]} : vector<32x32xf32> to vector<8x32xf32>
    %cst_62 = arith.constant dense<0.000000e+00> : vector<8x32xf32>
    %133 = tpu.matmul %131, %132, %cst_62 {dimension_numbers = #tpu.dot_dimension_numbers<[1], [0], [0], [1], [0, 0, 1, 1], [], []>} : vector<8x8xf32>, vector<8x32xf32>, vector<8x32xf32> -> vector<8x32xf32>
    %134 = arith.addf %114, %133 : vector<8x32xf32>
    %135 = vector.extract_strided_slice %15 {offsets = [8, 16], sizes = [8, 8], strides = [1, 1]} : vector<16x96xf32> to vector<8x8xf32>
    %136 = vector.extract_strided_slice %15 {offsets = [8, 48], sizes = [8, 8], strides = [1, 1]} : vector<16x96xf32> to vector<8x8xf32>
    %137 = vector.extract_strided_slice %15 {offsets = [8, 80], sizes = [8, 8], strides = [1, 1]} : vector<16x96xf32> to vector<8x8xf32>
    %cst_63 = arith.constant dense<0.000000e+00> : vector<8x8xf32>
    %138 = tpu.matmul %135, %136, %cst_63 {dimension_numbers = #tpu.dot_dimension_numbers<[1], [1], [0], [0], [0, 0, 1, 0], [], []>} : vector<8x8xf32>, vector<8x8xf32>, vector<8x8xf32> -> vector<8x8xf32>
    %cst_64 = arith.constant 0.353553385 : f32
    %139 = vector.broadcast %cst_64 : f32 to vector<8x8xf32>
    %140 = arith.mulf %138, %139 : vector<8x8xf32>
    %cst_65 = arith.constant dense<0xFF800000> : vector<8xf32>
    %141 = vector.multi_reduction <maximumf>, %140, %cst_65 [1] : vector<8x8xf32> to vector<8xf32>
    %142 = vector.shape_cast %141 : vector<8xf32> to vector<8x1xf32>
    %143 = vector.broadcast %142 : vector<8x1xf32> to vector<8x8xf32>
    %144 = arith.subf %140, %143 : vector<8x8xf32>
    %145 = math.exp %144 : vector<8x8xf32>
    %cst_66 = arith.constant dense<0.000000e+00> : vector<8xf32>
    %146 = vector.multi_reduction <add>, %145, %cst_66 [1] : vector<8x8xf32> to vector<8xf32>
    %147 = vector.shape_cast %146 : vector<8xf32> to vector<8x1xf32>
    %148 = tpu.reciprocal %147 {approx = true} : vector<8x1xf32> -> vector<8x1xf32>
    %149 = vector.broadcast %148 : vector<8x1xf32> to vector<8x8xf32>
    %150 = arith.mulf %145, %149 : vector<8x8xf32>
    %cst_67 = arith.constant dense<0.000000e+00> : vector<8x8xf32>
    %151 = tpu.matmul %150, %137, %cst_67 {dimension_numbers = #tpu.dot_dimension_numbers<[1], [0], [0], [1], [0, 0, 1, 1], [], []>} : vector<8x8xf32>, vector<8x8xf32>, vector<8x8xf32> -> vector<8x8xf32>
    %152 = vector.extract_strided_slice %2 {offsets = [16, 0], sizes = [8, 32], strides = [1, 1]} : vector<32x32xf32> to vector<8x32xf32>
    %cst_68 = arith.constant dense<0.000000e+00> : vector<8x32xf32>
    %153 = tpu.matmul %151, %152, %cst_68 {dimension_numbers = #tpu.dot_dimension_numbers<[1], [0], [0], [1], [0, 0, 1, 1], [], []>} : vector<8x8xf32>, vector<8x32xf32>, vector<8x32xf32> -> vector<8x32xf32>
    %154 = arith.addf %134, %153 : vector<8x32xf32>
    %155 = vector.extract_strided_slice %15 {offsets = [8, 24], sizes = [8, 8], strides = [1, 1]} : vector<16x96xf32> to vector<8x8xf32>
    %156 = vector.extract_strided_slice %15 {offsets = [8, 56], sizes = [8, 8], strides = [1, 1]} : vector<16x96xf32> to vector<8x8xf32>
    %157 = vector.extract_strided_slice %15 {offsets = [8, 88], sizes = [8, 8], strides = [1, 1]} : vector<16x96xf32> to vector<8x8xf32>
    %cst_69 = arith.constant dense<0.000000e+00> : vector<8x8xf32>
    %158 = tpu.matmul %155, %156, %cst_69 {dimension_numbers = #tpu.dot_dimension_numbers<[1], [1], [0], [0], [0, 0, 1, 0], [], []>} : vector<8x8xf32>, vector<8x8xf32>, vector<8x8xf32> -> vector<8x8xf32>
    %cst_70 = arith.constant 0.353553385 : f32
    %159 = vector.broadcast %cst_70 : f32 to vector<8x8xf32>
    %160 = arith.mulf %158, %159 : vector<8x8xf32>
    %cst_71 = arith.constant dense<0xFF800000> : vector<8xf32>
    %161 = vector.multi_reduction <maximumf>, %160, %cst_71 [1] : vector<8x8xf32> to vector<8xf32>
    %162 = vector.shape_cast %161 : vector<8xf32> to vector<8x1xf32>
    %163 = vector.broadcast %162 : vector<8x1xf32> to vector<8x8xf32>
    %164 = arith.subf %160, %163 : vector<8x8xf32>
    %165 = math.exp %164 : vector<8x8xf32>
    %cst_72 = arith.constant dense<0.000000e+00> : vector<8xf32>
    %166 = vector.multi_reduction <add>, %165, %cst_72 [1] : vector<8x8xf32> to vector<8xf32>
    %167 = vector.shape_cast %166 : vector<8xf32> to vector<8x1xf32>
    %168 = tpu.reciprocal %167 {approx = true} : vector<8x1xf32> -> vector<8x1xf32>
    %169 = vector.broadcast %168 : vector<8x1xf32> to vector<8x8xf32>
    %170 = arith.mulf %165, %169 : vector<8x8xf32>
    %cst_73 = arith.constant dense<0.000000e+00> : vector<8x8xf32>
    %171 = tpu.matmul %170, %157, %cst_73 {dimension_numbers = #tpu.dot_dimension_numbers<[1], [0], [0], [1], [0, 0, 1, 1], [], []>} : vector<8x8xf32>, vector<8x8xf32>, vector<8x8xf32> -> vector<8x8xf32>
    %172 = vector.extract_strided_slice %2 {offsets = [24, 0], sizes = [8, 32], strides = [1, 1]} : vector<32x32xf32> to vector<8x32xf32>
    %cst_74 = arith.constant dense<0.000000e+00> : vector<8x32xf32>
    %173 = tpu.matmul %171, %172, %cst_74 {dimension_numbers = #tpu.dot_dimension_numbers<[1], [0], [0], [1], [0, 0, 1, 1], [], []>} : vector<8x8xf32>, vector<8x32xf32>, vector<8x32xf32> -> vector<8x32xf32>
    %174 = arith.addf %154, %173 : vector<8x32xf32>
    %c8 = arith.constant 8 : index
    %c0_75 = arith.constant 0 : index
    %175 = vector.load %arg15[%c8, %c0_75] : memref<16x32xf32, #tpu.memory_space<vmem>>, vector<8x32xf32>
    tpu.vector_store %arg15[%c8, %c0_75], %174 {strides = array<i32>} : memref<16x32xf32, #tpu.memory_space<vmem>>, vector<8x32xf32>,
    %c0_76 = arith.constant 0 : index
    %c0_77 = arith.constant 0 : index
    %176 = vector.load %arg15[%c0_76, %c0_77] : memref<16x32xf32, #tpu.memory_space<vmem>>, vector<16x32xf32>
    %177 = vector.broadcast %3 : vector<1x32xf32> to vector<16x32xf32>
    %178 = arith.addf %176, %177 : vector<16x32xf32>
    %179 = arith.addf %12, %178 : vector<16x32xf32>
    %cst_78 = arith.constant dense<0.000000e+00> : vector<16xf32>
    %180 = vector.multi_reduction <add>, %179, %cst_78 [1] : vector<16x32xf32> to vector<16xf32>
    %181 = vector.shape_cast %180 : vector<16xf32> to vector<16x1xf32>
    %cst_79 = arith.constant 3.200000e+01 : f32
    %182 = vector.broadcast %cst_79 : f32 to vector<16x1xf32>
    %183 = arith.divf %181, %182 : vector<16x1xf32>
    %184 = vector.broadcast %183 : vector<16x1xf32> to vector<16x32xf32>
    %185 = arith.subf %179, %184 : vector<16x32xf32>
    %186 = arith.mulf %185, %185 : vector<16x32xf32>
    %cst_80 = arith.constant dense<0.000000e+00> : vector<16xf32>
    %187 = vector.multi_reduction <add>, %186, %cst_80 [1] : vector<16x32xf32> to vector<16xf32>
    %188 = vector.shape_cast %187 : vector<16xf32> to vector<16x1xf32>
    %cst_81 = arith.constant 3.200000e+01 : f32
    %189 = vector.broadcast %cst_81 : f32 to vector<16x1xf32>
    %190 = arith.divf %188, %189 : vector<16x1xf32>
    %191 = vector.broadcast %183 : vector<16x1xf32> to vector<16x32xf32>
    %192 = arith.subf %179, %191 : vector<16x32xf32>
    %cst_82 = arith.constant 9.99999974E-6 : f32
    %193 = vector.broadcast %cst_82 : f32 to vector<16x1xf32>
    %194 = arith.addf %190, %193 : vector<16x1xf32>
    %195 = math.rsqrt %194 : vector<16x1xf32>
    %196 = vector.broadcast %195 : vector<16x1xf32> to vector<16x32xf32>
    %197 = arith.mulf %192, %196 : vector<16x32xf32>
    %198 = vector.broadcast %4 : vector<1x32xf32> to vector<16x32xf32>
    %199 = arith.mulf %197, %198 : vector<16x32xf32>
    %200 = vector.broadcast %5 : vector<1x32xf32> to vector<16x32xf32>
    %201 = arith.addf %199, %200 : vector<16x32xf32>
    %cst_83 = arith.constant dense<0.000000e+00> : vector<16x64xf32>
    %202 = tpu.matmul %201, %6, %cst_83 {dimension_numbers = #tpu.dot_dimension_numbers<[1], [0], [0], [1], [0, 0, 1, 1], [], []>} : vector<16x32xf32>, vector<32x64xf32>, vector<16x64xf32> -> vector<16x64xf32>
    %203 = vector.broadcast %7 : vector<1x64xf32> to vector<16x64xf32>
    %204 = arith.addf %202, %203 : vector<16x64xf32>
    %cst_84 = arith.constant 0.000000e+00 : f32
    %205 = vector.broadcast %cst_84 : f32 to vector<16x64xf32>
    %206 = arith.maximumf %204, %205 : vector<16x64xf32>
    %cst_85 = arith.constant dense<0.000000e+00> : vector<16x32xf32>
    %207 = tpu.matmul %206, %8, %cst_85 {dimension_numbers = #tpu.dot_dimension_numbers<[1], [0], [0], [1], [0, 0, 1, 1], [], []>} : vector<16x64xf32>, vector<64x32xf32>, vector<16x32xf32> -> vector<16x32xf32>
    %208 = vector.broadcast %9 : vector<1x32xf32> to vector<16x32xf32>
    %209 = arith.addf %207, %208 : vector<16x32xf32>
    %210 = arith.addf %201, %209 : vector<16x32xf32>
    %cst_86 = arith.constant dense<0.000000e+00> : vector<16xf32>
    %211 = vector.multi_reduction <add>, %210, %cst_86 [1] : vector<16x32xf32> to vector<16xf32>
    %212 = vector.shape_cast %211 : vector<16xf32> to vector<16x1xf32>
    %cst_87 = arith.constant 3.200000e+01 : f32
    %213 = vector.broadcast %cst_87 : f32 to vector<16x1xf32>
    %214 = arith.divf %212, %213 : vector<16x1xf32>
    %215 = vector.broadcast %214 : vector<16x1xf32> to vector<16x32xf32>
    %216 = arith.subf %210, %215 : vector<16x32xf32>
    %217 = arith.mulf %216, %216 : vector<16x32xf32>
    %cst_88 = arith.constant dense<0.000000e+00> : vector<16xf32>
    %218 = vector.multi_reduction <add>, %217, %cst_88 [1] : vector<16x32xf32> to vector<16xf32>
    %219 = vector.shape_cast %218 : vector<16xf32> to vector<16x1xf32>
    %cst_89 = arith.constant 3.200000e+01 : f32
    %220 = vector.broadcast %cst_89 : f32 to vector<16x1xf32>
    %221 = arith.divf %219, %220 : vector<16x1xf32>
    %222 = vector.broadcast %214 : vector<16x1xf32> to vector<16x32xf32>
    %223 = arith.subf %210, %222 : vector<16x32xf32>
    %cst_90 = arith.constant 9.99999974E-6 : f32
    %224 = vector.broadcast %cst_90 : f32 to vector<16x1xf32>
    %225 = arith.addf %221, %224 : vector<16x1xf32>
    %226 = math.rsqrt %225 : vector<16x1xf32>
    %227 = vector.broadcast %226 : vector<16x1xf32> to vector<16x32xf32>
    %228 = arith.mulf %223, %227 : vector<16x32xf32>
    %229 = vector.broadcast %10 : vector<1x32xf32> to vector<16x32xf32>
    %230 = arith.mulf %228, %229 : vector<16x32xf32>
    %231 = vector.broadcast %11 : vector<1x32xf32> to vector<16x32xf32>
    %232 = arith.addf %230, %231 : vector<16x32xf32>
    %c0_91 = arith.constant 0 : index
    %c0_92 = arith.constant 0 : index
    %233 = vector.load %arg14[%c0_91, %c0_92] : memref<16x32xf32, #tpu.memory_space<vmem>>, vector<16x32xf32>
    tpu.vector_store %arg14[%c0_91, %c0_92], %232 {strides = array<i32>} : memref<16x32xf32, #tpu.memory_space<vmem>>, vector<16x32xf32>,
    return
  }
  func.func @transform_0(%arg0: i32) -> (i32, i32) {
    %c0_i32 = arith.constant 0 : i32
    %c0_i32_0 = arith.constant 0 : i32
    return %arg0, %c0_i32 : i32, i32
  }
  func.func @transform_1(%arg0: i32) -> (i32, i32) {
    %c0_i32 = arith.constant 0 : i32
    %c0_i32_0 = arith.constant 0 : i32
    %c0_i32_1 = arith.constant 0 : i32
    return %c0_i32, %c0_i32_0 : i32, i32
  }
  func.func @transform_2(%arg0: i32) -> (i32, i32) {
    %c0_i32 = arith.constant 0 : i32
    %c0_i32_0 = arith.constant 0 : i32
    %c0_i32_1 = arith.constant 0 : i32
    return %c0_i32, %c0_i32_0 : i32, i32
  }
  func.func @transform_3(%arg0: i32) -> (i32, i32) {
    %c0_i32 = arith.constant 0 : i32
    %c0_i32_0 = arith.constant 0 : i32
    %c0_i32_1 = arith.constant 0 : i32
    return %c0_i32, %c0_i32_0 : i32, i32
  }
  func.func @transform_4(%arg0: i32) -> (i32, i32) {
    %c0_i32 = arith.constant 0 : i32
    %c0_i32_0 = arith.constant 0 : i32
    %c0_i32_1 = arith.constant 0 : i32
    return %c0_i32, %c0_i32_0 : i32, i32
  }
  func.func @transform_5(%arg0: i32) -> (i32, i32) {
    %c0_i32 = arith.constant 0 : i32
    %c0_i32_0 = arith.constant 0 : i32
    %c0_i32_1 = arith.constant 0 : i32
    return %c0_i32, %c0_i32_0 : i32, i32
  }
  func.func @transform_6(%arg0: i32) -> (i32, i32) {
    %c0_i32 = arith.constant 0 : i32
    %c0_i32_0 = arith.constant 0 : i32
    %c0_i32_1 = arith.constant 0 : i32
    return %c0_i32, %c0_i32_0 : i32, i32
  }
  func.func @transform_7(%arg0: i32) -> (i32, i32) {
    %c0_i32 = arith.constant 0 : i32
    %c0_i32_0 = arith.constant 0 : i32
    %c0_i32_1 = arith.constant 0 : i32
    return %c0_i32, %c0_i32_0 : i32, i32
  }
  func.func @transform_8(%arg0: i32) -> (i32, i32) {
    %c0_i32 = arith.constant 0 : i32
    %c0_i32_0 = arith.constant 0 : i32
    %c0_i32_1 = arith.constant 0 : i32
    return %c0_i32, %c0_i32_0 : i32, i32
  }
  func.func @transform_9(%arg0: i32) -> (i32, i32) {
    %c0_i32 = arith.constant 0 : i32
    %c0_i32_0 = arith.constant 0 : i32
    %c0_i32_1 = arith.constant 0 : i32
    return %c0_i32, %c0_i32_0 : i32, i32
  }
  func.func @transform_10(%arg0: i32) -> (i32, i32) {
    %c0_i32 = arith.constant 0 : i32
    %c0_i32_0 = arith.constant 0 : i32
    %c0_i32_1 = arith.constant 0 : i32
    return %c0_i32, %c0_i32_0 : i32, i32
  }
  func.func @transform_11(%arg0: i32) -> (i32, i32) {
    %c0_i32 = arith.constant 0 : i32
    %c0_i32_0 = arith.constant 0 : i32
    %c0_i32_1 = arith.constant 0 : i32
    return %c0_i32, %c0_i32_0 : i32, i32
  }
  func.func @transform_12(%arg0: i32) -> (i32, i32) {
    %c0_i32 = arith.constant 0 : i32
    %c0_i32_0 = arith.constant 0 : i32
    %c0_i32_1 = arith.constant 0 : i32
    return %c0_i32, %c0_i32_0 : i32, i32
  }
  func.func @transform_13(%arg0: i32) -> (i32, i32) {
    %c0_i32 = arith.constant 0 : i32
    %c0_i32_0 = arith.constant 0 : i32
    return %arg0, %c0_i32 : i32, i32
  }
}

</mosaic_0001>

<bundles_post_ra>
// kernel: skip_transformer_encoder_forward.3
= control target key start
LH: loop header
LB: loop body
LE: loop exit
PB: predicated region body
PF: predicated region fallthrough
CT: control target
= control target key end

     0   :  { %18 = vsyncpa [#allocation4], 0  ;;  %s1173_s28 = smov [#allocation3]   ;;  %s1174_s30 = smov 128   ;;  %s1509_s0 = inlined_call_operand.vmem [shape: f32[16,32], index: 0, kind: input, shape index: {}]   ;;  %s1510_s1 = inlined_call_operand.vmem [shape: f32[32,96], index: 1, kind: input, shape index: {}]   ;;  %s1511_s2 = inlined_call_operand.vmem [shape: f32[1,96], index: 2, kind: input, shape index: {}]   ;;  %s1512_s3 = inlined_call_operand.vmem [shape: f32[32,32], index: 3, kind: input, shape index: {}]   ;;  %s1513_s4 = inlined_call_operand.vmem [shape: f32[1,32], index: 4, kind: input, shape index: {}]   ;;  %s1514_s5 = inlined_call_operand.vmem [shape: f32[1,32], index: 5, kind: input, shape index: {}]   ;;  %s1515_s6 = inlined_call_operand.vmem [shape: f32[1,32], index: 6, kind: input, shape index: {}]   ;;  %s1516_s7 = inlined_call_operand.hbm [shape: f32[32,64], index: 7, kind: input, shape index: {}]   ;;  %s1517_s8 = inlined_call_operand.vmem [shape: f32[1,64], index: 8, kind: input, shape index: {}]   ;;  %s1518_s9 = inlined_call_operand.vmem [shape: f32[64,32], index: 9, kind: input, shape index: {}]   ;;  %s1519_s10 = inlined_call_operand.vmem [shape: f32[1,32], index: 10, kind: input, shape index: {}]   ;;  %s1520_s11 = inlined_call_operand.vmem [shape: f32[1,32], index: 11, kind: input, shape index: {}]   ;;  %s1521_s12 = inlined_call_operand.vmem [shape: f32[1,32], index: 12, kind: input, shape index: {}]   ;;  %s1522_s13 = inlined_call_operand.vmem [shape: f32[16,32], index: 13, kind: output, shape index: {}]  }
   0x1   :  { %s37_s27 = sshll.u32 %s1516_s7, 4  ;;  %s39_s29 = sshll.u32 %s1173_s28, 4  ;;  %s38_s27 = int_to_ptr.hbm [resolvable:$true] %s37_s27  ;;  %s40_s29 = int_to_ptr.vmem [resolvable:$true] %s39_s29 }
   0x2   :  { %s1175_s14 = smov 8  }
   0x3   :  { %45 = dma.hbm_to_vmem [thread:$0]  %s38_s27, 512, %s40_s29, [#allocation4], %s1174_s30, %s1174_s30, %s1175_s14  }
   0x4   :  { %1171 = dma.done.wait [#allocation4], 512  }
   0x5   :  { %1172 = vsyncadd [#allocation4], 4294966784  ;;  %v63_v0 = vld [vmem:[%s1510_s1 + $0x18] sm:$0xff]  ;;  %v62_v1 = vld [vmem:[%s1510_s1 + $0x10] sm:$0xff]  ;;  %vm93_vm0 = vcmask 261120   ;;  %s1177_s26 = smov 96  }
   0x6   :  { %112 = vmatpush.msra.mxu0 %v63_v0  ;;  %1078 = vmatpush.msra.mxu2 %v63_v0  ;;  %v61_v2 = vld [vmem:[%s1510_s1 + $0x8] sm:$0xff]  ;;  %v60_v3 = vld [vmem:[%s1510_s1] sm:$0xff]  ;;  %s1176_s1 = smov 120   ;;  %s1178_s27 = smov 88   ;;  %vm126_vm1 = vcmask 64512   ;;  %v67_v44 = vld [vmem:[%s1512_s3 + $0x10] sm:$0xff] }
   0x7   :  { %v1276_v4 = vld [vmem:[%s1509_s0] sm:$0xff]  ;;  %v1293_v8 = vld [vmem:[%s1509_s0 + $0x8] sm:$0xff]  ;;  %s1179_s0 = smov 112   ;;  %s1181_s30 = smov 64   ;;  %vm947_vm6 = vcmask 523264  }
   0x8   :  { %113 = vmatpush.msra.mxu0 %v62_v1  ;;  %1079 = vmatpush.msra.mxu2 %v62_v1  ;;  %v1097_v5 = vld [vmem:[%s1511_s2] ss:$0 sm:$0xff]  ;;  %s1180_s2 = smov 72   ;;  %s1182_s14 = smov 56   ;;  %v66_v41 = vld [vmem:[%s1512_s3 + $0x8] sm:$0xff] }
   0x9   :  { %s1183_s15 = smov 80   ;;  %v65_v40 = vld [vmem:[%s1512_s3] sm:$0xff]  ;;  %s1184_s21 = smov 48  }
   0xa   :  { %114 = vmatpush.msra.mxu0 %v61_v2  ;;  %1080 = vmatpush.msra.mxu2 %v61_v2  ;;  %s1185_s22 = smov 104   ;;  %s1186_s23 = smov 40  }
   0xc   :  { %115 = vmatpush.msra.mxu0 %v60_v3  ;;  %1081 = vmatpush.msra.mxu2 %v60_v3 }
   0xd   :  { %1040 = vmatmul.msk.f32.vlgmr.msra.gmra.mxu0 %vm93_vm0, %v1276_v4  ;;  %1041 = vmatmul.msk.f32.vlgmr.msra.gmra.mxu2 %vm93_vm0, %v1293_v8 }
  0x8a   :  { %v117_v6 = vpop.f32.mrf.mxu0 }
  0x8b   :  { %v1283_v7 = vadd.f32 %v1097_v5, %v117_v6 }
  0x8d   :  { %189 = vrot.lane.b32.xlu1 %v1283_v7, %s1176_s1  ;;  %124 = vrot.lane.b32.xlu0 %v1283_v7, %s1177_s26 }
  0x90   :  { %v120_v18 = vpop.f32.mrf.mxu2 }
  0x91   :  { %v1306_v19 = vadd.f32 %v1097_v5, %v120_v18 }
  0x95   :  { %191 = vrot.lane.b32.xlu0 %v1283_v7, %s1178_s27 }
  0xff   :  { %v125_v9 = vpop.permute.xlu0 %124  ;;  %v190_v11 = vpop.permute.xlu1 %189 }
 0x100   :  { %1042 = vmatpush.xpose.msk.msra.mxu1 %vm126_vm1, %v125_v9 }
 0x103   :  { %1043 = vmatmul.msk.f32.vlgmr.msra.gmra.mxu1 %vm126_vm1, %v1283_v7 }
 0x104   :  { %273 = vmatpush.msrb.mxu1 %v66_v41 }
 0x107   :  { %v192_v10 = vpop.permute.xlu0 %191 }
 0x108   :  { %1045 = vmatpush.xpose.msk.msra.mxu3 %vm126_vm1, %v192_v10 }
 0x10b   :  { %1046 = vmatmul.msk.f32.vlgmr.msra.gmra.mxu3 %vm126_vm1, %v190_v11 }
 0x10c   :  { %296 = vmatpush.msrb.mxu3 %v65_v40 }
 0x10e   :  { %385 = vmatpush.msra.mxu3 %v67_v44 }
 0x180   :  { %v148_v12 = vpop.f32.mrf.mxu1 }
 0x181   :  { %v151_v13 = vmul.f32 0.35355338, %v148_v12 }
 0x183   :  { %v152_v14 = vsel %vm126_vm1, %v151_v13, -inf }
 0x184   :  { %153 = vmax.xlane.f32.xlu1 %v152_v14 }
 0x18e   :  { %v214_v15 = vpop.f32.mrf.mxu3 }
 0x18f   :  { %v217_v16 = vmul.f32 0.35355338, %v214_v15 }
 0x191   :  { %v218_v17 = vsel %vm126_vm1, %v217_v16, -inf }
 0x192   :  { %219 = vmax.xlane.f32.xlu2 %v218_v17 }
 0x19d   :  { %301 = vrot.lane.b32.xlu1 %v1283_v7, %s1179_s0 }
 0x1a5   :  { %483 = vrot.lane.b32.xlu1 %v1306_v19, %s1177_s26 }
 0x1ad   :  { %393 = vrot.lane.b32.xlu1 %v1283_v7, %s1180_s2 }
 0x1f7   :  { %v154_v20 = vpop.xlane.xlu1 %153 }
 0x1f8   :  { %v155_v21 = vsub.f32 %v151_v13, %v154_v20 }
 0x1fa   :  { %v156_v22 = vmul.f32 1.442695, %v155_v21 }
 0x1fc   :  { %1105 = vpow2.f32 %v156_v22 }
 0x202   :  { %v1106_v23 = vpop.eup %1105 }
 0x203   :  { %v158_v24 = vsel %vm126_vm1, %v1106_v23, 0.0 }
 0x204   :  { %159 = vadd.xlane.f32.xlu2 %v158_v24 }
 0x205   :  { %v220_v25 = vpop.xlane.xlu2 %219 }
 0x206   :  { %v221_v26 = vsub.f32 %v217_v16, %v220_v25 }
 0x208   :  { %v222_v27 = vmul.f32 1.442695, %v221_v26 }
 0x20a   :  { %1107 = vpow2.f32 %v222_v27 }
 0x20f   :  { %v302_v39 = vpop.permute.xlu1 %301 }
 0x210   :  { %v1108_v28 = vpop.eup %1107 }
 0x211   :  { %v224_v29 = vsel %vm126_vm1, %v1108_v28, 0.0 }
 0x212   :  { %225 = vadd.xlane.f32.xlu0 %v224_v29 }
 0x217   :  { %v484_v45 = vpop.permute.xlu1 %483 }
 0x21c   :  { %163 = vrot.lane.b32.xlu2 %v1283_v7, %s1181_s30 }
 0x21f   :  { %v394_v59 = vpop.permute.xlu1 %393 }
 0x224   :  { %229 = vrot.lane.b32.xlu2 %v1283_v7, %s1182_s14 }
 0x22c   :  { %303 = vrot.lane.b32.xlu2 %v1283_v7, %s1183_s15 }
 0x277   :  { %v160_v30 = vpop.xlane.xlu2 %159 }
 0x278   :  { %1109 = vrcp.f32 %v160_v30 }
 0x27e   :  { %v1110_v31 = vpop.eup %1109 }
 0x27f   :  { %v164_v32 = vpop.permute.xlu2 %163  ;;  %v162_v33 = vmul.f32 %v1110_v31, %v1106_v23 }
 0x280   :  { %184 = vmatpush.msrb.mxu2 %v164_v32  ;;  %v1383_v32 = vld [vmem:[%s1512_s3 + $0x18] sm:$0xff] }
 0x281   :  { %1044 = vmatmul.msk.f32.vlgmr.msrb.gmra.mxu2 %vm126_vm1, %v162_v33 }
 0x285   :  { %v226_v34 = vpop.xlane.xlu0 %225 }
 0x286   :  { %1111 = vrcp.f32 %v226_v34 }
 0x287   :  { %v230_v35 = vpop.permute.xlu2 %229 }
 0x288   :  { %250 = vmatpush.msra.mxu2 %v230_v35 }
 0x28c   :  { %v1112_v36 = vpop.eup %1111 }
 0x28d   :  { %v228_v37 = vmul.f32 %v1112_v36, %v1108_v28 }
 0x28f   :  { %1047 = vmatmul.msk.f32.vlgmr.msra.gmra.mxu2 %vm126_vm1, %v228_v37  ;;  %v304_v38 = vpop.permute.xlu2 %303 }
 0x290   :  { %1050 = vmatpush.xpose.msk.msrb.mxu2 %vm126_vm1, %v304_v38 }
 0x297   :  { %1051 = vmatmul.msk.f32.vlgmr.msrb.gmra.mxu2 %vm126_vm1, %v302_v39 }
 0x304   :  { %v186_v42 = vpop.f32.mrf.mxu2 }
 0x305   :  { %1049 = vmatmul.msk.f32.vlgmr.msrb.gmra.mxu3 %vm126_vm1, %v186_v42 }
 0x306   :  { %1058 = vmatpush.xpose.msk.msrb.mxu3 %vm126_vm1, %v484_v45 }
 0x312   :  { %v252_v43 = vpop.f32.mrf.mxu2 }
 0x313   :  { %1048 = vmatmul.msk.f32.vlgmr.msrb.gmra.mxu1 %vm126_vm1, %v252_v43 }
 0x31a   :  { %v326_v46 = vpop.f32.mrf.mxu2 }
 0x31b   :  { %v329_v47 = vmul.f32 0.35355338, %v326_v46 }
 0x31d   :  { %v330_v48 = vsel %vm126_vm1, %v329_v47, -inf }
 0x31e   :  { %331 = vmax.xlane.f32.xlu2 %v330_v48 }
 0x336   :  { %521 = vrot.lane.b32.xlu2 %v1306_v19, %s1181_s30 }
 0x388   :  { %v1354_v2 = vpop.f32.mrf.mxu3 }
 0x390   :  { %v1346_v61 = vpop.f32.mrf.mxu1 }
 0x391   :  { %v332_v49 = vpop.xlane.xlu2 %331  ;;  %v299_v46 = vadd.f32 %v1354_v2, %v1346_v61 }
 0x392   :  { %v333_v50 = vsub.f32 %v329_v47, %v332_v49 }
 0x394   :  { %v334_v51 = vmul.f32 1.442695, %v333_v50 }
 0x396   :  { %1113 = vpow2.f32 %v334_v51 }
 0x399   :  { %v522_v52 = vpop.permute.xlu2 %521 }
 0x39a   :  { %542 = vmatpush.msrb.mxu0 %v522_v52 }
 0x39c   :  { %654 = vmatpush.msra.mxu0 %v65_v40  ;;  %v1114_v53 = vpop.eup %1113 }
 0x39d   :  { %v336_v54 = vsel %vm126_vm1, %v1114_v53, 0.0 }
 0x39e   :  { %337 = vadd.xlane.f32.xlu0 %v336_v54 }
 0x3b2   :  { %341 = vrot.lane.b32.xlu0 %v1283_v7, %s1184_s21 }
 0x3ba   :  { %391 = vrot.lane.b32.xlu0 %v1283_v7, %s1185_s22 }
 0x411   :  { %v338_v55 = vpop.xlane.xlu0 %337 }
 0x412   :  { %1115 = vrcp.f32 %v338_v55 }
 0x418   :  { %v1116_v56 = vpop.eup %1115 }
 0x419   :  { %v340_v57 = vmul.f32 %v1116_v56, %v1114_v53 }
 0x424   :  { %v342_v58 = vpop.permute.xlu0 %341 }
 0x425   :  { %362 = vmatpush.msra.mxu1 %v342_v58 }
 0x426   :  { %1052 = vmatmul.msk.f32.vlgmr.msra.gmra.mxu1 %vm126_vm1, %v340_v57 }
 0x427   :  { %1054 = vmatpush.xpose.msk.msrb.mxu1 %vm126_vm1, %v394_v59 }
 0x42b   :  { %475 = vmatpush.msra.mxu1 %v1383_v32 }
 0x42c   :  { %v392_v60 = vpop.permute.xlu0 %391 }
 0x42e   :  { %1055 = vmatmul.msk.f32.vlgmr.msrb.gmra.mxu1 %vm126_vm1, %v392_v60  ;;  %v1407_v60 = vld [vmem:[%s1513_s4] ss:$0 sm:$0xff] }
 0x4a3   :  { %v364_v62 = vpop.f32.mrf.mxu1 }
 0x4a4   :  { %1053 = vmatmul.msk.f32.vlgmr.msra.gmra.mxu3 %vm126_vm1, %v364_v62 }
 0x4a5   :  { %631 = vmatpush.msra.mxu3 %v66_v41 }
 0x4ab   :  { %v416_v63 = vpop.f32.mrf.mxu1 }
 0x4ac   :  { %v419_v0 = vmul.f32 0.35355338, %v416_v63  ;;  %1059 = vmatmul.msk.f32.vlgmr.msrb.gmra.mxu3 %vm126_vm1, %v1306_v19 }
 0x4ad   :  { %743 = vmatpush.msrb.mxu3 %v67_v44 }
 0x4ae   :  { %v420_v1 = vsel %vm126_vm1, %v419_v0, -inf }
 0x4af   :  { %421 = vmax.xlane.f32.xlu2 %v420_v1 }
 0x4c7   :  { %661 = vrot.lane.b32.xlu2 %v1306_v19, %s1183_s15 }
 0x522   :  { %v422_v3 = vpop.xlane.xlu2 %421 }
 0x523   :  { %v423_v6 = vsub.f32 %v419_v0, %v422_v3 }
 0x525   :  { %v424_v9 = vmul.f32 1.442695, %v423_v6 }
 0x527   :  { %v1356_v5 = vpop.f32.mrf.mxu3  ;;  %1117 = vpow2.f32 %v424_v9 }
 0x528   :  { %v390_v47 = vadd.f32 %v1356_v5, %v299_v46 }
 0x52a   :  { %v662_v29 = vpop.permute.xlu2 %661 }
 0x52d   :  { %v1118_v13 = vpop.eup %1117 }
 0x52e   :  { %v426_v14 = vsel %vm126_vm1, %v1118_v13, 0.0 }
 0x52f   :  { %v506_v10 = vpop.f32.mrf.mxu3 }
 0x530   :  { %v509_v11 = vmul.f32 0.35355338, %v506_v10 }
 0x532   :  { %v510_v12 = vsel %vm126_vm1, %v509_v11, -inf }
 0x533   :  { %511 = vmax.xlane.f32.xlu1 %v510_v12 }
 0x53b   :  { %427 = vadd.xlane.f32.xlu1 %v426_v14 }
 0x554   :  { %549 = vrot.lane.b32.xlu1 %v1306_v19, %s1178_s27 }
 0x55c   :  { %751 = vrot.lane.b32.xlu1 %v1306_v19, %s1180_s2 }
 0x5a6   :  { %v512_v15 = vpop.xlane.xlu1 %511 }
 0x5a7   :  { %v513_v16 = vsub.f32 %v509_v11, %v512_v15 }
 0x5a9   :  { %v514_v17 = vmul.f32 1.442695, %v513_v16  ;;  %v1187_v16 = vmov 32.0  }
 0x5ab   :  { %1119 = vpow2.f32 %v514_v17 }
 0x5ae   :  { %v428_v21 = vpop.xlane.xlu1 %427 }
 0x5b1   :  { %v1120_v18 = vpop.eup %1119 }
 0x5b2   :  { %v516_v20 = vsel %vm126_vm1, %v1120_v18, 0.0 }
 0x5b3   :  { %517 = vadd.xlane.f32.xlu0 %v516_v20 }
 0x5c6   :  { %v550_v22 = vpop.permute.xlu1 %549 }
 0x5c7   :  { %431 = vrot.lane.b32.xlu0 %v1283_v7, %s1186_s23 }
 0x5ce   :  { %v752_v26 = vpop.permute.xlu1 %751 }
 0x5cf   :  { %547 = vrot.lane.b32.xlu0 %v1306_v19, %s1176_s1 }
 0x5d7   :  { %659 = vrot.lane.b32.xlu0 %v1306_v19, %s1179_s0 }
 0x5df   :  { %749 = vrot.lane.b32.xlu0 %v1306_v19, %s1185_s22 }
 0x626   :  { %v518_v23 = vpop.xlane.xlu0 %517 }
 0x627   :  { %1121 = vrcp.f32 %v518_v23 }
 0x628   :  { %1123 = vrcp.f32 %v428_v21 }
 0x62d   :  { %v1122_v24 = vpop.eup %1121 }
 0x62e   :  { %v520_v25 = vmul.f32 %v1122_v24, %v1120_v18  ;;  %v1124_v7 = vpop.eup %1123 }
 0x62f   :  { %v430_v27 = vmul.f32 %v1124_v7, %v1118_v13 }
 0x630   :  { %1060 = vmatmul.msk.f32.vlgmr.msrb.gmra.mxu0 %vm126_vm1, %v520_v25 }
 0x631   :  { %1070 = vmatpush.xpose.msk.msrb.mxu0 %vm126_vm1, %v752_v26 }
 0x639   :  { %v432_v28 = vpop.permute.xlu0 %431 }
 0x63a   :  { %452 = vmatpush.msra.mxu2 %v432_v28 }
 0x63b   :  { %1056 = vmatmul.msk.f32.vlgmr.msra.gmra.mxu2 %vm126_vm1, %v430_v27 }
 0x63c   :  { %1061 = vmatpush.xpose.msk.msrb.mxu2 %vm126_vm1, %v550_v22 }
 0x640   :  { %1066 = vmatpush.xpose.msk.msra.mxu2 %vm126_vm1, %v662_v29 }
 0x641   :  { %v548_v30 = vpop.permute.xlu0 %547 }
 0x643   :  { %1062 = vmatmul.msk.f32.vlgmr.msrb.gmra.mxu2 %vm126_vm1, %v548_v30 }
 0x649   :  { %v660_v31 = vpop.permute.xlu0 %659 }
 0x64b   :  { %1067 = vmatmul.msk.f32.vlgmr.msra.gmra.mxu2 %vm126_vm1, %v660_v31 }
 0x651   :  { %v750_v34 = vpop.permute.xlu0 %749 }
 0x6ad   :  { %v544_v33 = vpop.f32.mrf.mxu0 }
 0x6ae   :  { %1065 = vmatmul.msk.f32.vlgmr.msra.gmra.mxu0 %vm126_vm1, %v544_v33  ;;  %v75_v33 = vld [vmem:[#allocation3 + $0x18] sm:$0xff] }
 0x6b6   :  { %1071 = vmatmul.msk.f32.vlgmr.msrb.gmra.mxu0 %vm126_vm1, %v750_v34  ;;  %v74_v34 = vld [vmem:[#allocation3 + $0x10] sm:$0xff] }
 0x6be   :  { %v454_v35 = vpop.f32.mrf.mxu2 }
 0x6bf   :  { %1057 = vmatmul.msk.f32.vlgmr.msra.gmra.mxu1 %vm126_vm1, %v454_v35  ;;  %v73_v35 = vld [vmem:[#allocation3 + $0x8] sm:$0xff] }
 0x6c6   :  { %v572_v36 = vpop.f32.mrf.mxu2 }
 0x6c7   :  { %v575_v37 = vmul.f32 0.35355338, %v572_v36  ;;  %v72_v36 = vld [vmem:[#allocation3] sm:$0xff] }
 0x6c9   :  { %v576_v38 = vsel %vm126_vm1, %v575_v37, -inf }
 0x6ca   :  { %577 = vmax.xlane.f32.xlu1 %v576_v38 }
 0x6ce   :  { %v684_v39 = vpop.f32.mrf.mxu2 }
 0x6cf   :  { %v687_v40 = vmul.f32 0.35355338, %v684_v39 }
 0x6d1   :  { %v688_v41 = vsel %vm126_vm1, %v687_v40, -inf }
 0x6d2   :  { %689 = vmax.xlane.f32.xlu0 %v688_v41 }
 0x72b   :  { %v1391_v42 = vpop.f32.mrf.mxu0 }
 0x733   :  { %v774_v43 = vpop.f32.mrf.mxu0 }
 0x734   :  { %v777_v44 = vmul.f32 0.35355338, %v774_v43 }
 0x736   :  { %v778_v45 = vsel %vm126_vm1, %v777_v44, -inf }
 0x737   :  { %779 = vmax.xlane.f32.xlu2 %v778_v45 }
 0x73c   :  { %v477_v48 = vpop.f32.mrf.mxu1 }
 0x73d   :  { %v480_v49 = vadd.f32 %v477_v48, %v390_v47  ;;  %v578_v50 = vpop.xlane.xlu1 %577  ;;  %v1429_v47 = vld [vmem:[%s1514_s5] ss:$0 sm:$0xff] }
 0x73e   :  { %v579_v51 = vsub.f32 %v575_v37, %v578_v50  ;;  %v1434_v50 = vld [vmem:[%s1515_s6] ss:$0 sm:$0xff] }
 0x73f   :  { %481 = vst.msk [vmem:[#allocation2] sm:$0xff] %vm93_vm0, %v480_v49 }
 0x740   :  { %v580_v52 = vmul.f32 1.442695, %v579_v51 }
 0x742   :  { %1125 = vpow2.f32 %v580_v52 }
 0x745   :  { %v690_v53 = vpop.xlane.xlu0 %689 }
 0x746   :  { %v691_v54 = vsub.f32 %v687_v40, %v690_v53  ;;  %v840_v61 = vld [vmem:[#allocation2] sm:$0xff] }
 0x747   :  { %v845_v62 = vadd.f32 %v1407_v60, %v840_v61  ;;  %v78_v61 = vld [vmem:[%s1518_s9 + $0x8] sm:$0xff] }
 0x748   :  { %v1126_v55 = vpop.eup %1125  ;;  %v692_v56 = vmul.f32 1.442695, %v691_v54  ;;  %v84_v54 = vld [vmem:[%s1518_s9 + $0x38] sm:$0xff] }
 0x749   :  { %v582_v57 = vsel %vm126_vm1, %v1126_v55, 0.0  ;;  %v847_v63 = vadd.f32 %v845_v62, %v1276_v4  ;;  %962 = vmatpush.msra.mxu0 %v84_v54  ;;  %v77_v62 = vld [vmem:[%s1518_s9] sm:$0xff] }
 0x74a   :  { %1127 = vpow2.f32 %v692_v56  ;;  %583 = vadd.xlane.f32.xlu1 %v582_v57  ;;  %v82_v56 = vld [vmem:[%s1518_s9 + $0x28] sm:$0xff]  ;;  %v81_v57 = vld [vmem:[%s1518_s9 + $0x20] sm:$0xff] }
 0x74b   :  { %v849_v0 = vsel %vm93_vm0, %v847_v63, 0.0 }
 0x750   :  { %v1128_v58 = vpop.eup %1127 }
 0x751   :  { %v694_v59 = vsel %vm126_vm1, %v1128_v58, 0.0 }
 0x752   :  { %695 = vadd.xlane.f32.xlu0 %v694_v59  ;;  %v79_v59 = vld [vmem:[%s1518_s9 + $0x10] sm:$0xff] }
 0x763   :  { %587 = vrot.lane.b32.xlu1 %v1306_v19, %s1182_s14 }
 0x766   :  { %699 = vrot.lane.b32.xlu0 %v1306_v19, %s1184_s21 }
 0x78d   :  { %850 = vadd.xlane.f32.xlu1 %v849_v0 }
 0x7aa   :  { %v780_v1 = vpop.xlane.xlu2 %779 }
 0x7ab   :  { %v781_v2 = vsub.f32 %v777_v44, %v780_v1  ;;  %v1467_v1 = vld [vmem:[%s1517_s8] ss:$0 sm:$0xff] }
 0x7ad   :  { %v782_v3 = vmul.f32 1.442695, %v781_v2 }
 0x7af   :  { %1129 = vpow2.f32 %v782_v3 }
 0x7b5   :  { %v1130_v5 = vpop.eup %1129 }
 0x7b6   :  { %v784_v6 = vsel %vm126_vm1, %v1130_v5, 0.0 }
 0x7b7   :  { %785 = vadd.xlane.f32.xlu2 %v784_v6 }
 0x7bd   :  { %v584_v9 = vpop.xlane.xlu1 %583 }
 0x7be   :  { %1131 = vrcp.f32 %v584_v9 }
 0x7c4   :  { %v1132_v11 = vpop.eup %1131 }
 0x7c5   :  { %v696_v10 = vpop.xlane.xlu0 %695  ;;  %v586_v4 = vmul.f32 %v1132_v11, %v1126_v55  ;;  %v83_v55 = vld [vmem:[%s1518_s9 + $0x30] sm:$0xff] }
 0x7c6   :  { %1133 = vrcp.f32 %v696_v10  ;;  %963 = vmatpush.msra.mxu0 %v83_v55 }
 0x7c7   :  { %1135 = vrcp.f32 %v1187_v16 }
 0x7c8   :  { %964 = vmatpush.msra.mxu0 %v82_v56 }
 0x7ca   :  { %965 = vmatpush.msra.mxu0 %v81_v57 }
 0x7cc   :  { %v1134_v14 = vpop.eup %1133 }
 0x7cd   :  { %v698_v15 = vmul.f32 %v1134_v14, %v1128_v58  ;;  %v1136_v17 = vpop.eup %1135  ;;  %v80_v58 = vld [vmem:[%s1518_s9 + $0x18] sm:$0xff] }
 0x7ce   :  { %vm860_vm2 = vweird.f32 %v1136_v17  ;;  %966 = vmatpush.msra.mxu0 %v80_v58 }
 0x7cf   :  { %789 = vrot.lane.b32.xlu2 %v1306_v19, %s1186_s23  ;;  %v856_v19 = vmul.f32 32.0, %v1136_v17 }
 0x7d0   :  { %967 = vmatpush.msra.mxu0 %v79_v59 }
 0x7d1   :  { %v857_v18 = vsub.f32 1.0, %v856_v19 }
 0x7d2   :  { %968 = vmatpush.msra.mxu0 %v78_v61 }
 0x7d3   :  { %v858_v20 = vmul.f32 %v1136_v17, %v857_v18 }
 0x7d4   :  { %969 = vmatpush.msra.mxu0 %v77_v62 }
 0x7d5   :  { %v588_v12 = vpop.permute.xlu1 %587  ;;  %v859_v21 = vadd.f32 %v1136_v17, %v858_v20 }
 0x7d6   :  { %608 = vmatpush.msrb.mxu1 %v588_v12 }
 0x7d7   :  { %1063 = vmatmul.msk.f32.vlgmr.msrb.gmra.mxu1 %vm126_vm1, %v586_v4  ;;  %v1418_v22 = vsel %vm860_vm2, %v1136_v17, %v859_v21 }
 0x7d8   :  { %v700_v13 = vpop.permute.xlu0 %699 }
 0x7d9   :  { %720 = vmatpush.msra.mxu1 %v700_v13 }
 0x7db   :  { %833 = vmatpush.msrb.mxu1 %v1383_v32 }
 0x7df   :  { %1068 = vmatmul.msk.f32.vlgmr.msra.gmra.mxu1 %vm126_vm1, %v698_v15  ;;  %v1102_v15 = vld [vmem:[%s1519_s10] ss:$0 sm:$0xff] }
 0x800   :  { %v851_v23 = vpop.xlane.xlu1 %850 }
 0x801   :  { %v862_v24 = vmul.f32 %v1418_v22, %v851_v23 }
 0x803   :  { %v864_v25 = vsub.f32 %v847_v63, %v862_v24 }
 0x805   :  { %v866_v26 = vmul.f32 %v864_v25, %v864_v25 }
 0x807   :  { %v868_v7 = vsel %vm93_vm0, %v866_v26, 0.0 }
 0x808   :  { %869 = vadd.xlane.f32.xlu2 %v868_v7 }
 0x82a   :  { %v786_v27 = vpop.xlane.xlu2 %785 }
 0x82b   :  { %1137 = vrcp.f32 %v786_v27 }
 0x831   :  { %v1138_v28 = vpop.eup %1137 }
 0x832   :  { %v788_v29 = vmul.f32 %v1138_v28, %v1130_v5  ;;  %v790_v30 = vpop.permute.xlu2 %789 }
 0x833   :  { %810 = vmatpush.msrb.mxu2 %v790_v30 }
 0x834   :  { %1072 = vmatmul.msk.f32.vlgmr.msrb.gmra.mxu2 %vm126_vm1, %v788_v29 }
 0x854   :  { %v610_v31 = vpop.f32.mrf.mxu1 }
 0x855   :  { %1064 = vmatmul.msk.f32.vlgmr.msra.gmra.mxu3 %vm126_vm1, %v610_v31 }
 0x856   :  { %931 = vmatpush.msra.mxu3 %v75_v33 }
 0x858   :  { %932 = vmatpush.msra.mxu3 %v74_v34 }
 0x85a   :  { %933 = vmatpush.msra.mxu3 %v73_v35 }
 0x85c   :  { %v722_v32 = vpop.f32.mrf.mxu1  ;;  %934 = vmatpush.msra.mxu3 %v72_v36 }
 0x85d   :  { %1069 = vmatmul.msk.f32.vlgmr.msrb.gmra.mxu3 %vm126_vm1, %v722_v32 }
 0x87b   :  { %v870_v37 = vpop.xlane.xlu2 %869 }
 0x87c   :  { %v874_v38 = vmul.f32 %v870_v37, %v1418_v22 }
 0x87e   :  { %v876_v39 = vadd.f32 1e-05, %v874_v38 }
 0x880   :  { %1139 = vrsqrt.f32 %v876_v39  ;;  %vm884_vm4 = vweird.f32 %v876_v39 }
 0x886   :  { %v1140_v40 = vpop.eup %1139 }
 0x887   :  { %v879_v41 = vmul.f32 %v1140_v40, %v876_v39  ;;  %vm885_vm3 = vweird.f32 %v1140_v40 }
 0x888   :  { %vm886_vm5 = vmor %vm884_vm4, %vm885_vm3 }
 0x889   :  { %v880_v43 = vmul.f32 %v1140_v40, %v879_v41 }
 0x88b   :  { %v881_v44 = vmul.f32 0.5, %v880_v43 }
 0x88d   :  { %v882_v45 = vsub.f32 1.5, %v881_v44 }
 0x88f   :  { %v883_v46 = vmul.f32 %v1140_v40, %v882_v45 }
 0x891   :  { %v887_v48 = vsel %vm886_vm5, %v1140_v40, %v883_v46 }
 0x892   :  { %v898_v49 = vmul.f32 %v887_v48, %v864_v25 }
 0x894   :  { %v903_v51 = vmul.f32 %v1429_v47, %v898_v49 }
 0x896   :  { %v908_v52 = vadd.f32 %v1434_v50, %v903_v51 }
 0x898   :  { %1074 = vmatmul.msk.f32.vlgmr.msra.gmra.mxu3 %vm93_vm0, %v908_v52 }
 0x8b7   :  { %v812_v53 = vpop.f32.mrf.mxu2 }
 0x8b8   :  { %1073 = vmatmul.msk.f32.vlgmr.msrb.gmra.mxu1 %vm126_vm1, %v812_v53 }
 0x8d8   :  { %v633_v63 = vpop.f32.mrf.mxu3 }
 0x8d9   :  { %v657_v6 = vadd.f32 %v1391_v42, %v633_v63 }
 0x8e0   :  { %v745_v0 = vpop.f32.mrf.mxu3 }
 0x8e1   :  { %v748_v9 = vadd.f32 %v745_v0, %v657_v6 }
 0x91b   :  { %v936_v2 = vpop.f32.mrf.mxu3 }
 0x91c   :  { %v937_v3 = vadd.f32 %v1467_v1, %v936_v2 }
 0x91e   :  { %v942_v5 = vmax.f32 %v937_v3, 0.0 }
 0x920   :  { %1076 = vmatmul.msk.f32.vlgmr.msra.gmra.mxu0 %vm947_vm6, %v942_v5 }
 0x935   :  { %v835_v10 = vpop.f32.mrf.mxu1 }
 0x936   :  { %v838_v11 = vadd.f32 %v835_v10, %v748_v9 }
 0x938   :  { %839 = vst.msk [vmem:[#allocation2 + $0x8] sm:$0xff] %vm93_vm0, %v838_v11 }
 0x93f   :  { %v841_v4 = vld [vmem:[#allocation2 + $0x8] sm:$0xff] }
 0x940   :  { %v846_v12 = vadd.f32 %v1407_v60, %v841_v4 }
 0x942   :  { %v848_v13 = vadd.f32 %v846_v12, %v1293_v8 }
 0x944   :  { %v852_v14 = vsel %vm93_vm0, %v848_v13, 0.0 }
 0x945   :  { %853 = vadd.xlane.f32.xlu0 %v852_v14 }
 0x99d   :  { %v971_v16 = vpop.f32.mrf.mxu0 }
 0x99e   :  { %v972_v17 = vadd.f32 %v1102_v15, %v971_v16 }
 0x9a0   :  { %v977_v42 = vadd.f32 %v972_v17, %v908_v52  ;;  %v1104_v52 = vld [vmem:[%s1521_s12] ss:$0 sm:$0xff] }
 0x9a2   :  { %v979_v19 = vsel %vm93_vm0, %v977_v42, 0.0 }
 0x9a3   :  { %980 = vadd.xlane.f32.xlu0 %v979_v19 }
 0x9b8   :  { %v854_v18 = vpop.xlane.xlu0 %853 }
 0x9b9   :  { %v863_v20 = vmul.f32 %v1418_v22, %v854_v18 }
 0x9bb   :  { %v865_v21 = vsub.f32 %v848_v13, %v863_v20 }
 0x9bd   :  { %v867_v60 = vmul.f32 %v865_v21, %v865_v21 }
 0x9bf   :  { %v871_v8 = vsel %vm93_vm0, %v867_v60, 0.0 }
 0x9c0   :  { %872 = vadd.xlane.f32.xlu1 %v871_v8 }
 0xa16   :  { %v981_v23 = vpop.xlane.xlu0 %980 }
 0xa17   :  { %v985_v24 = vmul.f32 %v981_v23, %v1418_v22 }
 0xa19   :  { %v987_v25 = vsub.f32 %v977_v42, %v985_v24 }
 0xa1b   :  { %v989_v26 = vmul.f32 %v987_v25, %v987_v25 }
 0xa1d   :  { %v991_v7 = vsel %vm93_vm0, %v989_v26, 0.0 }
 0xa1e   :  { %992 = vadd.xlane.f32.xlu0 %v991_v7 }
 0xa33   :  { %v873_v27 = vpop.xlane.xlu1 %872 }
 0xa34   :  { %v875_v28 = vmul.f32 %v873_v27, %v1418_v22 }
 0xa36   :  { %v877_v29 = vadd.f32 1e-05, %v875_v28 }
 0xa38   :  { %1141 = vrsqrt.f32 %v877_v29  ;;  %vm894_vm8 = vweird.f32 %v877_v29 }
 0xa3e   :  { %v1142_v30 = vpop.eup %1141 }
 0xa3f   :  { %v889_v31 = vmul.f32 %v1142_v30, %v877_v29  ;;  %vm895_vm7 = vweird.f32 %v1142_v30 }
 0xa40   :  { %vm896_vm9 = vmor %vm894_vm8, %vm895_vm7 }
 0xa41   :  { %v890_v32 = vmul.f32 %v1142_v30, %v889_v31 }
 0xa43   :  { %v891_v33 = vmul.f32 0.5, %v890_v32 }
 0xa45   :  { %v892_v34 = vsub.f32 1.5, %v891_v33 }
 0xa47   :  { %v893_v35 = vmul.f32 %v1142_v30, %v892_v34 }
 0xa49   :  { %v897_v36 = vsel %vm896_vm9, %v1142_v30, %v893_v35 }
 0xa4a   :  { %v899_v37 = vmul.f32 %v897_v36, %v865_v21 }
 0xa4c   :  { %v904_v38 = vmul.f32 %v1429_v47, %v899_v37  ;;  %v1103_v47 = vld [vmem:[%s1520_s11] ss:$0 sm:$0xff] }
 0xa4e   :  { %v909_v39 = vadd.f32 %v1434_v50, %v904_v38 }
 0xa50   :  { %1075 = vmatmul.msk.f32.gmra.mxu3 %vm93_vm0, %v909_v39 }
 0xa91   :  { %v993_v40 = vpop.xlane.xlu0 %992 }
 0xa92   :  { %v997_v41 = vmul.f32 %v993_v40, %v1418_v22 }
 0xa94   :  { %v999_v43 = vadd.f32 1e-05, %v997_v41 }
 0xa96   :  { %1143 = vrsqrt.f32 %v999_v43  ;;  %vm1007_vm11 = vweird.f32 %v999_v43 }
 0xa9c   :  { %v1144_v44 = vpop.eup %1143 }
 0xa9d   :  { %v1002_v45 = vmul.f32 %v1144_v44, %v999_v43  ;;  %vm1008_vm10 = vweird.f32 %v1144_v44 }
 0xa9e   :  { %vm1009_vm12 = vmor %vm1007_vm11, %vm1008_vm10 }
 0xa9f   :  { %v1003_v46 = vmul.f32 %v1144_v44, %v1002_v45 }
 0xaa1   :  { %v1004_v48 = vmul.f32 0.5, %v1003_v46 }
 0xaa3   :  { %v1005_v49 = vsub.f32 1.5, %v1004_v48 }
 0xaa5   :  { %v1006_v51 = vmul.f32 %v1144_v44, %v1005_v49 }
 0xaa7   :  { %v1010_v50 = vsel %vm1009_vm12, %v1144_v44, %v1006_v51 }
 0xaa8   :  { %v1021_v53 = vmul.f32 %v1010_v50, %v987_v25 }
 0xaaa   :  { %v1026_v54 = vmul.f32 %v1103_v47, %v1021_v53 }
 0xaac   :  { %v1031_v55 = vadd.f32 %v1104_v52, %v1026_v54 }
 0xaae   :  { %1033 = vst.msk [vmem:[%s1522_s13] sm:$0xff] %vm93_vm0, %v1031_v55 }
 0xad3   :  { %v939_v56 = vpop.f32.mrf.mxu3 }
 0xad4   :  { %v940_v57 = vadd.f32 %v1467_v1, %v939_v56 }
 0xad6   :  { %v943_v58 = vmax.f32 %v940_v57, 0.0 }
 0xad8   :  { %1077 = vmatmul.msk.f32.gmra.mxu0 %vm947_vm6, %v943_v58 }
 0xb55   :  { %v974_v59 = vpop.f32.mrf.mxu0 }
 0xb56   :  { %v975_v61 = vadd.f32 %v1102_v15, %v974_v59 }
 0xb58   :  { %v978_v62 = vadd.f32 %v975_v61, %v909_v39 }
 0xb5a   :  { %v982_v63 = vsel %vm93_vm0, %v978_v62, 0.0 }
 0xb5b   :  { %983 = vadd.xlane.f32.xlu1 %v982_v63 }
 0xbce   :  { %v984_v0 = vpop.xlane.xlu1 %983 }
 0xbcf   :  { %v986_v2 = vmul.f32 %v984_v0, %v1418_v22 }
 0xbd1   :  { %v988_v3 = vsub.f32 %v978_v62, %v986_v2 }
 0xbd3   :  { %v990_v5 = vmul.f32 %v988_v3, %v988_v3 }
 0xbd5   :  { %v994_v6 = vsel %vm93_vm0, %v990_v5, 0.0 }
 0xbd6   :  { %995 = vadd.xlane.f32.xlu2 %v994_v6 }
 0xc49   :  { %v996_v9 = vpop.xlane.xlu2 %995 }
 0xc4a   :  { %v998_v1 = vmul.f32 %v996_v9, %v1418_v22 }
 0xc4c   :  { %v1000_v10 = vadd.f32 1e-05, %v998_v1 }
 0xc4e   :  { %1145 = vrsqrt.f32 %v1000_v10  ;;  %vm1017_vm14 = vweird.f32 %v1000_v10 }
 0xc54   :  { %v1146_v11 = vpop.eup %1145 }
 0xc55   :  { %v1012_v4 = vmul.f32 %v1146_v11, %v1000_v10  ;;  %vm1018_vm13 = vweird.f32 %v1146_v11 }
 0xc56   :  { %vm1019_vm15 = vmor %vm1017_vm14, %vm1018_vm13 }
 0xc57   :  { %v1013_v12 = vmul.f32 %v1146_v11, %v1012_v4 }
 0xc59   :  { %v1014_v13 = vmul.f32 0.5, %v1013_v12 }
 0xc5b   :  { %v1015_v14 = vsub.f32 1.5, %v1014_v13 }
 0xc5d   :  { %v1016_v15 = vmul.f32 %v1146_v11, %v1015_v14 }
 0xc5f   :  { %v1020_v16 = vsel %vm1019_vm15, %v1146_v11, %v1016_v15 }
 0xc60   :  { %v1022_v17 = vmul.f32 %v1020_v16, %v988_v3 }
 0xc62   :  { %v1027_v42 = vmul.f32 %v1103_v47, %v1022_v17 }
 0xc64   :  { %v1032_v19 = vadd.f32 %v1104_v52, %v1027_v42 }
 0xc66   :  { %1034 = vst.msk [vmem:[%s1522_s13 + $0x8] sm:$0xff] %vm93_vm0, %v1032_v19 }
 0xc67   :  { %1039 = vsyncpa [#allocation4], 1 }

// kernel: skip_transformer_encoder_forward.5
= control target key start
LH: loop header
LB: loop body
LE: loop exit
PB: predicated region body
PF: predicated region fallthrough
CT: control target
= control target key end

     0   :  { %vm104_vm0 = vcmask 261120   ;;  %s1288_s25 = smov 120   ;;  %vm204_vm1 = vcmask 64512   ;;  %s1292_s27 = smov 48   ;;  %vm1025_vm6 = vcmask 523264   ;;  %s1705_s3 = inlined_call_operand.vmem [shape: f32[32,32], index: 3, kind: input, shape index: {}]   ;;  %s1706_s2 = inlined_call_operand.vmem [shape: f32[32,32], index: 2, kind: input, shape index: {}]   ;;  %s1707_s5 = inlined_call_operand.vmem [shape: f32[32,96], index: 5, kind: input, shape index: {}]   ;;  %s1708_s1 = inlined_call_operand.vmem [shape: f32[16,32], index: 1, kind: input, shape index: {}]   ;;  %s1709_s0 = inlined_call_operand.vmem [shape: f32[16,32], index: 0, kind: input, shape index: {}]   ;;  %s1710_s4 = inlined_call_operand.vmem [shape: f32[1,32], index: 4, kind: input, shape index: {}]   ;;  %s1711_s6 = inlined_call_operand.vmem [shape: f32[1,96], index: 6, kind: input, shape index: {}]   ;;  %s1712_s7 = inlined_call_operand.vmem [shape: f32[32,32], index: 7, kind: input, shape index: {}]   ;;  %s1713_s8 = inlined_call_operand.vmem [shape: f32[1,32], index: 8, kind: input, shape index: {}]   ;;  %s1714_s9 = inlined_call_operand.vmem [shape: f32[1,32], index: 9, kind: input, shape index: {}]   ;;  %s1715_s10 = inlined_call_operand.vmem [shape: f32[1,32], index: 10, kind: input, shape index: {}]   ;;  %s1716_s12 = inlined_call_operand.vmem [shape: f32[1,64], index: 12, kind: input, shape index: {}]   ;;  %s1717_s11 = inlined_call_operand.vmem [shape: f32[32,64], index: 11, kind: input, shape index: {}]   ;;  %s1718_s13 = inlined_call_operand.vmem [shape: f32[64,32], index: 13, kind: input, shape index: {}]   ;;  %s1719_s14 = inlined_call_operand.vmem [shape: f32[1,32], index: 14, kind: input, shape index: {}]   ;;  %s1720_s15 = inlined_call_operand.vmem [shape: f32[1,32], index: 15, kind: input, shape index: {}]   ;;  %s1721_s16 = inlined_call_operand.vmem [shape: f32[1,32], index: 16, kind: input, shape index: {}]   ;;  %s1722_s17 = inlined_call_operand.vmem [shape: f32[1,32], index: 17, kind: input, shape index: {}]   ;;  %s1723_s18 = inlined_call_operand.vmem [shape: f32[1,32], index: 18, kind: input, shape index: {}]   ;;  %s1724_s19 = inlined_call_operand.vmem [shape: f32[16,32], index: 19, kind: output, shape index: {}]  }
   0x1   :  { %1729 = sst [smem:[#allocation3_spill]] %s1705_s3  ;;  %v92_v10 = vld [vmem:[%s1709_s0] sm:$0xff]  ;;  %v93_v15 = vld [vmem:[%s1709_s0 + $0x8] sm:$0xff]  ;;  %s1286_s0 = smov 88  }
   0x2   :  { %1730 = sst [smem:[#allocation4_spill]] %s1706_s2  ;;  %v1229_v16 = vld [vmem:[%s1710_s4] ss:$0 sm:$0xff]  ;;  %s1287_s4 = smov 96  }
   0x3   :  { %1731 = sst [smem:[#allocation5_spill]] %s1707_s5  ;;  %v1460_v21 = vld [vmem:[%s1711_s6] ss:$0 sm:$0xff]  ;;  %s1290_s6 = smov 112  }
   0x4   :  { %1732 = sst [smem:[#allocation6_spill]] %s1708_s1  ;;  %s1289_s1 = smov 80   ;;  %v67_v46 = vld [vmem:[%s1712_s7] sm:$0xff] }
   0x5   :  { %1733 = sst [smem:[#allocation7_spill]] %s1719_s14  ;;  %s1293_s28 = smov 56  }
   0x6   :  { %s1734_s20 = sld [smem:[#allocation3_spill]]  ;;  %s1294_s29 = smov 72  }
   0x7   :  { %s1735_s14 = sld [smem:[#allocation4_spill]]  ;;  %s1295_s30 = smov 104  }
   0x8   :  { %s1736_s3 = sld [smem:[#allocation5_spill]]  ;;  %s1296_s23 = smov 40  }
   0x9   :  { %s1737_s24 = sld [smem:[#allocation6_spill]] }
   0xa   :  { %s1738_s26 = sld [smem:[#allocation7_spill]] }
   0xc   :  { %v103_v0 = vld [vmem:[%s1734_s20 + $0x18] sm:$0xff]  ;;  %v102_v2 = vld [vmem:[%s1734_s20 + $0x10] sm:$0xff]  ;;  %v101_v4 = vld [vmem:[%s1734_s20 + $0x8] sm:$0xff] }
   0xd   :  { %v97_v1 = vld [vmem:[%s1735_s14 + $0x18] sm:$0xff]  ;;  %123 = vmatpush.msra.mxu0 %v103_v0  ;;  %v96_v3 = vld [vmem:[%s1735_s14 + $0x10] sm:$0xff]  ;;  %v95_v5 = vld [vmem:[%s1735_s14 + $0x8] sm:$0xff] }
   0xe   :  { %152 = vmatpush.msra.mxu1 %v97_v1  ;;  %v65_v6 = vld [vmem:[%s1736_s3 + $0x18] sm:$0xff]  ;;  %v100_v7 = vld [vmem:[%s1734_s20] sm:$0xff]  ;;  %v64_v11 = vld [vmem:[%s1736_s3 + $0x10] sm:$0xff] }
   0xf   :  { %124 = vmatpush.msra.mxu0 %v102_v2  ;;  %v94_v8 = vld [vmem:[%s1735_s14] sm:$0xff]  ;;  %190 = vmatpush.msra.mxu2 %v65_v6  ;;  %v63_v12 = vld [vmem:[%s1736_s3 + $0x8] sm:$0xff]  ;;  %s1291_s14 = smov 64  }
  0x10   :  { %153 = vmatpush.msra.mxu1 %v96_v3  ;;  %1213 = vmatpush.msra.mxu3 %v65_v6  ;;  %v98_v9 = vld [vmem:[%s1737_s24] sm:$0xff]  ;;  %v99_v14 = vld [vmem:[%s1737_s24 + $0x8] sm:$0xff] }
  0x11   :  { %125 = vmatpush.msra.mxu0 %v101_v4  ;;  %191 = vmatpush.msra.mxu2 %v64_v11  ;;  %v62_v13 = vld [vmem:[%s1736_s3] sm:$0xff]  ;;  %v68_v3 = vld [vmem:[%s1712_s7 + $0x8] sm:$0xff] }
  0x12   :  { %154 = vmatpush.msra.mxu1 %v95_v5  ;;  %1214 = vmatpush.msra.mxu3 %v64_v11 }
  0x13   :  { %126 = vmatpush.msra.mxu0 %v100_v7  ;;  %192 = vmatpush.msra.mxu2 %v63_v12 }
  0x14   :  { %155 = vmatpush.msra.mxu1 %v94_v8  ;;  %1171 = vmatmul.msk.f32.vlgmr.msra.gmra.mxu0 %vm104_vm0, %v98_v9 }
  0x15   :  { %1173 = vmatmul.msk.f32.vlgmr.msra.gmra.mxu1 %vm104_vm0, %v92_v10  ;;  %1215 = vmatpush.msra.mxu3 %v63_v12 }
  0x16   :  { %193 = vmatpush.msra.mxu2 %v62_v13  ;;  %351 = vmatpush.msrb.mxu1 %v68_v3 }
  0x17   :  { %1216 = vmatpush.msra.mxu3 %v62_v13  ;;  %v69_v13 = vld [vmem:[%s1712_s7 + $0x10] sm:$0xff] }
  0x18   :  { %374 = vmatpush.msrb.mxu2 %v67_v46  ;;  %463 = vmatpush.msra.mxu1 %v69_v13 }
  0x1c   :  { %1172 = vmatmul.msk.f32.gmra.mxu0 %vm104_vm0, %v99_v14 }
  0x1d   :  { %1174 = vmatmul.msk.f32.gmra.mxu1 %vm104_vm0, %v93_v15 }
  0x91   :  { %v128_v17 = vpop.f32.mrf.mxu0 }
  0x92   :  { %v157_v18 = vpop.f32.mrf.mxu1 }
  0x93   :  { %v158_v19 = vadd.f32 %v157_v18, %v128_v17 }
  0x95   :  { %v1453_v20 = vadd.f32 %v1229_v16, %v158_v19 }
  0x97   :  { %1175 = vmatmul.msk.f32.vlgmr.msra.gmra.mxu2 %vm104_vm0, %v1453_v20 }
  0x99   :  { %v131_v24 = vpop.f32.mrf.mxu0 }
  0x9a   :  { %v160_v25 = vpop.f32.mrf.mxu1 }
  0x9b   :  { %v161_v26 = vadd.f32 %v160_v25, %v131_v24 }
  0x9d   :  { %v1475_v27 = vadd.f32 %v1229_v16, %v161_v26 }
  0x9f   :  { %1176 = vmatmul.msk.f32.vlgmr.msra.gmra.mxu3 %vm104_vm0, %v1475_v27 }
 0x11a   :  { %v195_v22 = vpop.f32.mrf.mxu2 }
 0x11b   :  { %v1463_v23 = vadd.f32 %v1460_v21, %v195_v22 }
 0x11d   :  { %269 = vrot.lane.b32.xlu2 %v1463_v23, %s1286_s0  ;;  %202 = vrot.lane.b32.xlu0 %v1463_v23, %s1287_s4 }
 0x122   :  { %v198_v29 = vpop.f32.mrf.mxu3 }
 0x123   :  { %v1500_v54 = vadd.f32 %v1460_v21, %v198_v29 }
 0x125   :  { %267 = vrot.lane.b32.xlu2 %v1463_v23, %s1288_s25 }
 0x12d   :  { %381 = vrot.lane.b32.xlu2 %v1463_v23, %s1289_s1 }
 0x135   :  { %379 = vrot.lane.b32.xlu2 %v1463_v23, %s1290_s6 }
 0x177   :  { %v270_v38 = vpop.permute.xlu2 %269 }
 0x17f   :  { %v268_v40 = vpop.permute.xlu2 %267 }
 0x187   :  { %v382_v44 = vpop.permute.xlu2 %381 }
 0x18f   :  { %v203_v28 = vpop.permute.xlu0 %202  ;;  %v380_v45 = vpop.permute.xlu2 %379 }
 0x190   :  { %1177 = vmatpush.xpose.msk.msrb.mxu3 %vm204_vm1, %v203_v28 }
 0x193   :  { %1178 = vmatmul.msk.f32.vlgmr.msrb.gmra.mxu3 %vm204_vm1, %v1463_v23 }
 0x216   :  { %v226_v30 = vpop.f32.mrf.mxu3 }
 0x217   :  { %v229_v31 = vmul.f32 0.35355338, %v226_v30 }
 0x219   :  { %v230_v32 = vsel %vm204_vm1, %v229_v31, -inf }
 0x21a   :  { %231 = vmax.xlane.f32.xlu0 %v230_v32 }
 0x28d   :  { %v232_v33 = vpop.xlane.xlu0 %231 }
 0x28e   :  { %v233_v34 = vsub.f32 %v229_v31, %v232_v33 }
 0x290   :  { %v234_v35 = vmul.f32 1.442695, %v233_v34 }
 0x292   :  { %1240 = vpow2.f32 %v234_v35 }
 0x298   :  { %v1241_v36 = vpop.eup %1240 }
 0x299   :  { %v236_v37 = vsel %vm204_vm1, %v1241_v36, 0.0 }
 0x29a   :  { %237 = vadd.xlane.f32.xlu1 %v236_v37 }
 0x2b3   :  { %241 = vrot.lane.b32.xlu1 %v1463_v23, %s1291_s14 }
 0x30d   :  { %v238_v39 = vpop.xlane.xlu1 %237 }
 0x30e   :  { %1242 = vrcp.f32 %v238_v39 }
 0x314   :  { %v1243_v41 = vpop.eup %1242 }
 0x315   :  { %v240_v42 = vmul.f32 %v1243_v41, %v1241_v36 }
 0x325   :  { %v242_v43 = vpop.permute.xlu1 %241 }
 0x326   :  { %262 = vmatpush.msra.mxu3 %v242_v43 }
 0x327   :  { %1179 = vmatmul.msk.f32.vlgmr.msra.gmra.mxu3 %vm204_vm1, %v240_v42 }
 0x328   :  { %1180 = vmatpush.xpose.msk.msrb.mxu3 %vm204_vm1, %v270_v38 }
 0x32c   :  { %1185 = vmatpush.xpose.msk.msra.mxu3 %vm204_vm1, %v382_v44 }
 0x32f   :  { %1181 = vmatmul.msk.f32.vlgmr.msrb.gmra.mxu3 %vm204_vm1, %v268_v40 }
 0x337   :  { %1186 = vmatmul.msk.f32.vlgmr.msra.gmra.mxu3 %vm204_vm1, %v380_v45 }
 0x3aa   :  { %v264_v47 = vpop.f32.mrf.mxu3 }
 0x3ab   :  { %1184 = vmatmul.msk.f32.vlgmr.msrb.gmra.mxu2 %vm204_vm1, %v264_v47 }
 0x3b2   :  { %v292_v48 = vpop.f32.mrf.mxu3 }
 0x3b3   :  { %v295_v49 = vmul.f32 0.35355338, %v292_v48 }
 0x3b5   :  { %v296_v50 = vsel %vm204_vm1, %v295_v49, -inf }
 0x3b6   :  { %297 = vmax.xlane.f32.xlu2 %v296_v50 }
 0x3ba   :  { %v404_v51 = vpop.f32.mrf.mxu3 }
 0x3bb   :  { %v407_v52 = vmul.f32 0.35355338, %v404_v51 }
 0x3bd   :  { %v408_v53 = vsel %vm204_vm1, %v407_v52, -inf }
 0x3be   :  { %409 = vmax.xlane.f32.xlu1 %v408_v53 }
 0x3ce   :  { %419 = vrot.lane.b32.xlu2 %v1463_v23, %s1292_s27 }
 0x3d7   :  { %561 = vrot.lane.b32.xlu1 %v1500_v54, %s1287_s4 }
 0x429   :  { %v298_v55 = vpop.xlane.xlu2 %297 }
 0x42a   :  { %v299_v56 = vsub.f32 %v295_v49, %v298_v55 }
 0x42c   :  { %v300_v57 = vmul.f32 1.442695, %v299_v56 }
 0x42e   :  { %1244 = vpow2.f32 %v300_v57  ;;  %v376_v17 = vpop.f32.mrf.mxu2 }
 0x431   :  { %v410_v58 = vpop.xlane.xlu1 %409  ;;  %v420_v7 = vpop.permute.xlu2 %419 }
 0x432   :  { %v411_v59 = vsub.f32 %v407_v52, %v410_v58  ;;  %v1559_v52 = vld [vmem:[%s1712_s7 + $0x18] sm:$0xff] }
 0x434   :  { %v1245_v60 = vpop.eup %1244  ;;  %v412_v61 = vmul.f32 1.442695, %v411_v59 }
 0x435   :  { %v302_v62 = vsel %vm204_vm1, %v1245_v60, 0.0 }
 0x436   :  { %1246 = vpow2.f32 %v412_v61  ;;  %303 = vadd.xlane.f32.xlu0 %v302_v62 }
 0x43c   :  { %v1247_v63 = vpop.eup %1246 }
 0x43d   :  { %v414_v0 = vsel %vm204_vm1, %v1247_v63, 0.0 }
 0x43e   :  { %415 = vadd.xlane.f32.xlu0 %v414_v0 }
 0x449   :  { %v562_v15 = vpop.permute.xlu1 %561 }
 0x452   :  { %307 = vrot.lane.b32.xlu0 %v1463_v23, %s1293_s28 }
 0x45a   :  { %471 = vrot.lane.b32.xlu0 %v1463_v23, %s1294_s29 }
 0x462   :  { %469 = vrot.lane.b32.xlu0 %v1463_v23, %s1295_s30 }
 0x46a   :  { %599 = vrot.lane.b32.xlu0 %v1500_v54, %s1291_s14 }
 0x4a9   :  { %v304_v1 = vpop.xlane.xlu0 %303 }
 0x4aa   :  { %1248 = vrcp.f32 %v304_v1 }
 0x4b0   :  { %v1249_v4 = vpop.eup %1248 }
 0x4b1   :  { %v416_v2 = vpop.xlane.xlu0 %415  ;;  %v306_v6 = vmul.f32 %v1249_v4, %v1245_v60 }
 0x4b2   :  { %1250 = vrcp.f32 %v416_v2 }
 0x4b8   :  { %v1251_v8 = vpop.eup %1250 }
 0x4b9   :  { %v418_v9 = vmul.f32 %v1251_v8, %v1247_v63 }
 0x4c4   :  { %v308_v5 = vpop.permute.xlu0 %307 }
 0x4c5   :  { %328 = vmatpush.msrb.mxu0 %v308_v5 }
 0x4c6   :  { %1182 = vmatmul.msk.f32.vlgmr.msrb.gmra.mxu0 %vm204_vm1, %v306_v6 }
 0x4c7   :  { %440 = vmatpush.msra.mxu0 %v420_v7 }
 0x4c9   :  { %553 = vmatpush.msrb.mxu0 %v1559_v52 }
 0x4cc   :  { %v472_v10 = vpop.permute.xlu0 %471 }
 0x4cd   :  { %1189 = vmatpush.xpose.msk.msra.mxu2 %vm204_vm1, %v472_v10 }
 0x4ce   :  { %1187 = vmatmul.msk.f32.vlgmr.msra.gmra.mxu0 %vm204_vm1, %v418_v9 }
 0x4d4   :  { %v470_v11 = vpop.permute.xlu0 %469 }
 0x4d5   :  { %1190 = vmatmul.msk.f32.vlgmr.msra.gmra.mxu2 %vm204_vm1, %v470_v11 }
 0x4dc   :  { %v600_v12 = vpop.permute.xlu0 %599 }
 0x4dd   :  { %620 = vmatpush.msrb.mxu2 %v600_v12 }
 0x4df   :  { %732 = vmatpush.msra.mxu2 %v67_v46 }
 0x543   :  { %v330_v14 = vpop.f32.mrf.mxu0 }
 0x544   :  { %1183 = vmatmul.msk.f32.vlgmr.msrb.gmra.mxu1 %vm204_vm1, %v330_v14 }
 0x545   :  { %1193 = vmatpush.xpose.msk.msrb.mxu1 %vm204_vm1, %v562_v15 }
 0x54b   :  { %v442_v16 = vpop.f32.mrf.mxu0 }
 0x54c   :  { %1188 = vmatmul.msk.f32.vlgmr.msra.gmra.mxu1 %vm204_vm1, %v442_v16 }
 0x54d   :  { %709 = vmatpush.msra.mxu1 %v68_v3 }
 0x554   :  { %1194 = vmatmul.msk.f32.vlgmr.msrb.gmra.mxu1 %vm204_vm1, %v1500_v54 }
 0x555   :  { %821 = vmatpush.msrb.mxu1 %v69_v13 }
 0x558   :  { %v494_v18 = vpop.f32.mrf.mxu2 }
 0x559   :  { %v497_v19 = vmul.f32 0.35355338, %v494_v18 }
 0x55b   :  { %v498_v21 = vsel %vm204_vm1, %v497_v19, -inf }
 0x55c   :  { %499 = vmax.xlane.f32.xlu0 %v498_v21 }
 0x570   :  { %625 = vrot.lane.b32.xlu0 %v1500_v54, %s1288_s25 }
 0x578   :  { %739 = vrot.lane.b32.xlu0 %v1500_v54, %s1289_s1 }
 0x5c1   :  { %v353_v22 = vpop.f32.mrf.mxu1 }
 0x5c2   :  { %v377_v24 = vadd.f32 %v376_v17, %v353_v22 }
 0x5c9   :  { %v465_v25 = vpop.f32.mrf.mxu1 }
 0x5ca   :  { %v1534_v26 = vadd.f32 %v465_v25, %v377_v24 }
 0x5cf   :  { %v500_v28 = vpop.xlane.xlu0 %499 }
 0x5d0   :  { %v501_v29 = vsub.f32 %v497_v19, %v500_v28 }
 0x5d1   :  { %v584_v30 = vpop.f32.mrf.mxu1 }
 0x5d2   :  { %v502_v31 = vmul.f32 1.442695, %v501_v29  ;;  %v587_v32 = vmul.f32 0.35355338, %v584_v30 }
 0x5d4   :  { %1252 = vpow2.f32 %v502_v31  ;;  %v588_v33 = vsel %vm204_vm1, %v587_v32, -inf  ;;  %v1587_v31 = vld [vmem:[%s1713_s8] ss:$0 sm:$0xff] }
 0x5d5   :  { %589 = vmax.xlane.f32.xlu2 %v588_v33 }
 0x5da   :  { %v1253_v34 = vpop.eup %1252 }
 0x5db   :  { %v504_v35 = vsel %vm204_vm1, %v1253_v34, 0.0 }
 0x5dd   :  { %505 = vadd.xlane.f32.xlu2 %v504_v35 }
 0x5e2   :  { %v626_v45 = vpop.permute.xlu0 %625 }
 0x5ea   :  { %v740_v49 = vpop.permute.xlu0 %739 }
 0x5f5   :  { %627 = vrot.lane.b32.xlu2 %v1500_v54, %s1286_s0 }
 0x5fd   :  { %827 = vrot.lane.b32.xlu2 %v1500_v54, %s1295_s30 }
 0x648   :  { %v590_v36 = vpop.xlane.xlu2 %589 }
 0x649   :  { %v591_v37 = vsub.f32 %v587_v32, %v590_v36 }
 0x64b   :  { %v592_v38 = vmul.f32 1.442695, %v591_v37 }
 0x64d   :  { %1254 = vpow2.f32 %v592_v38 }
 0x650   :  { %v506_v44 = vpop.xlane.xlu2 %505 }
 0x653   :  { %v1255_v39 = vpop.eup %1254 }
 0x654   :  { %v594_v40 = vsel %vm204_vm1, %v1255_v39, 0.0 }
 0x655   :  { %595 = vadd.xlane.f32.xlu1 %v594_v40  ;;  %v1297_v40 = vmov 32.0  }
 0x66e   :  { %509 = vrot.lane.b32.xlu1 %v1463_v23, %s1296_s23  ;;  %v628_v23 = vpop.permute.xlu2 %627 }
 0x676   :  { %829 = vrot.lane.b32.xlu1 %v1500_v54, %s1294_s29  ;;  %v828_v55 = vpop.permute.xlu2 %827 }
 0x67e   :  { %737 = vrot.lane.b32.xlu1 %v1500_v54, %s1290_s6 }
 0x6c8   :  { %v596_v41 = vpop.xlane.xlu1 %595 }
 0x6c9   :  { %1256 = vrcp.f32 %v596_v41 }
 0x6ca   :  { %1258 = vrcp.f32 %v506_v44 }
 0x6cf   :  { %v1257_v42 = vpop.eup %1256 }
 0x6d0   :  { %v598_v43 = vmul.f32 %v1257_v42, %v1255_v39  ;;  %v1259_v46 = vpop.eup %1258 }
 0x6d1   :  { %v508_v47 = vmul.f32 %v1259_v46, %v1253_v34 }
 0x6d2   :  { %1195 = vmatmul.msk.f32.vlgmr.msrb.gmra.mxu2 %vm204_vm1, %v598_v43 }
 0x6e0   :  { %v510_v48 = vpop.permute.xlu1 %509 }
 0x6e1   :  { %530 = vmatpush.msrb.mxu3 %v510_v48 }
 0x6e2   :  { %1191 = vmatmul.msk.f32.vlgmr.msrb.gmra.mxu3 %vm204_vm1, %v508_v47 }
 0x6e3   :  { %1196 = vmatpush.xpose.msk.msra.mxu3 %vm204_vm1, %v628_v23 }
 0x6e7   :  { %1201 = vmatpush.xpose.msk.msrb.mxu3 %vm204_vm1, %v740_v49 }
 0x6e8   :  { %v830_v50 = vpop.permute.xlu1 %829 }
 0x6e9   :  { %1205 = vmatpush.xpose.msk.msrb.mxu2 %vm204_vm1, %v830_v50 }
 0x6ea   :  { %1197 = vmatmul.msk.f32.vlgmr.msra.gmra.mxu3 %vm204_vm1, %v626_v45 }
 0x6f0   :  { %v738_v51 = vpop.permute.xlu1 %737 }
 0x6f2   :  { %1202 = vmatmul.msk.f32.vlgmr.msrb.gmra.mxu3 %vm204_vm1, %v738_v51 }
 0x755   :  { %v622_v53 = vpop.f32.mrf.mxu2 }
 0x756   :  { %1200 = vmatmul.msk.f32.vlgmr.msra.gmra.mxu2 %vm204_vm1, %v622_v53  ;;  %v76_v53 = vld [vmem:[%s1717_s11 + $0x10] sm:$0xff] }
 0x75e   :  { %1206 = vmatmul.msk.f32.vlgmr.msrb.gmra.mxu2 %vm204_vm1, %v828_v55  ;;  %v75_v55 = vld [vmem:[%s1717_s11 + $0x8] sm:$0xff] }
 0x765   :  { %v532_v56 = vpop.f32.mrf.mxu3 }
 0x766   :  { %1192 = vmatmul.msk.f32.vlgmr.msrb.gmra.mxu0 %vm204_vm1, %v532_v56  ;;  %v74_v56 = vld [vmem:[%s1717_s11] sm:$0xff] }
 0x76d   :  { %v650_v57 = vpop.f32.mrf.mxu3 }
 0x76e   :  { %v653_v58 = vmul.f32 0.35355338, %v650_v57 }
 0x770   :  { %v654_v59 = vsel %vm204_vm1, %v653_v58, -inf }
 0x771   :  { %655 = vmax.xlane.f32.xlu2 %v654_v59 }
 0x775   :  { %v762_v60 = vpop.f32.mrf.mxu3 }
 0x776   :  { %v765_v61 = vmul.f32 0.35355338, %v762_v60 }
 0x778   :  { %v766_v62 = vsel %vm204_vm1, %v765_v61, -inf }
 0x779   :  { %767 = vmax.xlane.f32.xlu1 %v766_v62 }
 0x7d9   :  { %v1567_v63 = vpop.f32.mrf.mxu2 }
 0x7e1   :  { %v852_v0 = vpop.f32.mrf.mxu2 }
 0x7e2   :  { %v855_v1 = vmul.f32 0.35355338, %v852_v0 }
 0x7e3   :  { %v555_v2 = vpop.f32.mrf.mxu0 }
 0x7e4   :  { %v558_v3 = vadd.f32 %v555_v2, %v1534_v26  ;;  %v656_v4 = vpop.xlane.xlu2 %655  ;;  %v856_v5 = vsel %vm204_vm1, %v855_v1, -inf }
 0x7e5   :  { %v657_v6 = vsub.f32 %v653_v58, %v656_v4  ;;  %857 = vmax.xlane.f32.xlu0 %v856_v5 }
 0x7e6   :  { %559 = vst.msk [vmem:[#allocation2] sm:$0xff] %vm104_vm0, %v558_v3  ;;  %v1616_v3 = vld [vmem:[%s1714_s9] ss:$0 sm:$0xff] }
 0x7e7   :  { %v658_v7 = vmul.f32 1.442695, %v657_v6  ;;  %v1621_v6 = vld [vmem:[%s1715_s10] ss:$0 sm:$0xff] }
 0x7e9   :  { %1260 = vpow2.f32 %v658_v7 }
 0x7ec   :  { %v768_v8 = vpop.xlane.xlu1 %767 }
 0x7ed   :  { %v769_v9 = vsub.f32 %v765_v61, %v768_v8  ;;  %v918_v32 = vld [vmem:[#allocation2] sm:$0xff] }
 0x7ee   :  { %v923_v33 = vadd.f32 %v1587_v31, %v918_v32 }
 0x7ef   :  { %v1261_v10 = vpop.eup %1260  ;;  %v770_v11 = vmul.f32 1.442695, %v769_v9  ;;  %v86_v9 = vld [vmem:[%s1718_s13 + $0x38] sm:$0xff] }
 0x7f0   :  { %v660_v12 = vsel %vm204_vm1, %v1261_v10, 0.0  ;;  %v925_v34 = vadd.f32 %v923_v33, %v1453_v20  ;;  %1040 = vmatpush.msra.mxu2 %v86_v9 }
 0x7f1   :  { %1262 = vpow2.f32 %v770_v11  ;;  %661 = vadd.xlane.f32.xlu2 %v660_v12  ;;  %v84_v11 = vld [vmem:[%s1718_s13 + $0x28] sm:$0xff] }
 0x7f7   :  { %v1263_v13 = vpop.eup %1262 }
 0x7f8   :  { %v772_v14 = vsel %vm204_vm1, %v1263_v13, 0.0 }
 0x7f9   :  { %773 = vadd.xlane.f32.xlu1 %v772_v14  ;;  %v82_v14 = vld [vmem:[%s1718_s13 + $0x18] sm:$0xff] }
 0x809   :  { %665 = vrot.lane.b32.xlu2 %v1500_v54, %s1293_s28 }
 0x812   :  { %777 = vrot.lane.b32.xlu1 %v1500_v54, %s1292_s27 }
 0x858   :  { %v858_v15 = vpop.xlane.xlu0 %857 }
 0x859   :  { %v859_v16 = vsub.f32 %v855_v1, %v858_v15 }
 0x85b   :  { %v860_v17 = vmul.f32 1.442695, %v859_v16 }
 0x85d   :  { %1264 = vpow2.f32 %v860_v17 }
 0x863   :  { %v1265_v18 = vpop.eup %1264 }
 0x864   :  { %v662_v19 = vpop.xlane.xlu2 %661  ;;  %v862_v21 = vsel %vm204_vm1, %v1265_v18, 0.0 }
 0x865   :  { %1266 = vrcp.f32 %v662_v19  ;;  %863 = vadd.xlane.f32.xlu0 %v862_v21 }
 0x86b   :  { %v1267_v22 = vpop.eup %1266 }
 0x86c   :  { %v664_v24 = vmul.f32 %v1267_v22, %v1261_v10  ;;  %v666_v25 = vpop.permute.xlu2 %665  ;;  %v774_v26 = vpop.xlane.xlu1 %773  ;;  %v85_v10 = vld [vmem:[%s1718_s13 + $0x30] sm:$0xff] }
 0x86d   :  { %686 = vmatpush.msra.mxu0 %v666_v25  ;;  %1268 = vrcp.f32 %v774_v26  ;;  %1041 = vmatpush.msra.mxu2 %v85_v10  ;;  %v81_v26 = vld [vmem:[%s1718_s13 + $0x10] sm:$0xff] }
 0x86e   :  { %1198 = vmatmul.msk.f32.vlgmr.msra.gmra.mxu0 %vm204_vm1, %v664_v24 }
 0x86f   :  { %1042 = vmatpush.msra.mxu2 %v84_v11 }
 0x873   :  { %v1269_v28 = vpop.eup %1268 }
 0x874   :  { %v776_v29 = vmul.f32 %v1269_v28, %v1263_v13  ;;  %v83_v13 = vld [vmem:[%s1718_s13 + $0x20] sm:$0xff] }
 0x875   :  { %1043 = vmatpush.msra.mxu2 %v83_v13  ;;  %v79_v28 = vld [vmem:[%s1718_s13] sm:$0xff] }
 0x877   :  { %1044 = vmatpush.msra.mxu2 %v82_v14 }
 0x879   :  { %867 = vrot.lane.b32.xlu0 %v1500_v54, %s1296_s23  ;;  %v927_v54 = vsel %vm104_vm0, %v925_v34, 0.0  ;;  %1045 = vmatpush.msra.mxu2 %v81_v26 }
 0x884   :  { %v778_v30 = vpop.permute.xlu1 %777 }
 0x885   :  { %798 = vmatpush.msrb.mxu0 %v778_v30 }
 0x886   :  { %1203 = vmatmul.msk.f32.vlgmr.msrb.gmra.mxu0 %vm204_vm1, %v776_v29 }
 0x887   :  { %911 = vmatpush.msra.mxu0 %v1559_v52  ;;  %v77_v52 = vld [vmem:[%s1717_s11 + $0x18] sm:$0xff] }
 0x8a3   :  { %928 = vadd.xlane.f32.xlu0 %v927_v54 }
 0x8d8   :  { %v864_v35 = vpop.xlane.xlu0 %863 }
 0x8d9   :  { %1270 = vrcp.f32 %v864_v35 }
 0x8da   :  { %1272 = vrcp.f32 %v1297_v40 }
 0x8df   :  { %v1271_v36 = vpop.eup %1270 }
 0x8e0   :  { %v866_v37 = vmul.f32 %v1271_v36, %v1265_v18  ;;  %v1273_v41 = vpop.eup %1272  ;;  %v1235_v36 = vld [vmem:[%s1738_s26] ss:$0 sm:$0xff] }
 0x8e1   :  { %v934_v20 = vmul.f32 32.0, %v1273_v41  ;;  %vm938_vm2 = vweird.f32 %v1273_v41 }
 0x8e3   :  { %v935_v43 = vsub.f32 1.0, %v934_v20 }
 0x8e5   :  { %v936_v44 = vmul.f32 %v1273_v41, %v935_v43 }
 0x8e7   :  { %v937_v45 = vadd.f32 %v1273_v41, %v936_v44 }
 0x8e9   :  { %v1595_v46 = vsel %vm938_vm2, %v1273_v41, %v937_v45 }
 0x8eb   :  { %v868_v38 = vpop.permute.xlu0 %867  ;;  %v688_v39 = vpop.f32.mrf.mxu0 }
 0x8ec   :  { %1199 = vmatmul.msk.f32.vlgmr.msra.gmra.mxu1 %vm204_vm1, %v688_v39  ;;  %888 = vmatpush.msra.mxu3 %v868_v38 }
 0x8ed   :  { %1207 = vmatmul.msk.f32.vlgmr.msra.gmra.mxu3 %vm204_vm1, %v866_v37  ;;  %1009 = vmatpush.msra.mxu1 %v77_v52 }
 0x8ef   :  { %1010 = vmatpush.msra.mxu1 %v76_v53 }
 0x8f1   :  { %1011 = vmatpush.msra.mxu1 %v75_v55 }
 0x8f3   :  { %1012 = vmatpush.msra.mxu1 %v74_v56 }
 0x903   :  { %v800_v42 = vpop.f32.mrf.mxu0 }
 0x904   :  { %1204 = vmatmul.msk.f32.vlgmr.msrb.gmra.mxu1 %vm204_vm1, %v800_v42 }
 0x916   :  { %v929_v47 = vpop.xlane.xlu0 %928 }
 0x917   :  { %v940_v48 = vmul.f32 %v1595_v46, %v929_v47 }
 0x919   :  { %v942_v23 = vsub.f32 %v925_v34, %v940_v48 }
 0x91b   :  { %v944_v49 = vmul.f32 %v942_v23, %v942_v23 }
 0x91d   :  { %v946_v50 = vsel %vm104_vm0, %v944_v49, 0.0 }
 0x91e   :  { %947 = vadd.xlane.f32.xlu1 %v946_v50 }
 0x969   :  { %v711_v12 = vpop.f32.mrf.mxu1 }
 0x96a   :  { %v735_v16 = vadd.f32 %v1567_v63, %v711_v12  ;;  %v80_v63 = vld [vmem:[%s1718_s13 + $0x8] sm:$0xff]  ;;  %v1236_v12 = vld [vmem:[%s1720_s15] ss:$0 sm:$0xff] }
 0x96b   :  { %1046 = vmatpush.msra.mxu2 %v80_v63 }
 0x96d   :  { %1047 = vmatpush.msra.mxu2 %v79_v28 }
 0x970   :  { %v890_v51 = vpop.f32.mrf.mxu3 }
 0x971   :  { %1208 = vmatmul.msk.f32.vlgmr.msra.gmra.mxu0 %vm204_vm1, %v890_v51 }
 0x981   :  { %v823_v15 = vpop.f32.mrf.mxu1 }
 0x982   :  { %v826_v17 = vadd.f32 %v823_v15, %v735_v16  ;;  %v1237_v16 = vld [vmem:[%s1721_s16] ss:$0 sm:$0xff] }
 0x991   :  { %v948_v57 = vpop.xlane.xlu1 %947 }
 0x992   :  { %v952_v58 = vmul.f32 %v948_v57, %v1595_v46 }
 0x994   :  { %v954_v59 = vadd.f32 1e-05, %v952_v58 }
 0x996   :  { %1274 = vrsqrt.f32 %v954_v59  ;;  %vm962_vm4 = vweird.f32 %v954_v59 }
 0x99c   :  { %v1275_v60 = vpop.eup %1274 }
 0x99d   :  { %v957_v61 = vmul.f32 %v1275_v60, %v954_v59  ;;  %vm963_vm3 = vweird.f32 %v1275_v60 }
 0x99e   :  { %vm964_vm5 = vmor %vm962_vm4, %vm963_vm3 }
 0x99f   :  { %v958_v62 = vmul.f32 %v1275_v60, %v957_v61 }
 0x9a1   :  { %v959_v0 = vmul.f32 0.5, %v958_v62 }
 0x9a3   :  { %v960_v1 = vsub.f32 1.5, %v959_v0 }
 0x9a5   :  { %v961_v2 = vmul.f32 %v1275_v60, %v960_v1 }
 0x9a7   :  { %v965_v4 = vsel %vm964_vm5, %v1275_v60, %v961_v2 }
 0x9a8   :  { %v976_v5 = vmul.f32 %v965_v4, %v942_v23 }
 0x9aa   :  { %v981_v7 = vmul.f32 %v1616_v3, %v976_v5 }
 0x9ac   :  { %v986_v8 = vadd.f32 %v1621_v6, %v981_v7 }
 0x9ae   :  { %1209 = vmatmul.msk.f32.vlgmr.msra.gmra.mxu1 %vm104_vm0, %v986_v8 }
 0x9ee   :  { %v913_v18 = vpop.f32.mrf.mxu0 }
 0x9ef   :  { %v916_v19 = vadd.f32 %v913_v18, %v826_v17 }
 0x9f1   :  { %917 = vst.msk [vmem:[#allocation2 + $0x8] sm:$0xff] %vm104_vm0, %v916_v19 }
 0x9f8   :  { %v919_v21 = vld [vmem:[#allocation2 + $0x8] sm:$0xff] }
 0x9f9   :  { %v924_v22 = vadd.f32 %v1587_v31, %v919_v21 }
 0x9fb   :  { %v926_v24 = vadd.f32 %v924_v22, %v1475_v27  ;;  %v1234_v27 = vld [vmem:[%s1716_s12] ss:$0 sm:$0xff] }
 0x9fd   :  { %v930_v25 = vsel %vm104_vm0, %v926_v24, 0.0 }
 0x9fe   :  { %931 = vadd.xlane.f32.xlu2 %v930_v25 }
 0xa2b   :  { %v1014_v29 = vpop.f32.mrf.mxu1 }
 0xa2c   :  { %v1015_v30 = vadd.f32 %v1234_v27, %v1014_v29 }
 0xa2e   :  { %v1020_v31 = vmax.f32 %v1015_v30, 0.0 }
 0xa30   :  { %1211 = vmatmul.msk.f32.vlgmr.msra.gmra.mxu2 %vm1025_vm6, %v1020_v31 }
 0xa71   :  { %v932_v32 = vpop.xlane.xlu2 %931 }
 0xa72   :  { %v941_v33 = vmul.f32 %v1595_v46, %v932_v32 }
 0xa74   :  { %v943_v34 = vsub.f32 %v926_v24, %v941_v33 }
 0xa76   :  { %v945_v54 = vmul.f32 %v943_v34, %v943_v34 }
 0xa78   :  { %v949_v35 = vsel %vm104_vm0, %v945_v54, 0.0 }
 0xa79   :  { %950 = vadd.xlane.f32.xlu0 %v949_v35 }
 0xab3   :  { %v1049_v37 = vpop.f32.mrf.mxu2 }
 0xab4   :  { %v1050_v38 = vadd.f32 %v1235_v36, %v1049_v37 }
 0xab6   :  { %v1055_v39 = vadd.f32 %v1050_v38, %v986_v8 }
 0xab8   :  { %v1057_v40 = vsel %vm104_vm0, %v1055_v39, 0.0 }
 0xab9   :  { %1058 = vadd.xlane.f32.xlu2 %v1057_v40 }
 0xaec   :  { %v951_v41 = vpop.xlane.xlu0 %950 }
 0xaed   :  { %v953_v42 = vmul.f32 %v951_v41, %v1595_v46 }
 0xaef   :  { %v955_v20 = vadd.f32 1e-05, %v953_v42 }
 0xaf1   :  { %1276 = vrsqrt.f32 %v955_v20  ;;  %vm972_vm8 = vweird.f32 %v955_v20 }
 0xaf7   :  { %v1277_v43 = vpop.eup %1276 }
 0xaf8   :  { %v967_v44 = vmul.f32 %v1277_v43, %v955_v20  ;;  %vm973_vm7 = vweird.f32 %v1277_v43 }
 0xaf9   :  { %vm974_vm9 = vmor %vm972_vm8, %vm973_vm7 }
 0xafa   :  { %v968_v45 = vmul.f32 %v1277_v43, %v967_v44 }
 0xafc   :  { %v969_v47 = vmul.f32 0.5, %v968_v45 }
 0xafe   :  { %v970_v48 = vsub.f32 1.5, %v969_v47 }
 0xb00   :  { %v971_v23 = vmul.f32 %v1277_v43, %v970_v48 }
 0xb02   :  { %v975_v49 = vsel %vm974_vm9, %v1277_v43, %v971_v23 }
 0xb03   :  { %v977_v50 = vmul.f32 %v975_v49, %v943_v34 }
 0xb05   :  { %v982_v51 = vmul.f32 %v1616_v3, %v977_v50  ;;  %v1238_v50 = vld [vmem:[%s1722_s17] ss:$0 sm:$0xff] }
 0xb07   :  { %v987_v52 = vadd.f32 %v1621_v6, %v982_v51 }
 0xb09   :  { %1210 = vmatmul.msk.f32.gmra.mxu1 %vm104_vm0, %v987_v52 }
 0xb2c   :  { %v1059_v53 = vpop.xlane.xlu2 %1058 }
 0xb2d   :  { %v1063_v55 = vmul.f32 %v1059_v53, %v1595_v46  ;;  %v1239_v53 = vld [vmem:[%s1723_s18] ss:$0 sm:$0xff] }
 0xb2f   :  { %v1065_v56 = vsub.f32 %v1055_v39, %v1063_v55 }
 0xb31   :  { %v1067_v57 = vmul.f32 %v1065_v56, %v1065_v56 }
 0xb33   :  { %v1069_v58 = vsel %vm104_vm0, %v1067_v57, 0.0 }
 0xb34   :  { %1070 = vadd.xlane.f32.xlu1 %v1069_v58 }
 0xb86   :  { %v1017_v59 = vpop.f32.mrf.mxu1 }
 0xb87   :  { %v1018_v60 = vadd.f32 %v1234_v27, %v1017_v59 }
 0xb89   :  { %v1021_v61 = vmax.f32 %v1018_v60, 0.0 }
 0xb8b   :  { %1212 = vmatmul.msk.f32.gmra.mxu2 %vm1025_vm6, %v1021_v61 }
 0xba7   :  { %v1071_v62 = vpop.xlane.xlu1 %1070 }
 0xba8   :  { %v1075_v0 = vmul.f32 %v1071_v62, %v1595_v46 }
 0xbaa   :  { %v1077_v1 = vadd.f32 1e-05, %v1075_v0 }
 0xbac   :  { %1278 = vrsqrt.f32 %v1077_v1  ;;  %vm1085_vm11 = vweird.f32 %v1077_v1 }
 0xbb2   :  { %v1279_v2 = vpop.eup %1278 }
 0xbb3   :  { %v1080_v3 = vmul.f32 %v1279_v2, %v1077_v1  ;;  %vm1086_vm10 = vweird.f32 %v1279_v2 }
 0xbb4   :  { %vm1087_vm12 = vmor %vm1085_vm11, %vm1086_vm10 }
 0xbb5   :  { %v1081_v4 = vmul.f32 %v1279_v2, %v1080_v3 }
 0xbb7   :  { %v1082_v5 = vmul.f32 0.5, %v1081_v4 }
 0xbb9   :  { %v1083_v6 = vsub.f32 1.5, %v1082_v5 }
 0xbbb   :  { %v1084_v7 = vmul.f32 %v1279_v2, %v1083_v6 }
 0xbbd   :  { %v1088_v8 = vsel %vm1087_vm12, %v1279_v2, %v1084_v7 }
 0xbbe   :  { %v1099_v11 = vmul.f32 %v1088_v8, %v1065_v56 }
 0xbc0   :  { %v1104_v15 = vmul.f32 %v1236_v12, %v1099_v11 }
 0xbc2   :  { %v1109_v17 = vadd.f32 %v1237_v16, %v1104_v15 }
 0xbc4   :  { %v1111_v18 = vsel %vm104_vm0, %v1109_v17, 0.0 }
 0xc0e   :  { %v1052_v9 = vpop.f32.mrf.mxu2 }
 0xc0f   :  { %v1053_v10 = vadd.f32 %v1235_v36, %v1052_v9 }
 0xc11   :  { %v1056_v13 = vadd.f32 %v1053_v10, %v987_v52 }
 0xc13   :  { %v1060_v14 = vsel %vm104_vm0, %v1056_v13, 0.0 }
 0xc14   :  { %1061 = vadd.xlane.f32.xlu0 %v1060_v14 }
 0xc1c   :  { %1112 = vadd.xlane.f32.xlu0 %v1111_v18 }
 0xc87   :  { %v1062_v19 = vpop.xlane.xlu0 %1061 }
 0xc88   :  { %v1064_v21 = vmul.f32 %v1062_v19, %v1595_v46 }
 0xc8a   :  { %v1066_v22 = vsub.f32 %v1056_v13, %v1064_v21 }
 0xc8c   :  { %v1068_v24 = vmul.f32 %v1066_v22, %v1066_v22 }
 0xc8e   :  { %v1072_v25 = vsel %vm104_vm0, %v1068_v24, 0.0 }
 0xc8f   :  { %1073 = vadd.xlane.f32.xlu2 %v1072_v25  ;;  %v1113_v26 = vpop.xlane.xlu0 %1112 }
 0xc90   :  { %v1117_v63 = vmul.f32 %v1113_v26, %v1595_v46 }
 0xc92   :  { %v1119_v28 = vsub.f32 %v1109_v17, %v1117_v63 }
 0xc94   :  { %v1121_v27 = vmul.f32 %v1119_v28, %v1119_v28 }
 0xc96   :  { %v1123_v29 = vsel %vm104_vm0, %v1121_v27, 0.0 }
 0xc97   :  { %1124 = vadd.xlane.f32.xlu2 %v1123_v29 }
 0xd02   :  { %v1074_v30 = vpop.xlane.xlu2 %1073 }
 0xd03   :  { %v1076_v31 = vmul.f32 %v1074_v30, %v1595_v46 }
 0xd05   :  { %v1078_v32 = vadd.f32 1e-05, %v1076_v31 }
 0xd07   :  { %1280 = vrsqrt.f32 %v1078_v32  ;;  %vm1095_vm14 = vweird.f32 %v1078_v32 }
 0xd0a   :  { %v1125_v33 = vpop.xlane.xlu2 %1124 }
 0xd0b   :  { %v1129_v34 = vmul.f32 %v1125_v33, %v1595_v46 }
 0xd0d   :  { %v1281_v54 = vpop.eup %1280  ;;  %v1131_v35 = vadd.f32 1e-05, %v1129_v34 }
 0xd0e   :  { %v1090_v36 = vmul.f32 %v1281_v54, %v1078_v32  ;;  %vm1096_vm13 = vweird.f32 %v1281_v54 }
 0xd0f   :  { %1282 = vrsqrt.f32 %v1131_v35  ;;  %vm1097_vm15 = vmor %vm1095_vm14, %vm1096_vm13  ;;  %vm1139_vm2 = vweird.f32 %v1131_v35 }
 0xd10   :  { %v1091_v37 = vmul.f32 %v1281_v54, %v1090_v36 }
 0xd12   :  { %v1092_v38 = vmul.f32 0.5, %v1091_v37 }
 0xd14   :  { %v1093_v39 = vsub.f32 1.5, %v1092_v38 }
 0xd15   :  { %v1283_v40 = vpop.eup %1282 }
 0xd16   :  { %v1094_v41 = vmul.f32 %v1281_v54, %v1093_v39  ;;  %v1134_v42 = vmul.f32 %v1283_v40, %v1131_v35  ;;  %vm1140_vm1 = vweird.f32 %v1283_v40 }
 0xd17   :  { %vm1141_vm3 = vmor %vm1139_vm2, %vm1140_vm1 }
 0xd18   :  { %v1135_v20 = vmul.f32 %v1283_v40, %v1134_v42  ;;  %v1098_v43 = vsel %vm1097_vm15, %v1281_v54, %v1094_v41 }
 0xd19   :  { %v1100_v44 = vmul.f32 %v1098_v43, %v1066_v22 }
 0xd1a   :  { %v1136_v45 = vmul.f32 0.5, %v1135_v20 }
 0xd1b   :  { %v1105_v47 = vmul.f32 %v1236_v12, %v1100_v44 }
 0xd1c   :  { %v1137_v48 = vsub.f32 1.5, %v1136_v45 }
 0xd1d   :  { %v1110_v23 = vadd.f32 %v1237_v16, %v1105_v47 }
 0xd1e   :  { %v1138_v49 = vmul.f32 %v1283_v40, %v1137_v48 }
 0xd1f   :  { %v1114_v51 = vsel %vm104_vm0, %v1110_v23, 0.0 }
 0xd20   :  { %v1142_v52 = vsel %vm1141_vm3, %v1283_v40, %v1138_v49  ;;  %1115 = vadd.xlane.f32.xlu1 %v1114_v51 }
 0xd21   :  { %v1153_v55 = vmul.f32 %v1142_v52, %v1119_v28 }
 0xd23   :  { %v1158_v56 = vmul.f32 %v1238_v50, %v1153_v55 }
 0xd25   :  { %v1163_v57 = vadd.f32 %v1239_v53, %v1158_v56 }
 0xd27   :  { %1165 = vst.msk [vmem:[%s1724_s19] sm:$0xff] %vm104_vm0, %v1163_v57 }
 0xd93   :  { %v1116_v58 = vpop.xlane.xlu1 %1115 }
 0xd94   :  { %v1118_v59 = vmul.f32 %v1116_v58, %v1595_v46 }
 0xd96   :  { %v1120_v60 = vsub.f32 %v1110_v23, %v1118_v59 }
 0xd98   :  { %v1122_v61 = vmul.f32 %v1120_v60, %v1120_v60 }
 0xd9a   :  { %v1126_v62 = vsel %vm104_vm0, %v1122_v61, 0.0 }
 0xd9b   :  { %1127 = vadd.xlane.f32.xlu0 %v1126_v62 }
 0xe0e   :  { %v1128_v0 = vpop.xlane.xlu0 %1127 }
 0xe0f   :  { %v1130_v1 = vmul.f32 %v1128_v0, %v1595_v46 }
 0xe11   :  { %v1132_v2 = vadd.f32 1e-05, %v1130_v1 }
 0xe13   :  { %1284 = vrsqrt.f32 %v1132_v2  ;;  %vm1149_vm5 = vweird.f32 %v1132_v2 }
 0xe19   :  { %v1285_v3 = vpop.eup %1284 }
 0xe1a   :  { %v1144_v4 = vmul.f32 %v1285_v3, %v1132_v2  ;;  %vm1150_vm4 = vweird.f32 %v1285_v3 }
 0xe1b   :  { %vm1151_vm6 = vmor %vm1149_vm5, %vm1150_vm4 }
 0xe1c   :  { %v1145_v5 = vmul.f32 %v1285_v3, %v1144_v4 }
 0xe1e   :  { %v1146_v6 = vmul.f32 0.5, %v1145_v5 }
 0xe20   :  { %v1147_v7 = vsub.f32 1.5, %v1146_v6 }
 0xe22   :  { %v1148_v8 = vmul.f32 %v1285_v3, %v1147_v7 }
 0xe24   :  { %v1152_v9 = vsel %vm1151_vm6, %v1285_v3, %v1148_v8 }
 0xe25   :  { %v1154_v10 = vmul.f32 %v1152_v9, %v1120_v60 }
 0xe27   :  { %v1159_v11 = vmul.f32 %v1238_v50, %v1154_v10 }
 0xe29   :  { %v1164_v12 = vadd.f32 %v1239_v53, %v1159_v11 }
 0xe2b   :  { %1166 = vst.msk [vmem:[%s1724_s19 + $0x8] sm:$0xff] %vm104_vm0, %v1164_v12 }

// kernel: skip_transformer_encoder_forward.4
= control target key start
LH: loop header
LB: loop body
LE: loop exit
PB: predicated region body
PF: predicated region fallthrough
CT: control target
= control target key end

     0   :  { %vm77_vm0 = vcmask 261120   ;;  %s1128_s20 = smov 96   ;;  %s1129_s21 = smov 88   ;;  %vm110_vm1 = vcmask 64512   ;;  %vm931_vm6 = vcmask 523264   ;;  %s1473_s1 = inlined_call_operand.vmem [shape: f32[32,96], index: 1, kind: input, shape index: {}]   ;;  %s1474_s2 = inlined_call_operand.vmem [shape: f32[1,96], index: 2, kind: input, shape index: {}]   ;;  %s1475_s0 = inlined_call_operand.vmem [shape: f32[16,32], index: 0, kind: input, shape index: {}]   ;;  %s1476_s3 = inlined_call_operand.vmem [shape: f32[32,32], index: 3, kind: input, shape index: {}]   ;;  %s1477_s4 = inlined_call_operand.vmem [shape: f32[1,32], index: 4, kind: input, shape index: {}]   ;;  %s1478_s5 = inlined_call_operand.vmem [shape: f32[1,32], index: 5, kind: input, shape index: {}]   ;;  %s1479_s6 = inlined_call_operand.vmem [shape: f32[1,32], index: 6, kind: input, shape index: {}]   ;;  %s1480_s8 = inlined_call_operand.vmem [shape: f32[1,64], index: 8, kind: input, shape index: {}]   ;;  %s1481_s7 = inlined_call_operand.vmem [shape: f32[32,64], index: 7, kind: input, shape index: {}]   ;;  %s1482_s9 = inlined_call_operand.vmem [shape: f32[64,32], index: 9, kind: input, shape index: {}]   ;;  %s1483_s10 = inlined_call_operand.vmem [shape: f32[1,32], index: 10, kind: input, shape index: {}]   ;;  %s1484_s11 = inlined_call_operand.vmem [shape: f32[1,32], index: 11, kind: input, shape index: {}]   ;;  %s1485_s12 = inlined_call_operand.vmem [shape: f32[1,32], index: 12, kind: input, shape index: {}]   ;;  %s1486_s13 = inlined_call_operand.vmem [shape: f32[16,32], index: 13, kind: output, shape index: {}]  }
   0x1   :  { %v47_v0 = vld [vmem:[%s1473_s1 + $0x18] sm:$0xff]  ;;  %v46_v1 = vld [vmem:[%s1473_s1 + $0x10] sm:$0xff]  ;;  %v45_v2 = vld [vmem:[%s1473_s1 + $0x8] sm:$0xff]  ;;  %s1132_s24 = smov 64   ;;  %s1133_s25 = smov 56  }
   0x2   :  { %96 = vmatpush.msra.mxu0 %v47_v0  ;;  %1061 = vmatpush.msra.mxu2 %v47_v0  ;;  %v44_v3 = vld [vmem:[%s1473_s1] sm:$0xff]  ;;  %s1127_s1 = smov 120   ;;  %v1241_v8 = vld [vmem:[%s1475_s0 + $0x8] sm:$0xff]  ;;  %s1134_s26 = smov 80   ;;  %v51_v44 = vld [vmem:[%s1476_s3 + $0x10] sm:$0xff] }
   0x3   :  { %v1224_v4 = vld [vmem:[%s1475_s0] sm:$0xff]  ;;  %s1130_s0 = smov 112   ;;  %v50_v41 = vld [vmem:[%s1476_s3 + $0x8] sm:$0xff]  ;;  %s1135_s16 = smov 48  }
   0x4   :  { %97 = vmatpush.msra.mxu0 %v46_v1  ;;  %1062 = vmatpush.msra.mxu2 %v46_v1  ;;  %v1077_v5 = vld [vmem:[%s1474_s2] ss:$0 sm:$0xff]  ;;  %s1131_s2 = smov 72   ;;  %s1136_s17 = smov 104  }
   0x5   :  { %v49_v40 = vld [vmem:[%s1476_s3] sm:$0xff]  ;;  %s1137_s18 = smov 40  }
   0x6   :  { %98 = vmatpush.msra.mxu0 %v45_v2  ;;  %1063 = vmatpush.msra.mxu2 %v45_v2 }
   0x8   :  { %99 = vmatpush.msra.mxu0 %v44_v3  ;;  %1064 = vmatpush.msra.mxu2 %v44_v3 }
   0x9   :  { %1023 = vmatmul.msk.f32.vlgmr.msra.gmra.mxu0 %vm77_vm0, %v1224_v4  ;;  %1024 = vmatmul.msk.f32.vlgmr.msra.gmra.mxu2 %vm77_vm0, %v1241_v8 }
  0x86   :  { %v101_v6 = vpop.f32.mrf.mxu0 }
  0x87   :  { %v1231_v7 = vadd.f32 %v1077_v5, %v101_v6 }
  0x89   :  { %173 = vrot.lane.b32.xlu1 %v1231_v7, %s1127_s1  ;;  %108 = vrot.lane.b32.xlu0 %v1231_v7, %s1128_s20 }
  0x8c   :  { %v104_v18 = vpop.f32.mrf.mxu2 }
  0x8d   :  { %v1254_v19 = vadd.f32 %v1077_v5, %v104_v18 }
  0x91   :  { %175 = vrot.lane.b32.xlu0 %v1231_v7, %s1129_s21 }
  0xfb   :  { %v109_v9 = vpop.permute.xlu0 %108  ;;  %v174_v11 = vpop.permute.xlu1 %173 }
  0xfc   :  { %1025 = vmatpush.xpose.msk.msra.mxu1 %vm110_vm1, %v109_v9 }
  0xff   :  { %1026 = vmatmul.msk.f32.vlgmr.msra.gmra.mxu1 %vm110_vm1, %v1231_v7 }
 0x100   :  { %257 = vmatpush.msrb.mxu1 %v50_v41 }
 0x103   :  { %v176_v10 = vpop.permute.xlu0 %175 }
 0x104   :  { %1028 = vmatpush.xpose.msk.msra.mxu3 %vm110_vm1, %v176_v10 }
 0x107   :  { %1029 = vmatmul.msk.f32.vlgmr.msra.gmra.mxu3 %vm110_vm1, %v174_v11 }
 0x108   :  { %280 = vmatpush.msrb.mxu3 %v49_v40 }
 0x10a   :  { %369 = vmatpush.msra.mxu3 %v51_v44 }
 0x17c   :  { %v132_v12 = vpop.f32.mrf.mxu1 }
 0x17d   :  { %v135_v13 = vmul.f32 0.35355338, %v132_v12 }
 0x17f   :  { %v136_v14 = vsel %vm110_vm1, %v135_v13, -inf }
 0x180   :  { %137 = vmax.xlane.f32.xlu1 %v136_v14 }
 0x18a   :  { %v198_v15 = vpop.f32.mrf.mxu3 }
 0x18b   :  { %v201_v16 = vmul.f32 0.35355338, %v198_v15 }
 0x18d   :  { %v202_v17 = vsel %vm110_vm1, %v201_v16, -inf }
 0x18e   :  { %203 = vmax.xlane.f32.xlu2 %v202_v17 }
 0x199   :  { %285 = vrot.lane.b32.xlu1 %v1231_v7, %s1130_s0 }
 0x1a1   :  { %467 = vrot.lane.b32.xlu1 %v1254_v19, %s1128_s20 }
 0x1a9   :  { %377 = vrot.lane.b32.xlu1 %v1231_v7, %s1131_s2 }
 0x1f3   :  { %v138_v20 = vpop.xlane.xlu1 %137 }
 0x1f4   :  { %v139_v21 = vsub.f32 %v135_v13, %v138_v20 }
 0x1f6   :  { %v140_v22 = vmul.f32 1.442695, %v139_v21 }
 0x1f8   :  { %1085 = vpow2.f32 %v140_v22 }
 0x1fe   :  { %v1086_v23 = vpop.eup %1085 }
 0x1ff   :  { %v142_v24 = vsel %vm110_vm1, %v1086_v23, 0.0 }
 0x200   :  { %143 = vadd.xlane.f32.xlu2 %v142_v24 }
 0x201   :  { %v204_v25 = vpop.xlane.xlu2 %203 }
 0x202   :  { %v205_v26 = vsub.f32 %v201_v16, %v204_v25 }
 0x204   :  { %v206_v27 = vmul.f32 1.442695, %v205_v26 }
 0x206   :  { %1087 = vpow2.f32 %v206_v27 }
 0x20b   :  { %v286_v39 = vpop.permute.xlu1 %285 }
 0x20c   :  { %v1088_v28 = vpop.eup %1087 }
 0x20d   :  { %v208_v29 = vsel %vm110_vm1, %v1088_v28, 0.0 }
 0x20e   :  { %209 = vadd.xlane.f32.xlu0 %v208_v29 }
 0x213   :  { %v468_v45 = vpop.permute.xlu1 %467 }
 0x218   :  { %147 = vrot.lane.b32.xlu2 %v1231_v7, %s1132_s24 }
 0x21b   :  { %v378_v59 = vpop.permute.xlu1 %377 }
 0x220   :  { %213 = vrot.lane.b32.xlu2 %v1231_v7, %s1133_s25 }
 0x228   :  { %287 = vrot.lane.b32.xlu2 %v1231_v7, %s1134_s26 }
 0x273   :  { %v144_v30 = vpop.xlane.xlu2 %143 }
 0x274   :  { %1089 = vrcp.f32 %v144_v30 }
 0x27a   :  { %v1090_v31 = vpop.eup %1089 }
 0x27b   :  { %v148_v32 = vpop.permute.xlu2 %147  ;;  %v146_v33 = vmul.f32 %v1090_v31, %v1086_v23 }
 0x27c   :  { %168 = vmatpush.msrb.mxu2 %v148_v32  ;;  %v1331_v32 = vld [vmem:[%s1476_s3 + $0x18] sm:$0xff] }
 0x27d   :  { %1027 = vmatmul.msk.f32.vlgmr.msrb.gmra.mxu2 %vm110_vm1, %v146_v33 }
 0x281   :  { %v210_v34 = vpop.xlane.xlu0 %209 }
 0x282   :  { %1091 = vrcp.f32 %v210_v34 }
 0x283   :  { %v214_v35 = vpop.permute.xlu2 %213 }
 0x284   :  { %234 = vmatpush.msra.mxu2 %v214_v35 }
 0x288   :  { %v1092_v36 = vpop.eup %1091 }
 0x289   :  { %v212_v37 = vmul.f32 %v1092_v36, %v1088_v28 }
 0x28b   :  { %1030 = vmatmul.msk.f32.vlgmr.msra.gmra.mxu2 %vm110_vm1, %v212_v37  ;;  %v288_v38 = vpop.permute.xlu2 %287 }
 0x28c   :  { %1033 = vmatpush.xpose.msk.msrb.mxu2 %vm110_vm1, %v288_v38 }
 0x293   :  { %1034 = vmatmul.msk.f32.vlgmr.msrb.gmra.mxu2 %vm110_vm1, %v286_v39 }
 0x300   :  { %v170_v42 = vpop.f32.mrf.mxu2 }
 0x301   :  { %1032 = vmatmul.msk.f32.vlgmr.msrb.gmra.mxu3 %vm110_vm1, %v170_v42 }
 0x302   :  { %1041 = vmatpush.xpose.msk.msrb.mxu3 %vm110_vm1, %v468_v45 }
 0x30e   :  { %v236_v43 = vpop.f32.mrf.mxu2 }
 0x30f   :  { %1031 = vmatmul.msk.f32.vlgmr.msrb.gmra.mxu1 %vm110_vm1, %v236_v43 }
 0x316   :  { %v310_v46 = vpop.f32.mrf.mxu2 }
 0x317   :  { %v313_v47 = vmul.f32 0.35355338, %v310_v46 }
 0x319   :  { %v314_v48 = vsel %vm110_vm1, %v313_v47, -inf }
 0x31a   :  { %315 = vmax.xlane.f32.xlu2 %v314_v48 }
 0x332   :  { %505 = vrot.lane.b32.xlu2 %v1254_v19, %s1132_s24 }
 0x384   :  { %v1302_v2 = vpop.f32.mrf.mxu3 }
 0x38c   :  { %v1294_v61 = vpop.f32.mrf.mxu1 }
 0x38d   :  { %v316_v49 = vpop.xlane.xlu2 %315  ;;  %v283_v46 = vadd.f32 %v1302_v2, %v1294_v61 }
 0x38e   :  { %v317_v50 = vsub.f32 %v313_v47, %v316_v49 }
 0x390   :  { %v318_v51 = vmul.f32 1.442695, %v317_v50 }
 0x392   :  { %1093 = vpow2.f32 %v318_v51 }
 0x395   :  { %v506_v52 = vpop.permute.xlu2 %505 }
 0x396   :  { %526 = vmatpush.msrb.mxu0 %v506_v52 }
 0x398   :  { %638 = vmatpush.msra.mxu0 %v49_v40  ;;  %v1094_v53 = vpop.eup %1093 }
 0x399   :  { %v320_v54 = vsel %vm110_vm1, %v1094_v53, 0.0 }
 0x39a   :  { %321 = vadd.xlane.f32.xlu0 %v320_v54 }
 0x3ae   :  { %325 = vrot.lane.b32.xlu0 %v1231_v7, %s1135_s16 }
 0x3b6   :  { %375 = vrot.lane.b32.xlu0 %v1231_v7, %s1136_s17 }
 0x40d   :  { %v322_v55 = vpop.xlane.xlu0 %321 }
 0x40e   :  { %1095 = vrcp.f32 %v322_v55 }
 0x414   :  { %v1096_v56 = vpop.eup %1095 }
 0x415   :  { %v324_v57 = vmul.f32 %v1096_v56, %v1094_v53 }
 0x420   :  { %v326_v58 = vpop.permute.xlu0 %325 }
 0x421   :  { %346 = vmatpush.msra.mxu1 %v326_v58 }
 0x422   :  { %1035 = vmatmul.msk.f32.vlgmr.msra.gmra.mxu1 %vm110_vm1, %v324_v57 }
 0x423   :  { %1037 = vmatpush.xpose.msk.msrb.mxu1 %vm110_vm1, %v378_v59 }
 0x427   :  { %459 = vmatpush.msra.mxu1 %v1331_v32 }
 0x428   :  { %v376_v60 = vpop.permute.xlu0 %375 }
 0x42a   :  { %1038 = vmatmul.msk.f32.vlgmr.msrb.gmra.mxu1 %vm110_vm1, %v376_v60  ;;  %v1355_v60 = vld [vmem:[%s1477_s4] ss:$0 sm:$0xff] }
 0x49f   :  { %v348_v62 = vpop.f32.mrf.mxu1 }
 0x4a0   :  { %1036 = vmatmul.msk.f32.vlgmr.msra.gmra.mxu3 %vm110_vm1, %v348_v62 }
 0x4a1   :  { %615 = vmatpush.msra.mxu3 %v50_v41 }
 0x4a7   :  { %v400_v63 = vpop.f32.mrf.mxu1 }
 0x4a8   :  { %v403_v0 = vmul.f32 0.35355338, %v400_v63  ;;  %1042 = vmatmul.msk.f32.vlgmr.msrb.gmra.mxu3 %vm110_vm1, %v1254_v19 }
 0x4a9   :  { %727 = vmatpush.msrb.mxu3 %v51_v44 }
 0x4aa   :  { %v404_v1 = vsel %vm110_vm1, %v403_v0, -inf }
 0x4ab   :  { %405 = vmax.xlane.f32.xlu2 %v404_v1 }
 0x4c3   :  { %645 = vrot.lane.b32.xlu2 %v1254_v19, %s1134_s26 }
 0x51e   :  { %v406_v3 = vpop.xlane.xlu2 %405 }
 0x51f   :  { %v407_v6 = vsub.f32 %v403_v0, %v406_v3 }
 0x521   :  { %v408_v9 = vmul.f32 1.442695, %v407_v6 }
 0x523   :  { %v1304_v5 = vpop.f32.mrf.mxu3  ;;  %1097 = vpow2.f32 %v408_v9 }
 0x524   :  { %v374_v47 = vadd.f32 %v1304_v5, %v283_v46 }
 0x526   :  { %v646_v29 = vpop.permute.xlu2 %645 }
 0x529   :  { %v1098_v13 = vpop.eup %1097 }
 0x52a   :  { %v410_v14 = vsel %vm110_vm1, %v1098_v13, 0.0 }
 0x52b   :  { %v490_v10 = vpop.f32.mrf.mxu3 }
 0x52c   :  { %v493_v11 = vmul.f32 0.35355338, %v490_v10 }
 0x52e   :  { %v494_v12 = vsel %vm110_vm1, %v493_v11, -inf }
 0x52f   :  { %495 = vmax.xlane.f32.xlu1 %v494_v12 }
 0x537   :  { %411 = vadd.xlane.f32.xlu1 %v410_v14 }
 0x550   :  { %533 = vrot.lane.b32.xlu1 %v1254_v19, %s1129_s21 }
 0x558   :  { %735 = vrot.lane.b32.xlu1 %v1254_v19, %s1131_s2 }
 0x5a2   :  { %v496_v15 = vpop.xlane.xlu1 %495 }
 0x5a3   :  { %v497_v16 = vsub.f32 %v493_v11, %v496_v15 }
 0x5a5   :  { %v498_v17 = vmul.f32 1.442695, %v497_v16  ;;  %v1138_v16 = vmov 32.0  }
 0x5a7   :  { %1099 = vpow2.f32 %v498_v17 }
 0x5aa   :  { %v412_v21 = vpop.xlane.xlu1 %411 }
 0x5ad   :  { %v1100_v18 = vpop.eup %1099 }
 0x5ae   :  { %v500_v20 = vsel %vm110_vm1, %v1100_v18, 0.0 }
 0x5af   :  { %501 = vadd.xlane.f32.xlu0 %v500_v20 }
 0x5c2   :  { %v534_v22 = vpop.permute.xlu1 %533 }
 0x5c3   :  { %415 = vrot.lane.b32.xlu0 %v1231_v7, %s1137_s18 }
 0x5ca   :  { %v736_v26 = vpop.permute.xlu1 %735 }
 0x5cb   :  { %531 = vrot.lane.b32.xlu0 %v1254_v19, %s1127_s1 }
 0x5d3   :  { %643 = vrot.lane.b32.xlu0 %v1254_v19, %s1130_s0 }
 0x5db   :  { %733 = vrot.lane.b32.xlu0 %v1254_v19, %s1136_s17 }
 0x622   :  { %v502_v23 = vpop.xlane.xlu0 %501 }
 0x623   :  { %1101 = vrcp.f32 %v502_v23 }
 0x624   :  { %1103 = vrcp.f32 %v412_v21 }
 0x629   :  { %v1102_v24 = vpop.eup %1101 }
 0x62a   :  { %v504_v25 = vmul.f32 %v1102_v24, %v1100_v18  ;;  %v1104_v7 = vpop.eup %1103 }
 0x62b   :  { %v414_v27 = vmul.f32 %v1104_v7, %v1098_v13 }
 0x62c   :  { %1043 = vmatmul.msk.f32.vlgmr.msrb.gmra.mxu0 %vm110_vm1, %v504_v25 }
 0x62d   :  { %1053 = vmatpush.xpose.msk.msrb.mxu0 %vm110_vm1, %v736_v26 }
 0x635   :  { %v416_v28 = vpop.permute.xlu0 %415 }
 0x636   :  { %436 = vmatpush.msra.mxu2 %v416_v28 }
 0x637   :  { %1039 = vmatmul.msk.f32.vlgmr.msra.gmra.mxu2 %vm110_vm1, %v414_v27 }
 0x638   :  { %1044 = vmatpush.xpose.msk.msrb.mxu2 %vm110_vm1, %v534_v22 }
 0x63c   :  { %1049 = vmatpush.xpose.msk.msra.mxu2 %vm110_vm1, %v646_v29 }
 0x63d   :  { %v532_v30 = vpop.permute.xlu0 %531 }
 0x63f   :  { %1045 = vmatmul.msk.f32.vlgmr.msrb.gmra.mxu2 %vm110_vm1, %v532_v30 }
 0x645   :  { %v644_v31 = vpop.permute.xlu0 %643 }
 0x647   :  { %1050 = vmatmul.msk.f32.vlgmr.msra.gmra.mxu2 %vm110_vm1, %v644_v31 }
 0x64d   :  { %v734_v34 = vpop.permute.xlu0 %733 }
 0x6a9   :  { %v528_v33 = vpop.f32.mrf.mxu0 }
 0x6aa   :  { %1048 = vmatmul.msk.f32.vlgmr.msra.gmra.mxu0 %vm110_vm1, %v528_v33  ;;  %v59_v33 = vld [vmem:[%s1481_s7 + $0x18] sm:$0xff] }
 0x6b2   :  { %1054 = vmatmul.msk.f32.vlgmr.msrb.gmra.mxu0 %vm110_vm1, %v734_v34  ;;  %v58_v34 = vld [vmem:[%s1481_s7 + $0x10] sm:$0xff] }
 0x6ba   :  { %v438_v35 = vpop.f32.mrf.mxu2 }
 0x6bb   :  { %1040 = vmatmul.msk.f32.vlgmr.msra.gmra.mxu1 %vm110_vm1, %v438_v35  ;;  %v57_v35 = vld [vmem:[%s1481_s7 + $0x8] sm:$0xff] }
 0x6c2   :  { %v556_v36 = vpop.f32.mrf.mxu2 }
 0x6c3   :  { %v559_v37 = vmul.f32 0.35355338, %v556_v36  ;;  %v56_v36 = vld [vmem:[%s1481_s7] sm:$0xff] }
 0x6c5   :  { %v560_v38 = vsel %vm110_vm1, %v559_v37, -inf }
 0x6c6   :  { %561 = vmax.xlane.f32.xlu1 %v560_v38 }
 0x6ca   :  { %v668_v39 = vpop.f32.mrf.mxu2 }
 0x6cb   :  { %v671_v40 = vmul.f32 0.35355338, %v668_v39 }
 0x6cd   :  { %v672_v41 = vsel %vm110_vm1, %v671_v40, -inf }
 0x6ce   :  { %673 = vmax.xlane.f32.xlu0 %v672_v41 }
 0x727   :  { %v1339_v42 = vpop.f32.mrf.mxu0 }
 0x72f   :  { %v758_v43 = vpop.f32.mrf.mxu0 }
 0x730   :  { %v761_v44 = vmul.f32 0.35355338, %v758_v43 }
 0x732   :  { %v762_v45 = vsel %vm110_vm1, %v761_v44, -inf }
 0x733   :  { %763 = vmax.xlane.f32.xlu2 %v762_v45 }
 0x738   :  { %v461_v48 = vpop.f32.mrf.mxu1 }
 0x739   :  { %v464_v49 = vadd.f32 %v461_v48, %v374_v47  ;;  %v562_v50 = vpop.xlane.xlu1 %561  ;;  %v1389_v47 = vld [vmem:[%s1478_s5] ss:$0 sm:$0xff] }
 0x73a   :  { %v563_v51 = vsub.f32 %v559_v37, %v562_v50  ;;  %v1394_v50 = vld [vmem:[%s1479_s6] ss:$0 sm:$0xff] }
 0x73b   :  { %465 = vst.msk [vmem:[#allocation2] sm:$0xff] %vm77_vm0, %v464_v49 }
 0x73c   :  { %v564_v52 = vmul.f32 1.442695, %v563_v51 }
 0x73e   :  { %1105 = vpow2.f32 %v564_v52 }
 0x741   :  { %v674_v53 = vpop.xlane.xlu0 %673 }
 0x742   :  { %v675_v54 = vsub.f32 %v671_v40, %v674_v53  ;;  %v824_v61 = vld [vmem:[#allocation2] sm:$0xff] }
 0x743   :  { %v829_v62 = vadd.f32 %v1355_v60, %v824_v61  ;;  %v62_v61 = vld [vmem:[%s1482_s9 + $0x8] sm:$0xff] }
 0x744   :  { %v1106_v55 = vpop.eup %1105  ;;  %v676_v56 = vmul.f32 1.442695, %v675_v54  ;;  %v68_v54 = vld [vmem:[%s1482_s9 + $0x38] sm:$0xff] }
 0x745   :  { %v566_v57 = vsel %vm110_vm1, %v1106_v55, 0.0  ;;  %v831_v63 = vadd.f32 %v829_v62, %v1224_v4  ;;  %946 = vmatpush.msra.mxu0 %v68_v54  ;;  %v61_v62 = vld [vmem:[%s1482_s9] sm:$0xff] }
 0x746   :  { %1107 = vpow2.f32 %v676_v56  ;;  %567 = vadd.xlane.f32.xlu1 %v566_v57  ;;  %v66_v56 = vld [vmem:[%s1482_s9 + $0x28] sm:$0xff]  ;;  %v65_v57 = vld [vmem:[%s1482_s9 + $0x20] sm:$0xff] }
 0x747   :  { %v833_v0 = vsel %vm77_vm0, %v831_v63, 0.0 }
 0x74c   :  { %v1108_v58 = vpop.eup %1107 }
 0x74d   :  { %v678_v59 = vsel %vm110_vm1, %v1108_v58, 0.0 }
 0x74e   :  { %679 = vadd.xlane.f32.xlu0 %v678_v59  ;;  %v63_v59 = vld [vmem:[%s1482_s9 + $0x10] sm:$0xff] }
 0x75f   :  { %571 = vrot.lane.b32.xlu1 %v1254_v19, %s1133_s25 }
 0x762   :  { %683 = vrot.lane.b32.xlu0 %v1254_v19, %s1135_s16 }
 0x789   :  { %834 = vadd.xlane.f32.xlu1 %v833_v0 }
 0x7a6   :  { %v764_v1 = vpop.xlane.xlu2 %763 }
 0x7a7   :  { %v765_v2 = vsub.f32 %v761_v44, %v764_v1  ;;  %v1427_v1 = vld [vmem:[%s1480_s8] ss:$0 sm:$0xff] }
 0x7a9   :  { %v766_v3 = vmul.f32 1.442695, %v765_v2 }
 0x7ab   :  { %1109 = vpow2.f32 %v766_v3 }
 0x7b1   :  { %v1110_v5 = vpop.eup %1109 }
 0x7b2   :  { %v768_v6 = vsel %vm110_vm1, %v1110_v5, 0.0 }
 0x7b3   :  { %769 = vadd.xlane.f32.xlu2 %v768_v6 }
 0x7b9   :  { %v568_v9 = vpop.xlane.xlu1 %567 }
 0x7ba   :  { %1111 = vrcp.f32 %v568_v9 }
 0x7c0   :  { %v1112_v11 = vpop.eup %1111 }
 0x7c1   :  { %v680_v10 = vpop.xlane.xlu0 %679  ;;  %v570_v4 = vmul.f32 %v1112_v11, %v1106_v55  ;;  %v67_v55 = vld [vmem:[%s1482_s9 + $0x30] sm:$0xff] }
 0x7c2   :  { %1113 = vrcp.f32 %v680_v10  ;;  %947 = vmatpush.msra.mxu0 %v67_v55 }
 0x7c3   :  { %1115 = vrcp.f32 %v1138_v16 }
 0x7c4   :  { %948 = vmatpush.msra.mxu0 %v66_v56 }
 0x7c6   :  { %949 = vmatpush.msra.mxu0 %v65_v57 }
 0x7c8   :  { %v1114_v14 = vpop.eup %1113 }
 0x7c9   :  { %v682_v15 = vmul.f32 %v1114_v14, %v1108_v58  ;;  %v1116_v17 = vpop.eup %1115  ;;  %v64_v58 = vld [vmem:[%s1482_s9 + $0x18] sm:$0xff] }
 0x7ca   :  { %vm844_vm2 = vweird.f32 %v1116_v17  ;;  %950 = vmatpush.msra.mxu0 %v64_v58 }
 0x7cb   :  { %773 = vrot.lane.b32.xlu2 %v1254_v19, %s1137_s18  ;;  %v840_v19 = vmul.f32 32.0, %v1116_v17 }
 0x7cc   :  { %951 = vmatpush.msra.mxu0 %v63_v59 }
 0x7cd   :  { %v841_v18 = vsub.f32 1.0, %v840_v19 }
 0x7ce   :  { %952 = vmatpush.msra.mxu0 %v62_v61 }
 0x7cf   :  { %v842_v20 = vmul.f32 %v1116_v17, %v841_v18 }
 0x7d0   :  { %953 = vmatpush.msra.mxu0 %v61_v62 }
 0x7d1   :  { %v572_v12 = vpop.permute.xlu1 %571  ;;  %v843_v21 = vadd.f32 %v1116_v17, %v842_v20 }
 0x7d2   :  { %592 = vmatpush.msrb.mxu1 %v572_v12 }
 0x7d3   :  { %1046 = vmatmul.msk.f32.vlgmr.msrb.gmra.mxu1 %vm110_vm1, %v570_v4  ;;  %v1366_v22 = vsel %vm844_vm2, %v1116_v17, %v843_v21 }
 0x7d4   :  { %v684_v13 = vpop.permute.xlu0 %683 }
 0x7d5   :  { %704 = vmatpush.msra.mxu1 %v684_v13 }
 0x7d7   :  { %817 = vmatpush.msrb.mxu1 %v1331_v32 }
 0x7db   :  { %1051 = vmatmul.msk.f32.vlgmr.msra.gmra.mxu1 %vm110_vm1, %v682_v15  ;;  %v1439_v15 = vld [vmem:[%s1483_s10] ss:$0 sm:$0xff] }
 0x7fc   :  { %v835_v23 = vpop.xlane.xlu1 %834 }
 0x7fd   :  { %v846_v24 = vmul.f32 %v1366_v22, %v835_v23 }
 0x7ff   :  { %v848_v25 = vsub.f32 %v831_v63, %v846_v24 }
 0x801   :  { %v850_v26 = vmul.f32 %v848_v25, %v848_v25 }
 0x803   :  { %v852_v7 = vsel %vm77_vm0, %v850_v26, 0.0 }
 0x804   :  { %853 = vadd.xlane.f32.xlu2 %v852_v7 }
 0x826   :  { %v770_v27 = vpop.xlane.xlu2 %769 }
 0x827   :  { %1117 = vrcp.f32 %v770_v27 }
 0x82d   :  { %v1118_v28 = vpop.eup %1117 }
 0x82e   :  { %v772_v29 = vmul.f32 %v1118_v28, %v1110_v5  ;;  %v774_v30 = vpop.permute.xlu2 %773 }
 0x82f   :  { %794 = vmatpush.msrb.mxu2 %v774_v30 }
 0x830   :  { %1055 = vmatmul.msk.f32.vlgmr.msrb.gmra.mxu2 %vm110_vm1, %v772_v29 }
 0x850   :  { %v594_v31 = vpop.f32.mrf.mxu1 }
 0x851   :  { %1047 = vmatmul.msk.f32.vlgmr.msra.gmra.mxu3 %vm110_vm1, %v594_v31 }
 0x852   :  { %915 = vmatpush.msra.mxu3 %v59_v33 }
 0x854   :  { %916 = vmatpush.msra.mxu3 %v58_v34 }
 0x856   :  { %917 = vmatpush.msra.mxu3 %v57_v35 }
 0x858   :  { %v706_v32 = vpop.f32.mrf.mxu1  ;;  %918 = vmatpush.msra.mxu3 %v56_v36 }
 0x859   :  { %1052 = vmatmul.msk.f32.vlgmr.msrb.gmra.mxu3 %vm110_vm1, %v706_v32 }
 0x877   :  { %v854_v37 = vpop.xlane.xlu2 %853 }
 0x878   :  { %v858_v38 = vmul.f32 %v854_v37, %v1366_v22 }
 0x87a   :  { %v860_v39 = vadd.f32 1e-05, %v858_v38 }
 0x87c   :  { %1119 = vrsqrt.f32 %v860_v39  ;;  %vm868_vm4 = vweird.f32 %v860_v39 }
 0x882   :  { %v1120_v40 = vpop.eup %1119 }
 0x883   :  { %v863_v41 = vmul.f32 %v1120_v40, %v860_v39  ;;  %vm869_vm3 = vweird.f32 %v1120_v40 }
 0x884   :  { %vm870_vm5 = vmor %vm868_vm4, %vm869_vm3 }
 0x885   :  { %v864_v43 = vmul.f32 %v1120_v40, %v863_v41 }
 0x887   :  { %v865_v44 = vmul.f32 0.5, %v864_v43 }
 0x889   :  { %v866_v45 = vsub.f32 1.5, %v865_v44 }
 0x88b   :  { %v867_v46 = vmul.f32 %v1120_v40, %v866_v45 }
 0x88d   :  { %v871_v48 = vsel %vm870_vm5, %v1120_v40, %v867_v46 }
 0x88e   :  { %v882_v49 = vmul.f32 %v871_v48, %v848_v25 }
 0x890   :  { %v887_v51 = vmul.f32 %v1389_v47, %v882_v49 }
 0x892   :  { %v892_v52 = vadd.f32 %v1394_v50, %v887_v51 }
 0x894   :  { %1057 = vmatmul.msk.f32.vlgmr.msra.gmra.mxu3 %vm77_vm0, %v892_v52 }
 0x8b3   :  { %v796_v53 = vpop.f32.mrf.mxu2 }
 0x8b4   :  { %1056 = vmatmul.msk.f32.vlgmr.msrb.gmra.mxu1 %vm110_vm1, %v796_v53 }
 0x8d4   :  { %v617_v63 = vpop.f32.mrf.mxu3 }
 0x8d5   :  { %v641_v6 = vadd.f32 %v1339_v42, %v617_v63 }
 0x8dc   :  { %v729_v0 = vpop.f32.mrf.mxu3 }
 0x8dd   :  { %v732_v9 = vadd.f32 %v729_v0, %v641_v6 }
 0x917   :  { %v920_v2 = vpop.f32.mrf.mxu3 }
 0x918   :  { %v921_v3 = vadd.f32 %v1427_v1, %v920_v2 }
 0x91a   :  { %v926_v5 = vmax.f32 %v921_v3, 0.0 }
 0x91c   :  { %1059 = vmatmul.msk.f32.vlgmr.msra.gmra.mxu0 %vm931_vm6, %v926_v5 }
 0x931   :  { %v819_v10 = vpop.f32.mrf.mxu1 }
 0x932   :  { %v822_v11 = vadd.f32 %v819_v10, %v732_v9 }
 0x934   :  { %823 = vst.msk [vmem:[#allocation2 + $0x8] sm:$0xff] %vm77_vm0, %v822_v11 }
 0x93b   :  { %v825_v4 = vld [vmem:[#allocation2 + $0x8] sm:$0xff] }
 0x93c   :  { %v830_v12 = vadd.f32 %v1355_v60, %v825_v4 }
 0x93e   :  { %v832_v13 = vadd.f32 %v830_v12, %v1241_v8 }
 0x940   :  { %v836_v14 = vsel %vm77_vm0, %v832_v13, 0.0 }
 0x941   :  { %837 = vadd.xlane.f32.xlu0 %v836_v14 }
 0x999   :  { %v955_v16 = vpop.f32.mrf.mxu0 }
 0x99a   :  { %v956_v42 = vadd.f32 %v1439_v15, %v955_v16 }
 0x99c   :  { %v961_v17 = vadd.f32 %v956_v42, %v892_v52  ;;  %v1084_v52 = vld [vmem:[%s1485_s12] ss:$0 sm:$0xff] }
 0x99e   :  { %v963_v19 = vsel %vm77_vm0, %v961_v17, 0.0 }
 0x99f   :  { %964 = vadd.xlane.f32.xlu0 %v963_v19 }
 0x9b4   :  { %v838_v18 = vpop.xlane.xlu0 %837 }
 0x9b5   :  { %v847_v60 = vmul.f32 %v1366_v22, %v838_v18 }
 0x9b7   :  { %v849_v20 = vsub.f32 %v832_v13, %v847_v60 }
 0x9b9   :  { %v851_v8 = vmul.f32 %v849_v20, %v849_v20 }
 0x9bb   :  { %v855_v21 = vsel %vm77_vm0, %v851_v8, 0.0 }
 0x9bc   :  { %856 = vadd.xlane.f32.xlu1 %v855_v21 }
 0xa12   :  { %v965_v23 = vpop.xlane.xlu0 %964 }
 0xa13   :  { %v969_v24 = vmul.f32 %v965_v23, %v1366_v22 }
 0xa15   :  { %v971_v25 = vsub.f32 %v961_v17, %v969_v24 }
 0xa17   :  { %v973_v26 = vmul.f32 %v971_v25, %v971_v25 }
 0xa19   :  { %v975_v7 = vsel %vm77_vm0, %v973_v26, 0.0 }
 0xa1a   :  { %976 = vadd.xlane.f32.xlu0 %v975_v7 }
 0xa2f   :  { %v857_v27 = vpop.xlane.xlu1 %856 }
 0xa30   :  { %v859_v28 = vmul.f32 %v857_v27, %v1366_v22 }
 0xa32   :  { %v861_v29 = vadd.f32 1e-05, %v859_v28 }
 0xa34   :  { %1121 = vrsqrt.f32 %v861_v29  ;;  %vm878_vm8 = vweird.f32 %v861_v29 }
 0xa3a   :  { %v1122_v30 = vpop.eup %1121 }
 0xa3b   :  { %v873_v31 = vmul.f32 %v1122_v30, %v861_v29  ;;  %vm879_vm7 = vweird.f32 %v1122_v30 }
 0xa3c   :  { %vm880_vm9 = vmor %vm878_vm8, %vm879_vm7 }
 0xa3d   :  { %v874_v32 = vmul.f32 %v1122_v30, %v873_v31 }
 0xa3f   :  { %v875_v33 = vmul.f32 0.5, %v874_v32 }
 0xa41   :  { %v876_v34 = vsub.f32 1.5, %v875_v33 }
 0xa43   :  { %v877_v35 = vmul.f32 %v1122_v30, %v876_v34 }
 0xa45   :  { %v881_v36 = vsel %vm880_vm9, %v1122_v30, %v877_v35 }
 0xa46   :  { %v883_v37 = vmul.f32 %v881_v36, %v849_v20 }
 0xa48   :  { %v888_v38 = vmul.f32 %v1389_v47, %v883_v37  ;;  %v1083_v47 = vld [vmem:[%s1484_s11] ss:$0 sm:$0xff] }
 0xa4a   :  { %v893_v39 = vadd.f32 %v1394_v50, %v888_v38 }
 0xa4c   :  { %1058 = vmatmul.msk.f32.gmra.mxu3 %vm77_vm0, %v893_v39 }
 0xa8d   :  { %v977_v40 = vpop.xlane.xlu0 %976 }
 0xa8e   :  { %v981_v41 = vmul.f32 %v977_v40, %v1366_v22 }
 0xa90   :  { %v983_v43 = vadd.f32 1e-05, %v981_v41 }
 0xa92   :  { %1123 = vrsqrt.f32 %v983_v43  ;;  %vm991_vm11 = vweird.f32 %v983_v43 }
 0xa98   :  { %v1124_v44 = vpop.eup %1123 }
 0xa99   :  { %v986_v45 = vmul.f32 %v1124_v44, %v983_v43  ;;  %vm992_vm10 = vweird.f32 %v1124_v44 }
 0xa9a   :  { %vm993_vm12 = vmor %vm991_vm11, %vm992_vm10 }
 0xa9b   :  { %v987_v46 = vmul.f32 %v1124_v44, %v986_v45 }
 0xa9d   :  { %v988_v48 = vmul.f32 0.5, %v987_v46 }
 0xa9f   :  { %v989_v49 = vsub.f32 1.5, %v988_v48 }
 0xaa1   :  { %v990_v51 = vmul.f32 %v1124_v44, %v989_v49 }
 0xaa3   :  { %v994_v50 = vsel %vm993_vm12, %v1124_v44, %v990_v51 }
 0xaa4   :  { %v1005_v53 = vmul.f32 %v994_v50, %v971_v25 }
 0xaa6   :  { %v1010_v54 = vmul.f32 %v1083_v47, %v1005_v53 }
 0xaa8   :  { %v1015_v55 = vadd.f32 %v1084_v52, %v1010_v54 }
 0xaaa   :  { %1017 = vst.msk [vmem:[%s1486_s13] sm:$0xff] %vm77_vm0, %v1015_v55 }
 0xacf   :  { %v923_v56 = vpop.f32.mrf.mxu3 }
 0xad0   :  { %v924_v57 = vadd.f32 %v1427_v1, %v923_v56 }
 0xad2   :  { %v927_v58 = vmax.f32 %v924_v57, 0.0 }
 0xad4   :  { %1060 = vmatmul.msk.f32.gmra.mxu0 %vm931_vm6, %v927_v58 }
 0xb51   :  { %v958_v59 = vpop.f32.mrf.mxu0 }
 0xb52   :  { %v959_v61 = vadd.f32 %v1439_v15, %v958_v59 }
 0xb54   :  { %v962_v62 = vadd.f32 %v959_v61, %v893_v39 }
 0xb56   :  { %v966_v63 = vsel %vm77_vm0, %v962_v62, 0.0 }
 0xb57   :  { %967 = vadd.xlane.f32.xlu1 %v966_v63 }
 0xbca   :  { %v968_v0 = vpop.xlane.xlu1 %967 }
 0xbcb   :  { %v970_v2 = vmul.f32 %v968_v0, %v1366_v22 }
 0xbcd   :  { %v972_v3 = vsub.f32 %v962_v62, %v970_v2 }
 0xbcf   :  { %v974_v5 = vmul.f32 %v972_v3, %v972_v3 }
 0xbd1   :  { %v978_v6 = vsel %vm77_vm0, %v974_v5, 0.0 }
 0xbd2   :  { %979 = vadd.xlane.f32.xlu2 %v978_v6 }
 0xc45   :  { %v980_v9 = vpop.xlane.xlu2 %979 }
 0xc46   :  { %v982_v1 = vmul.f32 %v980_v9, %v1366_v22 }
 0xc48   :  { %v984_v10 = vadd.f32 1e-05, %v982_v1 }
 0xc4a   :  { %1125 = vrsqrt.f32 %v984_v10  ;;  %vm1001_vm14 = vweird.f32 %v984_v10 }
 0xc50   :  { %v1126_v11 = vpop.eup %1125 }
 0xc51   :  { %v996_v4 = vmul.f32 %v1126_v11, %v984_v10  ;;  %vm1002_vm13 = vweird.f32 %v1126_v11 }
 0xc52   :  { %vm1003_vm15 = vmor %vm1001_vm14, %vm1002_vm13 }
 0xc53   :  { %v997_v12 = vmul.f32 %v1126_v11, %v996_v4 }
 0xc55   :  { %v998_v13 = vmul.f32 0.5, %v997_v12 }
 0xc57   :  { %v999_v14 = vsub.f32 1.5, %v998_v13 }
 0xc59   :  { %v1000_v15 = vmul.f32 %v1126_v11, %v999_v14 }
 0xc5b   :  { %v1004_v16 = vsel %vm1003_vm15, %v1126_v11, %v1000_v15 }
 0xc5c   :  { %v1006_v42 = vmul.f32 %v1004_v16, %v972_v3 }
 0xc5e   :  { %v1011_v17 = vmul.f32 %v1083_v47, %v1006_v42 }
 0xc60   :  { %v1016_v19 = vadd.f32 %v1084_v52, %v1011_v17 }
 0xc62   :  { %1018 = vst.msk [vmem:[%s1486_s13 + $0x8] sm:$0xff] %vm77_vm0, %v1016_v19 }

</bundles_post_ra>
